<compile_context>
chip_gen: v7x
topology: tpu7x:2x2x1
jax: 0.10.0
libtpu: 0.0.40
codegen_flags: <defaults>
</compile_context>

<pallas_src>
from functools import partial

import jax
import jax.numpy as jnp
from jax import lax
from jax.experimental import pallas as pl
from jax.experimental.pallas import tpu as pltpu


CONV_CHANNELS = (8, 16, 16)   # conv1, conv2, conv3 output channels (fixed by the module)


def convdqn_kernel(x_ref, w1_ref, b1_ref, w2k_ref, b2_ref, w3k_ref, b3_ref,
                   whk_ref, bh_ref, out_ref, *, tb, c1, c3):
    x = x_ref[...]                                            # (TB, HW) f32, HW lane-dense

    # conv1 (C_in = 1): one full-width VPU FMA over (c1*TB, HW).
    # Row layout c*TB + b matches the kron row ordering used by conv2/conv3.
    x_rep = jnp.concatenate([x] * c1, axis=0)                 # tile x once -> (c1*TB, HW)
    h = jnp.maximum(x_rep * w1_ref[...] + b1_ref[...], 0.0)   # (c1*TB, HW)

    # conv2 / conv3: block-diagonal kron(W, I_TB) channel mixing on the MXU.
    # HW stays in the lane axis; no reshape/relayout of the activations.
    h = jnp.maximum(
        jnp.dot(w2k_ref[...], h, preferred_element_type=jnp.float32) + b2_ref[...],
        0.0)                                                  # (c2*TB, HW)
    h = jnp.maximum(
        jnp.dot(w3k_ref[...], h, preferred_element_type=jnp.float32) + b3_ref[...],
        0.0)                                                  # (c3*TB, HW)

    # head: out[b, o] = sum_{c,p} h[c*TB + b, p] * Whk[c, o, p] + bh[o]
    # Single batched MXU contraction (batch dim c3, contracting HW), then a tiny
    # c3-sum on the VPU.  The reshape splits whole sublane groups (TB % 8 == 0),
    # so it is layout-preserving.
    h3 = h.reshape(c3, tb, -1)                                # (c3, TB, HW)
    acc = lax.dot_general(h3, whk_ref[...],
                          dimension_numbers=(((2,), (2,)), ((0,), (0,))),
                          preferred_element_type=jnp.float32)  # (c3, TB, OUT_PAD)
    out_ref[...] = jnp.sum(acc, axis=0) + bh_ref[...]          # (TB, OUT_PAD)


def preprocess_params(params, tb):
    """One-time weight preprocessing (hoisted out of the per-call path)."""
    c1, c2, c3 = CONV_CHANNELS
    w1, b1, w2, b2, w3, b3, wh, bh = params
    f32 = jnp.float32
    outputs = wh.shape[0]
    hw = wh.shape[1] // c3
    out_pad = ((outputs + 7) // 8) * 8            # sublane-aligned head output width
    eye = jnp.eye(tb, dtype=f32)

    # Whk[c, o, p] = wh[o, c*HW + p]  (matches PyTorch's NCHW (c, h, w) flatten).
    whk = wh.reshape(outputs, c3, hw).transpose(1, 0, 2).astype(f32)   # (c3, outputs, hw)
    whk = jnp.pad(whk, ((0, 0), (0, out_pad - outputs), (0, 0)))       # lane-dense: HW last
    bhp = jnp.pad(bh.reshape(1, outputs).astype(f32), ((0, 0), (0, out_pad - outputs)))

    return dict(
        w1c=jnp.repeat(w1.reshape(c1).astype(f32), tb).reshape(c1 * tb, 1),  # (c1*tb, 1)
        b1c=jnp.repeat(b1.astype(f32), tb).reshape(c1 * tb, 1),              # (c1*tb, 1)
        w2k=jnp.kron(w2.reshape(c2, c1).astype(f32), eye),                   # (c2*tb, c1*tb)
        b2c=jnp.repeat(b2.astype(f32), tb).reshape(c2 * tb, 1),              # (c2*tb, 1)
        w3k=jnp.kron(w3.reshape(c3, c2).astype(f32), eye),                   # (c3*tb, c2*tb)
        b3c=jnp.repeat(b3.astype(f32), tb).reshape(c3 * tb, 1),              # (c3*tb, 1)
        whk=whk,                                                             # (c3, out_pad, hw)
        bhp=bhp,                                                             # (1, out_pad)
        out_pad=out_pad,
    )


def convdqn_forward(x_nchw, prep, outputs, tb):
    c1, c2, c3 = CONV_CHANNELS
    B, C, H, W = x_nchw.shape
    assert C == 1
    HW = H * W
    # Each grid block holds whole, sublane-aligned batches so the head stays local.
    assert B % tb == 0 and tb % 8 == 0, "batch tile must be a multiple of 8 whole batches"
    out_pad = prep["out_pad"]

    # C == 1: plain reshape (no transpose) to a lane-dense (B, HW) matrix.
    x2d = x_nchw.reshape(B, HW).astype(jnp.float32)

    kernel = partial(convdqn_kernel, tb=tb, c1=c1, c3=c3)

    def const(shape):
        return pl.BlockSpec(shape, lambda i, _n=len(shape): (0,) * _n)

    out_padded = pl.pallas_call(
        kernel,
        out_shape=jax.ShapeDtypeStruct((B, out_pad), jnp.float32),
        grid=(B // tb,),
        in_specs=[
            pl.BlockSpec((tb, HW), lambda i: (i, 0)),   # x, batch-tiled
            const((c1 * tb, 1)),                        # conv1 weight column (VMEM)
            const((c1 * tb, 1)),                        # conv1 bias column
            const((c2 * tb, c1 * tb)),                  # conv2 kron weight (resident)
            const((c2 * tb, 1)),                        # conv2 bias column
            const((c3 * tb, c2 * tb)),                  # conv3 kron weight (resident)
            const((c3 * tb, 1)),                        # conv3 bias column
            const((c3, out_pad, HW)),                   # head weight, HW lane-dense
            const((1, out_pad)),                        # head bias (padded)
        ],
        out_specs=pl.BlockSpec((tb, out_pad), lambda i: (i, 0)),
        compiler_params=pltpu.CompilerParams(
            dimension_semantics=("parallel",)),
    )(x2d, prep["w1c"], prep["b1c"], prep["w2k"], prep["b2c"],
      prep["w3k"], prep["b3c"], prep["whk"], prep["bhp"])

    return out_padded[:, :outputs]


def convdqn_reference(x, params, outputs):
    """Pure-JAX reference matching the PyTorch module exactly (NCHW, f32)."""
    w1, b1, w2, b2, w3, b3, wh, bh = params
    hi = jax.lax.Precision.HIGHEST

    def conv1x1(x, w, b):
        y = jnp.einsum('bchw,oc->bohw', x, w[:, :, 0, 0], precision=hi)
        return y + b.reshape(1, -1, 1, 1)

    h = jax.nn.relu(conv1x1(x, w1, b1))
    h = jax.nn.relu(conv1x1(h, w2, b2))
    h = jax.nn.relu(conv1x1(h, w3, b3))
    flat = h.reshape(h.shape[0], -1)          # NCHW flatten: (c, h, w) order
    return jnp.dot(flat, wh.T, precision=hi) + bh


def init_params(key, h, w, outputs):
    HW = h * w
    keys = jax.random.split(key, 8)
    u = lambda k, shape, s: jax.random.uniform(k, shape, jnp.float32, -s, s)
    w1 = u(keys[0], (8, 1, 1, 1), 1.0)
    b1 = u(keys[1], (8,), 1.0)
    w2 = u(keys[2], (16, 8, 1, 1), 0.35)
    b2 = u(keys[3], (16,), 0.35)
    w3 = u(keys[4], (16, 16, 1, 1), 0.25)
    b3 = u(keys[5], (16,), 0.25)
    wh = u(keys[6], (outputs, 16 * HW), 0.05)
    bh = u(keys[7], (outputs,), 0.05)
    return (w1, b1, w2, b2, w3, b3, wh, bh)


if __name__ == "__main__":
    # grid = (2,): two parallel batch tiles of 32 (keeps both v7x TensorCores busy,
    # fills the v6e/v7x MXU, stays within v5e's 16 MiB scoped-VMEM default).
    B, H, W, OUTPUTS, TB = 64, 16, 16, 4, 32
    root = jax.random.PRNGKey(0)
    kx, kp = jax.random.split(root)
    x = jax.random.normal(kx, (B, 1, H, W), dtype=jnp.float32)
    params = init_params(kp, H, W, OUTPUTS)
    prep = preprocess_params(params, TB)      # hoisted: done once at param-load time

    out = convdqn_forward(x, prep, OUTPUTS, TB)
    out = jax.block_until_ready(out)

    ref = convdqn_reference(x, params, OUTPUTS)
    assert out.shape == (B, OUTPUTS)
    # Tolerance covers the MXU's default-precision (bf16-pass) f32 matmuls; structural
    # errors (wrong layout / channel mapping) are O(|out|) and still fail loudly.
    assert jnp.allclose(out, ref, rtol=5e-2, atol=1e-2), (out[:2], ref[:2])
    print("KERNEL_OK")
</pallas_src>

<mosaic_0001>
module attributes {stable_mosaic.version = 11 : i64} {
  func.func @convdqn_kernel(%arg0: i32, %arg1: memref<32x256xf32, #tpu.memory_space<vmem>>, %arg2: memref<256x1xf32, #tpu.memory_space<vmem>>, %arg3: memref<256x1xf32, #tpu.memory_space<vmem>>, %arg4: memref<512x256xf32, #tpu.memory_space<vmem>>, %arg5: memref<512x1xf32, #tpu.memory_space<vmem>>, %arg6: memref<512x512xf32, #tpu.memory_space<vmem>>, %arg7: memref<512x1xf32, #tpu.memory_space<vmem>>, %arg8: memref<16x8x256xf32, #tpu.memory_space<vmem>>, %arg9: memref<1x8xf32, #tpu.memory_space<vmem>>, %arg10: memref<32x8xf32, #tpu.memory_space<vmem>>) attributes {dimension_semantics = [#tpu.dimension_semantics<parallel>], iteration_bounds = array<i64: 2>, scalar_prefetch = 0 : i64, scratch_operands = 0 : i64, tpu.core_type = #tpu.core_type<tc>, window_params = [{transform_indices = @transform_0, window_bounds = array<i64: 32, 256>}, {pipeline_mode = #tpu.pipeline_mode<synchronous>, transform_indices = @transform_1, window_bounds = array<i64: 256, 1>}, {pipeline_mode = #tpu.pipeline_mode<synchronous>, transform_indices = @transform_2, window_bounds = array<i64: 256, 1>}, {pipeline_mode = #tpu.pipeline_mode<synchronous>, transform_indices = @transform_3, window_bounds = array<i64: 512, 256>}, {pipeline_mode = #tpu.pipeline_mode<synchronous>, transform_indices = @transform_4, window_bounds = array<i64: 512, 1>}, {pipeline_mode = #tpu.pipeline_mode<synchronous>, transform_indices = @transform_5, window_bounds = array<i64: 512, 512>}, {pipeline_mode = #tpu.pipeline_mode<synchronous>, transform_indices = @transform_6, window_bounds = array<i64: 512, 1>}, {pipeline_mode = #tpu.pipeline_mode<synchronous>, transform_indices = @transform_7, window_bounds = array<i64: 16, 8, 256>}, {pipeline_mode = #tpu.pipeline_mode<synchronous>, transform_indices = @transform_8, window_bounds = array<i64: 1, 8>}, {transform_indices = @transform_9, window_bounds = array<i64: 32, 8>}]} {
    %c0 = arith.constant 0 : index
    %c0_0 = arith.constant 0 : index
    %0 = vector.load %arg1[%c0, %c0_0] : memref<32x256xf32, #tpu.memory_space<vmem>>, vector<32x256xf32>
    %1 = tpu.concatenate %0, %0, %0, %0, %0, %0, %0, %0 in 0 : vector<32x256xf32>, vector<32x256xf32>, vector<32x256xf32>, vector<32x256xf32>, vector<32x256xf32>, vector<32x256xf32>, vector<32x256xf32>, vector<32x256xf32> -> vector<256x256xf32>
    %c0_1 = arith.constant 0 : index
    %c0_2 = arith.constant 0 : index
    %2 = vector.load %arg2[%c0_1, %c0_2] : memref<256x1xf32, #tpu.memory_space<vmem>>, vector<256x1xf32>
    %3 = vector.broadcast %2 : vector<256x1xf32> to vector<256x256xf32>
    %4 = arith.mulf %1, %3 : vector<256x256xf32>
    %c0_3 = arith.constant 0 : index
    %c0_4 = arith.constant 0 : index
    %5 = vector.load %arg3[%c0_3, %c0_4] : memref<256x1xf32, #tpu.memory_space<vmem>>, vector<256x1xf32>
    %6 = vector.broadcast %5 : vector<256x1xf32> to vector<256x256xf32>
    %7 = arith.addf %4, %6 : vector<256x256xf32>
    %cst = arith.constant 0.000000e+00 : f32
    %8 = vector.broadcast %cst : f32 to vector<256x256xf32>
    %9 = arith.maximumf %7, %8 : vector<256x256xf32>
    %c0_5 = arith.constant 0 : index
    %c0_6 = arith.constant 0 : index
    %10 = vector.load %arg4[%c0_5, %c0_6] : memref<512x256xf32, #tpu.memory_space<vmem>>, vector<512x256xf32>
    %cst_7 = arith.constant dense<0.000000e+00> : vector<512x256xf32>
    %11 = tpu.matmul %10, %9, %cst_7 {dimension_numbers = #tpu.dot_dimension_numbers<[1], [0], [0], [1], [0, 0, 1, 1], [], []>} : vector<512x256xf32>, vector<256x256xf32>, vector<512x256xf32> -> vector<512x256xf32>
    %c0_8 = arith.constant 0 : index
    %c0_9 = arith.constant 0 : index
    %12 = vector.load %arg5[%c0_8, %c0_9] : memref<512x1xf32, #tpu.memory_space<vmem>>, vector<512x1xf32>
    %13 = vector.broadcast %12 : vector<512x1xf32> to vector<512x256xf32>
    %14 = arith.addf %11, %13 : vector<512x256xf32>
    %cst_10 = arith.constant 0.000000e+00 : f32
    %15 = vector.broadcast %cst_10 : f32 to vector<512x256xf32>
    %16 = arith.maximumf %14, %15 : vector<512x256xf32>
    %c0_11 = arith.constant 0 : index
    %c0_12 = arith.constant 0 : index
    %17 = vector.load %arg6[%c0_11, %c0_12] : memref<512x512xf32, #tpu.memory_space<vmem>>, vector<512x512xf32>
    %cst_13 = arith.constant dense<0.000000e+00> : vector<512x256xf32>
    %18 = tpu.matmul %17, %16, %cst_13 {dimension_numbers = #tpu.dot_dimension_numbers<[1], [0], [0], [1], [0, 0, 1, 1], [], []>} : vector<512x512xf32>, vector<512x256xf32>, vector<512x256xf32> -> vector<512x256xf32>
    %c0_14 = arith.constant 0 : index
    %c0_15 = arith.constant 0 : index
    %19 = vector.load %arg7[%c0_14, %c0_15] : memref<512x1xf32, #tpu.memory_space<vmem>>, vector<512x1xf32>
    %20 = vector.broadcast %19 : vector<512x1xf32> to vector<512x256xf32>
    %21 = arith.addf %18, %20 : vector<512x256xf32>
    %cst_16 = arith.constant 0.000000e+00 : f32
    %22 = vector.broadcast %cst_16 : f32 to vector<512x256xf32>
    %23 = arith.maximumf %21, %22 : vector<512x256xf32>
    %24 = vector.shape_cast %23 : vector<512x256xf32> to vector<16x32x256xf32>
    %c0_17 = arith.constant 0 : index
    %c0_18 = arith.constant 0 : index
    %c0_19 = arith.constant 0 : index
    %25 = vector.load %arg8[%c0_17, %c0_18, %c0_19] : memref<16x8x256xf32, #tpu.memory_space<vmem>>, vector<16x8x256xf32>
    %cst_20 = arith.constant dense<0.000000e+00> : vector<16x32x8xf32>
    %26 = tpu.matmul %24, %25, %cst_20 {dimension_numbers = #tpu.dot_dimension_numbers<[2], [2], [1], [1], [0, 0, 0, 1, 1, 1], [0], [0]>} : vector<16x32x256xf32>, vector<16x8x256xf32>, vector<16x32x8xf32> -> vector<16x32x8xf32>
    %cst_21 = arith.constant dense<0.000000e+00> : vector<32x8xf32>
    %27 = vector.multi_reduction <add>, %26, %cst_21 [0] : vector<16x32x8xf32> to vector<32x8xf32>
    %c0_22 = arith.constant 0 : index
    %c0_23 = arith.constant 0 : index
    %28 = vector.load %arg9[%c0_22, %c0_23] : memref<1x8xf32, #tpu.memory_space<vmem>>, vector<1x8xf32>
    %29 = vector.broadcast %28 : vector<1x8xf32> to vector<32x8xf32>
    %30 = arith.addf %27, %29 : vector<32x8xf32>
    %c0_24 = arith.constant 0 : index
    %c0_25 = arith.constant 0 : index
    %31 = vector.load %arg10[%c0_24, %c0_25] : memref<32x8xf32, #tpu.memory_space<vmem>>, vector<32x8xf32>
    tpu.vector_store %arg10[%c0_24, %c0_25], %30 {strides = array<i32>} : memref<32x8xf32, #tpu.memory_space<vmem>>, vector<32x8xf32>,
    return
  }
  func.func @transform_0(%arg0: i32) -> (i32, i32) {
    %c0_i32 = arith.constant 0 : i32
    %c0_i32_0 = arith.constant 0 : i32
    return %arg0, %c0_i32 : i32, i32
  }
  func.func @transform_1(%arg0: i32) -> (i32, i32) {
    %c0_i32 = arith.constant 0 : i32
    %c0_i32_0 = arith.constant 0 : i32
    %c0_i32_1 = arith.constant 0 : i32
    return %c0_i32, %c0_i32_0 : i32, i32
  }
  func.func @transform_2(%arg0: i32) -> (i32, i32) {
    %c0_i32 = arith.constant 0 : i32
    %c0_i32_0 = arith.constant 0 : i32
    %c0_i32_1 = arith.constant 0 : i32
    return %c0_i32, %c0_i32_0 : i32, i32
  }
  func.func @transform_3(%arg0: i32) -> (i32, i32) {
    %c0_i32 = arith.constant 0 : i32
    %c0_i32_0 = arith.constant 0 : i32
    %c0_i32_1 = arith.constant 0 : i32
    return %c0_i32, %c0_i32_0 : i32, i32
  }
  func.func @transform_4(%arg0: i32) -> (i32, i32) {
    %c0_i32 = arith.constant 0 : i32
    %c0_i32_0 = arith.constant 0 : i32
    %c0_i32_1 = arith.constant 0 : i32
    return %c0_i32, %c0_i32_0 : i32, i32
  }
  func.func @transform_5(%arg0: i32) -> (i32, i32) {
    %c0_i32 = arith.constant 0 : i32
    %c0_i32_0 = arith.constant 0 : i32
    %c0_i32_1 = arith.constant 0 : i32
    return %c0_i32, %c0_i32_0 : i32, i32
  }
  func.func @transform_6(%arg0: i32) -> (i32, i32) {
    %c0_i32 = arith.constant 0 : i32
    %c0_i32_0 = arith.constant 0 : i32
    %c0_i32_1 = arith.constant 0 : i32
    return %c0_i32, %c0_i32_0 : i32, i32
  }
  func.func @transform_7(%arg0: i32) -> (i32, i32, i32) {
    %c0_i32 = arith.constant 0 : i32
    %c0_i32_0 = arith.constant 0 : i32
    %c0_i32_1 = arith.constant 0 : i32
    %c0_i32_2 = arith.constant 0 : i32
    return %c0_i32, %c0_i32_0, %c0_i32_1 : i32, i32, i32
  }
  func.func @transform_8(%arg0: i32) -> (i32, i32) {
    %c0_i32 = arith.constant 0 : i32
    %c0_i32_0 = arith.constant 0 : i32
    %c0_i32_1 = arith.constant 0 : i32
    return %c0_i32, %c0_i32_0 : i32, i32
  }
  func.func @transform_9(%arg0: i32) -> (i32, i32) {
    %c0_i32 = arith.constant 0 : i32
    %c0_i32_0 = arith.constant 0 : i32
    return %arg0, %c0_i32 : i32, i32
  }
}

</mosaic_0001>

<bundles_post_ra>
// kernel: tpu_custom_call.1
= control target key start
LH: loop header
LB: loop body
LE: loop exit
PB: predicated region body
PF: predicated region fallthrough
CT: control target
= control target key end

     0   :  { %14 = vsyncpa [#allocation3], 0  ;;  %s5875_s30 = smov 0   ;;  %s7275_s0 = inlined_call_operand.vmem [shape: f32[64,256], index: 0, kind: input, shape index: {}]   ;;  %s7276_s1 = inlined_call_operand.vmem [shape: f32[256,1], index: 1, kind: input, shape index: {}]   ;;  %s7277_s2 = inlined_call_operand.vmem [shape: f32[256,1], index: 2, kind: input, shape index: {}]   ;;  %s7278_s3 = inlined_call_operand.vmem [shape: f32[512,256], index: 3, kind: input, shape index: {}]   ;;  %s7279_s4 = inlined_call_operand.vmem [shape: f32[512,1], index: 4, kind: input, shape index: {}]   ;;  %s7280_s5 = inlined_call_operand.hbm [shape: f32[512,512], index: 5, kind: input, shape index: {}]   ;;  %s7281_s6 = inlined_call_operand.vmem [shape: f32[512,1], index: 6, kind: input, shape index: {}]   ;;  %s7282_s7 = inlined_call_operand.vmem [shape: f32[16,8,256], index: 7, kind: input, shape index: {}]   ;;  %s7283_s8 = inlined_call_operand.vmem [shape: f32[1,8], index: 8, kind: input, shape index: {}]   ;;  %s7284_s9 = inlined_call_operand.vmem [shape: f32[64,8], index: 9, kind: output, shape index: {}]  }
   0x1 LB: > { %s5293_s10 = sadd.s32 4294967295, %s5819_s30   ;;  %p5295_p0 = scmp.ge.s32.totalorder %s5819_s30, 1  ;;  %s5819_s30 = sphi %s5875_s30, %s20_s30  }
   0x2   : > { %p245_p1 = scmp.lt.s32.totalorder %s5819_s30, 3  ;;  %s5821_s11 = smov [#allocation2]  }
   0x3   : > { %s269_s12 = sshll.u32 %s5821_s11, 4  ;;  %p5889_p3 = scmp.eq.s32.totalorder %s5293_s10, 0  ;;  %s270_s12 = int_to_ptr.vmem [resolvable:$true] %s269_s12 }
   0x4   : > { %p5883_p2 = pnand %p5295_p0, %p245_p1  ;;  %s5781_s18 = scalar_lea.hbm %s7280_s5, 32768 }
   0x5   : > { %s7289_s14 = scalar_select %p5889_p3, 1, 0 }
   0x6   : > { %s7288_s13 = scalar_select %p5883_p2, 1, 0 }
   0x7   : > { %p5761_p4 = pneg %p5883_p2  ;;  %p5782_p6 = scmp.ne.s32.totalorder %s7280_s5, %s5781_s18 }
   0x8   : > { %p5788_p10 = scmp.lt.u32.totalorder %s5781_s18, %s7280_s5 }
   0x9   : > { %p5897_p5 = pnand %p5889_p3, %p5761_p4 }
   0xb   : > { %p5783_p7 = pneg %p5897_p5 }
   0xd   : > { %p5784_p8 = pnand %p5783_p7, %p5782_p6 }
   0xf   : > { %p5785_p9 = pneg %p5784_p8 }
  0x11   : > { %p5790_p11 = pnand %p5788_p10, %p5785_p9 }
  0x13   : > { %5793 = shalt.err (!%p5790_p11)
}
  0x14   : > { %s5794_s23 = scalar_lea.vmem %s270_s12, 32768  ;;  %p5802_p1 = scmp.lt.s32.totalorder %s270_s12, %s270_s12 }
  0x15   : > { %p5795_p12 = scmp.ne.s32.totalorder %s270_s12, %s5794_s23  ;;  %p5803_p4 = scmp.lt.s32.totalorder %s5794_s23, %s5794_s23 }
  0x17   : > { %p5797_p13 = pnand %p5795_p12, %p5783_p7  ;;  %p5804_p3 = por %p5803_p4, %p5802_p1 }
  0x19   : > { %p5798_p0 = pneg %p5797_p13 }
  0x1b   : > { %p5805_p2 = pnand %p5804_p3, %p5798_p0 }
  0x1d   : > { %5808 = shalt.err (!%p5805_p2)
}
  0x1e   : > { %s5822_s24 = smov 512   ;;  %s5823_s25 = smov 32  }
  0x1f   : > { %5764 = dma.hbm_to_vmem [thread:$0]  (!%p5897_p5), %s7280_s5, 32768, %s270_s12, [#allocation3], %s5822_s24, %s5822_s24, %s5823_s25  }
  0x20   : > { %p7291_p6 = scmp.ne.s32.totalorder %s7288_s13, 0 }
  0x21   : > { %p7292_p8 = scmp.ne.s32.totalorder (!%p7291_p6), %s7289_s14, 0 }
  0x22   : > { %304 = sbr.rel (%p7291_p6) target bundleno = 1597 (0x63d), region = 56 }
  0x29   : > { %5814 = dma.done.wait (%p7292_p8), [#allocation3], 32768  }
  0x2a   : > { %5816 = vsyncadd (%p7292_p8), [#allocation3], 4294934528  ;;  %v5824_v0 = vmov 0   ;;  %v618_v1 = vld [vmem:[%s7277_s2] sm:$0xff]  ;;  %v619_v3 = vld [vmem:[%s7277_s2 + $0x8] sm:$0xff]  ;;  %s5300_s11 = sshll.u32 %s5293_s10, 2 }
  0x2b   : > { %5780 = vset.pattern.permute.xlu1 %v5824_v0  ;;  %5779 = vset.pattern.permute.xlu0 %v5824_v0  ;;  %v362_v2 = vld [vmem:[%s7276_s1] sm:$0xff]  ;;  %v363_v4 = vld [vmem:[%s7276_s1 + $0x8] sm:$0xff]  ;;  %v365_v5 = vld [vmem:[%s7276_s1 + $0x18] sm:$0xff]  ;;  %p342_p2 = scmp.lt.s32.totalorder %s5300_s11, 7  ;;  %vm5085_vm0 = vcmask 64512  }
  0x2c   : > { %652 = vperm.xlu1 %5780, %v618_v1   ;;  %396 = vperm.xlu0 %5779, %v362_v2   ;;  %v364_v6 = vld [vmem:[%s7276_s1 + $0x10] sm:$0xff]  ;;  %v621_v7 = vld [vmem:[%s7277_s2 + $0x18] sm:$0xff]  ;;  %v367_v9 = vld [vmem:[%s7276_s1 + $0x28] sm:$0xff] }
  0x2d   : > { %v620_v8 = vld [vmem:[%s7277_s2 + $0x10] sm:$0xff]  ;;  %v366_v10 = vld [vmem:[%s7276_s1 + $0x20] sm:$0xff]  ;;  %v623_v11 = vld [vmem:[%s7277_s2 + $0x28] sm:$0xff]  ;;  %s7294_s11 = smov (!%p342_p2, %s5300_s11), 7 }
  0x2e   : > { %v622_v12 = vld [vmem:[%s7277_s2 + $0x20] sm:$0xff]  ;;  %v369_v13 = vld [vmem:[%s7276_s1 + $0x38] sm:$0xff]  ;;  %v368_v14 = vld [vmem:[%s7276_s1 + $0x30] sm:$0xff]  ;;  %s5308_s19 = sshll.u32 %s7294_s11, 4  ;;  %s5304_s16 = sshll.u32 %s7294_s11, 3 }
  0x2f   : > { %v625_v15 = vld [vmem:[%s7277_s2 + $0x38] sm:$0xff]  ;;  %v624_v16 = vld [vmem:[%s7277_s2 + $0x30] sm:$0xff]  ;;  %v371_v17 = vld [vmem:[%s7276_s1 + $0x48] sm:$0xff]  ;;  %s6123_s26 = scalar_lea.vmem %s7275_s0, %s5308_s19  ;;  %s352_s19 = scalar_lea.vmem %s7284_s9, %s5304_s16 }
  0x30   : > { %657 = vperm.xlu1 %5780, %v619_v3   ;;  %401 = vperm.xlu0 %5779, %v363_v4   ;;  %v370_v18 = vld [vmem:[%s7276_s1 + $0x40] sm:$0xff]  ;;  %v627_v19 = vld [vmem:[%s7277_s2 + $0x48] sm:$0xff]  ;;  %v373_v21 = vld [vmem:[%s7276_s1 + $0x58] sm:$0xff] }
  0x31   : > { %v626_v20 = vld [vmem:[%s7277_s2 + $0x40] sm:$0xff]  ;;  %v372_v22 = vld [vmem:[%s7276_s1 + $0x50] sm:$0xff]  ;;  %v629_v23 = vld [vmem:[%s7277_s2 + $0x58] sm:$0xff] }
  0x32   : > { %v628_v24 = vld [vmem:[%s7277_s2 + $0x50] sm:$0xff]  ;;  %v375_v25 = vld [vmem:[%s7276_s1 + $0x68] sm:$0xff]  ;;  %v374_v26 = vld [vmem:[%s7276_s1 + $0x60] sm:$0xff] }
  0x33   : > { %v631_v27 = vld [vmem:[%s7277_s2 + $0x68] sm:$0xff]  ;;  %v630_v28 = vld [vmem:[%s7277_s2 + $0x60] sm:$0xff]  ;;  %v377_v29 = vld [vmem:[%s7276_s1 + $0x78] sm:$0xff] }
  0x34   : > { %411 = vperm.xlu1 %5780, %v365_v5   ;;  %406 = vperm.xlu0 %5779, %v364_v6   ;;  %v376_v30 = vld [vmem:[%s7276_s1 + $0x70] sm:$0xff]  ;;  %v633_v31 = vld [vmem:[%s7277_s2 + $0x78] sm:$0xff]  ;;  %v379_v33 = vld [vmem:[%s7276_s1 + $0x88] sm:$0xff] }
  0x35   : > { %v632_v32 = vld [vmem:[%s7277_s2 + $0x70] sm:$0xff]  ;;  %v378_v34 = vld [vmem:[%s7276_s1 + $0x80] sm:$0xff]  ;;  %v635_v35 = vld [vmem:[%s7277_s2 + $0x88] sm:$0xff] }
  0x36   : > { %v634_v36 = vld [vmem:[%s7277_s2 + $0x80] sm:$0xff]  ;;  %v381_v37 = vld [vmem:[%s7276_s1 + $0x98] sm:$0xff]  ;;  %v380_v38 = vld [vmem:[%s7276_s1 + $0x90] sm:$0xff] }
  0x37   : > { %v637_v39 = vld [vmem:[%s7277_s2 + $0x98] sm:$0xff]  ;;  %v636_v40 = vld [vmem:[%s7277_s2 + $0x90] sm:$0xff]  ;;  %v383_v41 = vld [vmem:[%s7276_s1 + $0xa8] sm:$0xff] }
  0x38   : > { %667 = vperm.xlu1 %5780, %v621_v7   ;;  %662 = vperm.xlu0 %5779, %v620_v8   ;;  %v382_v42 = vld [vmem:[%s7276_s1 + $0xa0] sm:$0xff]  ;;  %v639_v43 = vld [vmem:[%s7277_s2 + $0xa8] sm:$0xff]  ;;  %v385_v45 = vld [vmem:[%s7276_s1 + $0xb8] sm:$0xff] }
  0x39   : > { %v638_v44 = vld [vmem:[%s7277_s2 + $0xa0] sm:$0xff]  ;;  %v384_v46 = vld [vmem:[%s7276_s1 + $0xb0] sm:$0xff]  ;;  %v641_v47 = vld [vmem:[%s7277_s2 + $0xb8] sm:$0xff] }
  0x3a   : > { %v640_v48 = vld [vmem:[%s7277_s2 + $0xb0] sm:$0xff]  ;;  %v387_v49 = vld [vmem:[%s7276_s1 + $0xc8] sm:$0xff]  ;;  %v386_v50 = vld [vmem:[%s7276_s1 + $0xc0] sm:$0xff] }
  0x3b   : > { %v643_v51 = vld [vmem:[%s7277_s2 + $0xc8] sm:$0xff]  ;;  %v642_v52 = vld [vmem:[%s7277_s2 + $0xc0] sm:$0xff]  ;;  %v389_v53 = vld [vmem:[%s7276_s1 + $0xd8] sm:$0xff] }
  0x3c   : > { %421 = vperm.xlu1 %5780, %v367_v9   ;;  %416 = vperm.xlu0 %5779, %v366_v10   ;;  %v388_v54 = vld [vmem:[%s7276_s1 + $0xd0] sm:$0xff]  ;;  %v645_v55 = vld [vmem:[%s7277_s2 + $0xd8] sm:$0xff]  ;;  %v391_v57 = vld [vmem:[%s7276_s1 + $0xe8] sm:$0xff] }
  0x3d   : > { %v644_v56 = vld [vmem:[%s7277_s2 + $0xd0] sm:$0xff]  ;;  %v390_v58 = vld [vmem:[%s7276_s1 + $0xe0] sm:$0xff]  ;;  %v647_v59 = vld [vmem:[%s7277_s2 + $0xe8] sm:$0xff] }
  0x3e   : > { %v646_v60 = vld [vmem:[%s7277_s2 + $0xe0] sm:$0xff]  ;;  %v393_v61 = vld [vmem:[%s7276_s1 + $0xf8] sm:$0xff]  ;;  %v392_v62 = vld [vmem:[%s7276_s1 + $0xf0] sm:$0xff] }
  0x3f   : > { %v649_v63 = vld [vmem:[%s7277_s2 + $0xf8] sm:$0xff]  ;;  %v648_v0 = vld [vmem:[%s7277_s2 + $0xf0] sm:$0xff]  ;;  %v1067_v1 = vld [vmem:[%s7279_s4 + $0x8] sm:$0xff] }
  0x40   : > { %677 = vperm.xlu1 %5780, %v623_v11   ;;  %672 = vperm.xlu0 %5779, %v622_v12   ;;  %v1066_v2 = vld [vmem:[%s7279_s4] sm:$0xff]  ;;  %v6135_v4 = vld [vmem:[%s6123_s26 + $0x8] sm:$0xff]  ;;  %v6138_v7 = vld [vmem:[%s6123_s26 + $0x10] sm:$0xff] }
  0x41   : > { %v6132_v3 = vld [vmem:[%s6123_s26] sm:$0xff]  ;;  %v6143_v10 = vld [vmem:[%s6123_s26 + $0x18] sm:$0xff]  ;;  %v1068_v12 = vld [vmem:[%s7279_s4 + $0x10] sm:$0xff] }
  0x42   : > { %v1069_v11 = vld [vmem:[%s7279_s4 + $0x18] sm:$0xff] }
  0x44   : > { %431 = vperm.xlu1 %5780, %v369_v13   ;;  %426 = vperm.xlu0 %5779, %v368_v14  }
  0x48   : > { %687 = vperm.xlu1 %5780, %v625_v15   ;;  %682 = vperm.xlu0 %5779, %v624_v16  }
  0x4c   : > { %441 = vperm.xlu1 %5780, %v371_v17   ;;  %436 = vperm.xlu0 %5779, %v370_v18   ;;  %v1071_v17 = vld [vmem:[%s7279_s4 + $0x28] sm:$0xff] }
  0x50   : > { %697 = vperm.xlu1 %5780, %v627_v19   ;;  %692 = vperm.xlu0 %5779, %v626_v20   ;;  %v939_v20 = vld [vmem:[%s7278_s3 + $0x8] sm:$0xff] }
  0x51   : > { %1514 = vmatprep.mubr.f32.mxu0 %v939_v20 }
  0x54   : > { %451 = vperm.xlu1 %5780, %v373_v21   ;;  %446 = vperm.xlu0 %5779, %v372_v22   ;;  %v6160_v21 = vld [vmem:[%s6123_s26 + $0x30] sm:$0xff]  ;;  %v1070_v22 = vld [vmem:[%s7279_s4 + $0x20] sm:$0xff] }
  0x58   : > { %707 = vperm.xlu1 %5780, %v629_v23   ;;  %702 = vperm.xlu0 %5779, %v628_v24  }
  0x5c   : > { %461 = vperm.xlu1 %5780, %v375_v25   ;;  %456 = vperm.xlu0 %5779, %v374_v26   ;;  %v6166_v26 = vld [vmem:[%s6123_s26 + $0x38] sm:$0xff] }
  0x60   : > { %717 = vperm.xlu1 %5780, %v631_v27   ;;  %712 = vperm.xlu0 %5779, %v630_v28   ;;  %v6169_v28 = vld [vmem:[%s6123_s26 + $0x20] sm:$0xff] }
  0x64   : > { %471 = vperm.xlu1 %5780, %v377_v29   ;;  %466 = vperm.xlu0 %5779, %v376_v30   ;;  %v6172_v29 = vld [vmem:[%s6123_s26 + $0x28] sm:$0xff]  ;;  %v1073_v30 = vld [vmem:[%s7279_s4 + $0x38] sm:$0xff] }
  0x68   : > { %727 = vperm.xlu1 %5780, %v633_v31   ;;  %722 = vperm.xlu0 %5779, %v632_v32  }
  0x6c   : > { %481 = vperm.xlu1 %5780, %v379_v33   ;;  %476 = vperm.xlu0 %5779, %v378_v34  }
  0x70   : > { %737 = vperm.xlu1 %5780, %v635_v35   ;;  %732 = vperm.xlu0 %5779, %v634_v36  }
  0x74   : > { %491 = vperm.xlu1 %5780, %v381_v37   ;;  %486 = vperm.xlu0 %5779, %v380_v38  }
  0x78   : > { %747 = vperm.xlu1 %5780, %v637_v39   ;;  %742 = vperm.xlu0 %5779, %v636_v40   ;;  %v1072_v39 = vld [vmem:[%s7279_s4 + $0x30] sm:$0xff] }
  0x7c   : > { %501 = vperm.xlu1 %5780, %v383_v41   ;;  %496 = vperm.xlu0 %5779, %v382_v42  }
  0x80   : > { %757 = vperm.xlu1 %5780, %v639_v43   ;;  %752 = vperm.xlu0 %5779, %v638_v44  }
  0x84   : > { %511 = vperm.xlu1 %5780, %v385_v45   ;;  %506 = vperm.xlu0 %5779, %v384_v46  }
  0x88   : > { %767 = vperm.xlu1 %5780, %v641_v47   ;;  %762 = vperm.xlu0 %5779, %v640_v48   ;;  %v1075_v48 = vld [vmem:[%s7279_s4 + $0x48] sm:$0xff] }
  0x8c   : > { %521 = vperm.xlu1 %5780, %v387_v49   ;;  %516 = vperm.xlu0 %5779, %v386_v50  }
  0x90   : > { %777 = vperm.xlu1 %5780, %v643_v51   ;;  %772 = vperm.xlu0 %5779, %v642_v52  }
  0x94   : > { %531 = vperm.xlu1 %5780, %v389_v53   ;;  %526 = vperm.xlu0 %5779, %v388_v54   ;;  %v1074_v53 = vld [vmem:[%s7279_s4 + $0x40] sm:$0xff] }
  0x98   : > { %787 = vperm.xlu1 %5780, %v645_v55   ;;  %782 = vperm.xlu0 %5779, %v644_v56  }
  0x9c   : > { %541 = vperm.xlu1 %5780, %v391_v57   ;;  %536 = vperm.xlu0 %5779, %v390_v58  }
  0xa0   : > { %797 = vperm.xlu1 %5780, %v647_v59   ;;  %792 = vperm.xlu0 %5779, %v646_v60  }
  0xa4   : > { %551 = vperm.xlu1 %5780, %v393_v61   ;;  %546 = vperm.xlu0 %5779, %v392_v62   ;;  %v1077_v62 = vld [vmem:[%s7279_s4 + $0x58] sm:$0xff] }
  0xa8   : > { %807 = vperm.xlu1 %5780, %v649_v63   ;;  %802 = vperm.xlu0 %5779, %v648_v0   ;;  %v1076_v63 = vld [vmem:[%s7279_s4 + $0x50] sm:$0xff] }
  0xab   : > { %v653_v5 = vpop.permute.xlu1 %652  ;;  %v397_v6 = vpop.permute.xlu0 %396 }
  0xac   : > { %1137 = vperm.xlu1 %5780, %v1067_v1   ;;  %1132 = vperm.xlu0 %5779, %v1066_v2   ;;  %v554_v8 = vmul.f32 %v397_v6, %v6132_v3  ;;  %v555_v9 = vmul.f32 %v397_v6, %v6135_v4 }
  0xae   : > { %v811_v18 = vadd.f32 %v653_v5, %v555_v9  ;;  %v810_v19 = vadd.f32 %v653_v5, %v554_v8 }
  0xaf   : > { %v658_v13 = vpop.permute.xlu1 %657  ;;  %v402_v14 = vpop.permute.xlu0 %401 }
  0xb0   : > { %v556_v15 = vmul.f32 %v402_v14, %v6138_v7  ;;  %v557_v16 = vmul.f32 %v402_v14, %v6143_v10  ;;  %1147 = vperm.xlu1 %5780, %v1069_v11   ;;  %1142 = vperm.xlu0 %5779, %v1068_v12   ;;  %v875_v31 = vmax.f32 %v811_v18, 0.0  ;;  %v874_v33 = vmax.f32 %v810_v19, 0.0  ;;  %v1079_v14 = vld [vmem:[%s7279_s4 + $0x68] sm:$0xff] }
  0xb2   : > { %v813_v23 = vadd.f32 %v658_v13, %v557_v16  ;;  %v812_v24 = vadd.f32 %v658_v13, %v556_v15  ;;  %v1078_v15 = vld [vmem:[%s7279_s4 + $0x60] sm:$0xff] }
  0xb3   : > { %v412_v25 = vpop.permute.xlu1 %411  ;;  %v407_v27 = vpop.permute.xlu0 %406 }
  0xb4   : > { %1157 = vperm.xlu1 %5780, %v1071_v17   ;;  %1152 = vperm.xlu0 %5779, %v1070_v22   ;;  %v877_v32 = vmax.f32 %v813_v23, 0.0  ;;  %v876_v34 = vmax.f32 %v812_v24, 0.0  ;;  %v560_v35 = vmul.f32 %v412_v25, %v6160_v21  ;;  %v561_v36 = vmul.f32 %v412_v25, %v6166_v26  ;;  %v1081_v25 = vld [vmem:[%s7279_s4 + $0x78] sm:$0xff] }
  0xb5   : > { %v558_v37 = vmul.f32 %v407_v27, %v6169_v28  ;;  %v559_v38 = vmul.f32 %v407_v27, %v6172_v29  ;;  %v1080_v27 = vld [vmem:[%s7279_s4 + $0x70] sm:$0xff] }
  0xb6   : > { %v5309_v42 = vpack.c.bf16 %v877_v32, %v875_v31  ;;  %v5311_v43 = vpack.c.bf16 %v876_v34, %v874_v33 }
  0xb7   : > { %v668_v40 = vpop.permute.xlu1 %667  ;;  %v663_v41 = vpop.permute.xlu0 %662 }
  0xb8   : > { %v816_v44 = vadd.f32 %v668_v40, %v560_v35  ;;  %v817_v45 = vadd.f32 %v668_v40, %v561_v36  ;;  %v814_v46 = vadd.f32 %v663_v41, %v558_v37  ;;  %v815_v47 = vadd.f32 %v663_v41, %v559_v38  ;;  %1167 = vperm.xlu1 %5780, %v1073_v30   ;;  %v1083_v40 = vld [vmem:[%s7279_s4 + $0x88] sm:$0xff]  ;;  %v1082_v41 = vld [vmem:[%s7279_s4 + $0x80] sm:$0xff] }
  0xb9   : > { %1162 = vperm.xlu0 %5779, %v1072_v39   ;;  %5310 = vmatprep.subr.bf16.mxu0 %v5309_v42 }
  0xba   : > { %v880_v49 = vmax.f32 %v816_v44, 0.0  ;;  %v881_v50 = vmax.f32 %v817_v45, 0.0  ;;  %v878_v51 = vmax.f32 %v814_v46, 0.0  ;;  %v879_v52 = vmax.f32 %v815_v47, 0.0  ;;  %5312 = vmatpush1.bf16.msra.mxu0 %v5311_v43 }
  0xbb   : > { %v422_v54 = vpop.permute.xlu1 %421  ;;  %v417_v55 = vpop.permute.xlu0 %416 }
  0xbc   : > { %1177 = vperm.xlu1 %5780, %v1075_v48   ;;  %v5313_v56 = vpack.c.bf16 %v881_v50, %v879_v52  ;;  %v5315_v57 = vpack.c.bf16 %v880_v49, %v878_v51  ;;  %v564_v58 = vmul.f32 %v422_v54, %v6138_v7  ;;  %v565_v59 = vmul.f32 %v422_v54, %v6143_v10  ;;  %v1085_v50 = vld [vmem:[%s7279_s4 + $0x98] sm:$0xff]  ;;  %v1084_v51 = vld [vmem:[%s7279_s4 + $0x90] sm:$0xff] }
  0xbd   : > { %1172 = vperm.xlu0 %5779, %v1074_v53   ;;  %v562_v60 = vmul.f32 %v417_v55, %v6132_v3  ;;  %v563_v61 = vmul.f32 %v417_v55, %v6135_v4 }
  0xbe   : > { %5314 = vmatprep.subr.bf16.mxu0 %v5313_v56 }
  0xbf   : > { %v678_v0 = vpop.permute.xlu1 %677  ;;  %v673_v1 = vpop.permute.xlu0 %672  ;;  %5316 = vmatpush1.bf16.msra.mxu0 %v5315_v57 }
  0xc0   : > { %v820_v2 = vadd.f32 %v678_v0, %v564_v58  ;;  %v821_v5 = vadd.f32 %v678_v0, %v565_v59  ;;  %v818_v6 = vadd.f32 %v673_v1, %v562_v60  ;;  %v819_v8 = vadd.f32 %v673_v1, %v563_v61  ;;  %1187 = vperm.xlu1 %5780, %v1077_v62   ;;  %v1087_v62 = vld [vmem:[%s7279_s4 + $0xa8] sm:$0xff] }
  0xc1   : > { %1182 = vperm.xlu0 %5779, %v1076_v63   ;;  %v1086_v63 = vld [vmem:[%s7279_s4 + $0xa0] sm:$0xff] }
  0xc2   : > { %v884_v9 = vmax.f32 %v820_v2, 0.0  ;;  %v885_v11 = vmax.f32 %v821_v5, 0.0  ;;  %v882_v12 = vmax.f32 %v818_v6, 0.0  ;;  %v883_v13 = vmax.f32 %v819_v8, 0.0 }
  0xc3   : > { %v432_v16 = vpop.permute.xlu1 %431  ;;  %v427_v17 = vpop.permute.xlu0 %426 }
  0xc4   : > { %1197 = vperm.xlu1 %5780, %v1079_v14   ;;  %v5317_v18 = vpack.c.bf16 %v885_v11, %v883_v13  ;;  %v5319_v19 = vpack.c.bf16 %v884_v9, %v882_v12  ;;  %v568_v20 = vmul.f32 %v432_v16, %v6160_v21  ;;  %v569_v22 = vmul.f32 %v432_v16, %v6166_v26  ;;  %v1089_v12 = vld [vmem:[%s7279_s4 + $0xb8] sm:$0xff]  ;;  %v1088_v13 = vld [vmem:[%s7279_s4 + $0xb0] sm:$0xff] }
  0xc5   : > { %1192 = vperm.xlu0 %5779, %v1078_v15   ;;  %v566_v23 = vmul.f32 %v427_v17, %v6169_v28  ;;  %v567_v24 = vmul.f32 %v427_v17, %v6172_v29 }
  0xc6   : > { %5318 = vmatprep.subr.bf16.mxu0 %v5317_v18 }
  0xc7   : > { %v688_v30 = vpop.permute.xlu1 %687  ;;  %v683_v31 = vpop.permute.xlu0 %682  ;;  %5320 = vmatpush1.bf16.msra.mxu0 %v5319_v19 }
  0xc8   : > { %v824_v32 = vadd.f32 %v688_v30, %v568_v20  ;;  %v825_v33 = vadd.f32 %v688_v30, %v569_v22  ;;  %v822_v34 = vadd.f32 %v683_v31, %v566_v23  ;;  %v823_v35 = vadd.f32 %v683_v31, %v567_v24  ;;  %1207 = vperm.xlu1 %5780, %v1081_v25   ;;  %v1091_v25 = vld [vmem:[%s7279_s4 + $0xc8] sm:$0xff] }
  0xc9   : > { %1202 = vperm.xlu0 %5779, %v1080_v27   ;;  %v1090_v27 = vld [vmem:[%s7279_s4 + $0xc0] sm:$0xff] }
  0xca   : > { %v888_v36 = vmax.f32 %v824_v32, 0.0  ;;  %v889_v37 = vmax.f32 %v825_v33, 0.0  ;;  %v886_v38 = vmax.f32 %v822_v34, 0.0  ;;  %v887_v39 = vmax.f32 %v823_v35, 0.0 }
  0xcb   : > { %v442_v42 = vpop.permute.xlu1 %441  ;;  %v437_v43 = vpop.permute.xlu0 %436 }
  0xcc   : > { %1217 = vperm.xlu1 %5780, %v1083_v40   ;;  %v5321_v44 = vpack.c.bf16 %v889_v37, %v887_v39  ;;  %v5323_v45 = vpack.c.bf16 %v888_v36, %v886_v38  ;;  %v572_v46 = vmul.f32 %v442_v42, %v6138_v7  ;;  %v573_v47 = vmul.f32 %v442_v42, %v6143_v10  ;;  %v1093_v38 = vld [vmem:[%s7279_s4 + $0xd8] sm:$0xff]  ;;  %v1092_v39 = vld [vmem:[%s7279_s4 + $0xd0] sm:$0xff] }
  0xcd   : > { %1212 = vperm.xlu0 %5779, %v1082_v41   ;;  %v570_v48 = vmul.f32 %v437_v43, %v6132_v3  ;;  %v571_v49 = vmul.f32 %v437_v43, %v6135_v4 }
  0xce   : > { %5322 = vmatprep.subr.bf16.mxu0 %v5321_v44 }
  0xcf   : > { %v698_v52 = vpop.permute.xlu1 %697  ;;  %v693_v53 = vpop.permute.xlu0 %692  ;;  %5324 = vmatpush1.bf16.msra.mxu0 %v5323_v45 }
  0xd0   : > { %v828_v54 = vadd.f32 %v698_v52, %v572_v46  ;;  %v829_v55 = vadd.f32 %v698_v52, %v573_v47  ;;  %v826_v56 = vadd.f32 %v693_v53, %v570_v48  ;;  %v827_v57 = vadd.f32 %v693_v53, %v571_v49  ;;  %1227 = vperm.xlu1 %5780, %v1085_v50   ;;  %v1095_v50 = vld [vmem:[%s7279_s4 + $0xe8] sm:$0xff] }
  0xd1   : > { %1222 = vperm.xlu0 %5779, %v1084_v51   ;;  %v1094_v51 = vld [vmem:[%s7279_s4 + $0xe0] sm:$0xff] }
  0xd2   : > { %v892_v58 = vmax.f32 %v828_v54, 0.0  ;;  %v893_v59 = vmax.f32 %v829_v55, 0.0  ;;  %v890_v60 = vmax.f32 %v826_v56, 0.0  ;;  %v891_v61 = vmax.f32 %v827_v57, 0.0 }
  0xd3   : > { %v452_v0 = vpop.permute.xlu1 %451  ;;  %v447_v1 = vpop.permute.xlu0 %446 }
  0xd4   : > { %1237 = vperm.xlu1 %5780, %v1087_v62   ;;  %v5325_v2 = vpack.c.bf16 %v893_v59, %v891_v61  ;;  %v5327_v5 = vpack.c.bf16 %v892_v58, %v890_v60  ;;  %v576_v6 = vmul.f32 %v452_v0, %v6160_v21  ;;  %v577_v8 = vmul.f32 %v452_v0, %v6166_v26  ;;  %v1097_v60 = vld [vmem:[%s7279_s4 + $0xf8] sm:$0xff]  ;;  %v1096_v61 = vld [vmem:[%s7279_s4 + $0xf0] sm:$0xff] }
  0xd5   : > { %1232 = vperm.xlu0 %5779, %v1086_v63   ;;  %v574_v9 = vmul.f32 %v447_v1, %v6169_v28  ;;  %v575_v11 = vmul.f32 %v447_v1, %v6172_v29 }
  0xd6   : > { %5326 = vmatprep.subr.bf16.mxu0 %v5325_v2 }
  0xd7   : > { %v708_v14 = vpop.permute.xlu1 %707  ;;  %v703_v15 = vpop.permute.xlu0 %702  ;;  %5328 = vmatpush1.bf16.msra.mxu0 %v5327_v5 }
  0xd8   : > { %v832_v16 = vadd.f32 %v708_v14, %v576_v6  ;;  %v833_v17 = vadd.f32 %v708_v14, %v577_v8  ;;  %v830_v18 = vadd.f32 %v703_v15, %v574_v9  ;;  %v831_v19 = vadd.f32 %v703_v15, %v575_v11  ;;  %1247 = vperm.xlu1 %5780, %v1089_v12   ;;  %v1099_v12 = vld [vmem:[%s7279_s4 + $0x108] sm:$0xff] }
  0xd9   : > { %1242 = vperm.xlu0 %5779, %v1088_v13   ;;  %v1098_v13 = vld [vmem:[%s7279_s4 + $0x100] sm:$0xff] }
  0xda   : > { %v896_v20 = vmax.f32 %v832_v16, 0.0  ;;  %v897_v22 = vmax.f32 %v833_v17, 0.0  ;;  %v894_v23 = vmax.f32 %v830_v18, 0.0  ;;  %v895_v24 = vmax.f32 %v831_v19, 0.0 }
  0xdb   : > { %v462_v30 = vpop.permute.xlu1 %461  ;;  %v457_v31 = vpop.permute.xlu0 %456 }
  0xdc   : > { %1257 = vperm.xlu1 %5780, %v1091_v25   ;;  %v5329_v32 = vpack.c.bf16 %v897_v22, %v895_v24  ;;  %v5331_v33 = vpack.c.bf16 %v896_v20, %v894_v23  ;;  %v580_v34 = vmul.f32 %v462_v30, %v6138_v7  ;;  %v581_v35 = vmul.f32 %v462_v30, %v6143_v10  ;;  %v1101_v23 = vld [vmem:[%s7279_s4 + $0x118] sm:$0xff]  ;;  %v1100_v24 = vld [vmem:[%s7279_s4 + $0x110] sm:$0xff] }
  0xdd   : > { %1252 = vperm.xlu0 %5779, %v1090_v27   ;;  %v578_v36 = vmul.f32 %v457_v31, %v6132_v3  ;;  %v579_v37 = vmul.f32 %v457_v31, %v6135_v4 }
  0xde   : > { %5330 = vmatprep.subr.bf16.mxu0 %v5329_v32 }
  0xdf   : > { %v718_v40 = vpop.permute.xlu1 %717  ;;  %v713_v41 = vpop.permute.xlu0 %712  ;;  %5332 = vmatpush1.bf16.msra.mxu0 %v5331_v33 }
  0xe0   : > { %v836_v42 = vadd.f32 %v718_v40, %v580_v34  ;;  %v837_v43 = vadd.f32 %v718_v40, %v581_v35  ;;  %v834_v44 = vadd.f32 %v713_v41, %v578_v36  ;;  %v835_v45 = vadd.f32 %v713_v41, %v579_v37  ;;  %1267 = vperm.xlu1 %5780, %v1093_v38   ;;  %v1103_v38 = vld [vmem:[%s7279_s4 + $0x128] sm:$0xff] }
  0xe1   : > { %1262 = vperm.xlu0 %5779, %v1092_v39   ;;  %v1102_v39 = vld [vmem:[%s7279_s4 + $0x120] sm:$0xff] }
  0xe2   : > { %v900_v46 = vmax.f32 %v836_v42, 0.0  ;;  %v901_v47 = vmax.f32 %v837_v43, 0.0  ;;  %v898_v48 = vmax.f32 %v834_v44, 0.0  ;;  %v899_v49 = vmax.f32 %v835_v45, 0.0 }
  0xe3   : > { %v472_v52 = vpop.permute.xlu1 %471  ;;  %v467_v53 = vpop.permute.xlu0 %466 }
  0xe4   : > { %1277 = vperm.xlu1 %5780, %v1095_v50   ;;  %v5333_v54 = vpack.c.bf16 %v901_v47, %v899_v49  ;;  %v5335_v55 = vpack.c.bf16 %v900_v46, %v898_v48  ;;  %v584_v56 = vmul.f32 %v472_v52, %v6160_v21  ;;  %v585_v57 = vmul.f32 %v472_v52, %v6166_v26  ;;  %v1105_v48 = vld [vmem:[%s7279_s4 + $0x138] sm:$0xff]  ;;  %v1104_v49 = vld [vmem:[%s7279_s4 + $0x130] sm:$0xff] }
  0xe5   : > { %1272 = vperm.xlu0 %5779, %v1094_v51   ;;  %v582_v58 = vmul.f32 %v467_v53, %v6169_v28  ;;  %v583_v59 = vmul.f32 %v467_v53, %v6172_v29 }
  0xe6   : > { %5334 = vmatprep.subr.bf16.mxu0 %v5333_v54 }
  0xe7   : > { %v728_v62 = vpop.permute.xlu1 %727  ;;  %v723_v63 = vpop.permute.xlu0 %722  ;;  %5336 = vmatpush1.bf16.msra.mxu0 %v5335_v55 }
  0xe8   : > { %v840_v0 = vadd.f32 %v728_v62, %v584_v56  ;;  %v841_v1 = vadd.f32 %v728_v62, %v585_v57  ;;  %v838_v2 = vadd.f32 %v723_v63, %v582_v58  ;;  %v839_v5 = vadd.f32 %v723_v63, %v583_v59  ;;  %1287 = vperm.xlu1 %5780, %v1097_v60   ;;  %v1107_v60 = vld [vmem:[%s7279_s4 + $0x148] sm:$0xff] }
  0xe9   : > { %1282 = vperm.xlu0 %5779, %v1096_v61   ;;  %v1106_v61 = vld [vmem:[%s7279_s4 + $0x140] sm:$0xff] }
  0xea   : > { %v904_v6 = vmax.f32 %v840_v0, 0.0  ;;  %v905_v8 = vmax.f32 %v841_v1, 0.0  ;;  %v902_v9 = vmax.f32 %v838_v2, 0.0  ;;  %v903_v11 = vmax.f32 %v839_v5, 0.0 }
  0xeb   : > { %v482_v14 = vpop.permute.xlu1 %481  ;;  %v477_v15 = vpop.permute.xlu0 %476 }
  0xec   : > { %1297 = vperm.xlu1 %5780, %v1099_v12   ;;  %v5337_v16 = vpack.c.bf16 %v905_v8, %v903_v11  ;;  %v5339_v17 = vpack.c.bf16 %v904_v6, %v902_v9  ;;  %v588_v18 = vmul.f32 %v482_v14, %v6138_v7  ;;  %v589_v19 = vmul.f32 %v482_v14, %v6143_v10  ;;  %v1109_v9 = vld [vmem:[%s7279_s4 + $0x158] sm:$0xff]  ;;  %v1108_v11 = vld [vmem:[%s7279_s4 + $0x150] sm:$0xff] }
  0xed   : > { %1292 = vperm.xlu0 %5779, %v1098_v13   ;;  %v586_v20 = vmul.f32 %v477_v15, %v6132_v3  ;;  %v587_v22 = vmul.f32 %v477_v15, %v6135_v4 }
  0xee   : > { %5338 = vmatprep.subr.bf16.mxu0 %v5337_v16 }
  0xef   : > { %v738_v25 = vpop.permute.xlu1 %737  ;;  %v733_v27 = vpop.permute.xlu0 %732  ;;  %5340 = vmatpush1.bf16.msra.mxu0 %v5339_v17 }
  0xf0   : > { %v844_v30 = vadd.f32 %v738_v25, %v588_v18  ;;  %v845_v31 = vadd.f32 %v738_v25, %v589_v19  ;;  %v842_v32 = vadd.f32 %v733_v27, %v586_v20  ;;  %v843_v33 = vadd.f32 %v733_v27, %v587_v22  ;;  %1307 = vperm.xlu1 %5780, %v1101_v23   ;;  %v1111_v23 = vld [vmem:[%s7279_s4 + $0x168] sm:$0xff] }
  0xf1   : > { %1302 = vperm.xlu0 %5779, %v1100_v24   ;;  %v1110_v24 = vld [vmem:[%s7279_s4 + $0x160] sm:$0xff] }
  0xf2   : > { %v908_v34 = vmax.f32 %v844_v30, 0.0  ;;  %v909_v35 = vmax.f32 %v845_v31, 0.0  ;;  %v906_v36 = vmax.f32 %v842_v32, 0.0  ;;  %v907_v37 = vmax.f32 %v843_v33, 0.0 }
  0xf3   : > { %v492_v40 = vpop.permute.xlu1 %491  ;;  %v487_v41 = vpop.permute.xlu0 %486 }
  0xf4   : > { %1317 = vperm.xlu1 %5780, %v1103_v38   ;;  %v5341_v42 = vpack.c.bf16 %v909_v35, %v907_v37  ;;  %v5343_v43 = vpack.c.bf16 %v908_v34, %v906_v36  ;;  %v592_v44 = vmul.f32 %v492_v40, %v6160_v21  ;;  %v593_v45 = vmul.f32 %v492_v40, %v6166_v26  ;;  %v1113_v36 = vld [vmem:[%s7279_s4 + $0x178] sm:$0xff]  ;;  %v1112_v37 = vld [vmem:[%s7279_s4 + $0x170] sm:$0xff] }
  0xf5   : > { %1312 = vperm.xlu0 %5779, %v1102_v39   ;;  %v590_v46 = vmul.f32 %v487_v41, %v6169_v28  ;;  %v591_v47 = vmul.f32 %v487_v41, %v6172_v29 }
  0xf6   : > { %5342 = vmatprep.subr.bf16.mxu0 %v5341_v42 }
  0xf7   : > { %v748_v50 = vpop.permute.xlu1 %747  ;;  %v743_v51 = vpop.permute.xlu0 %742  ;;  %5344 = vmatpush1.bf16.msra.mxu0 %v5343_v43 }
  0xf8   : > { %v848_v52 = vadd.f32 %v748_v50, %v592_v44  ;;  %v849_v53 = vadd.f32 %v748_v50, %v593_v45  ;;  %v846_v54 = vadd.f32 %v743_v51, %v590_v46  ;;  %v847_v55 = vadd.f32 %v743_v51, %v591_v47  ;;  %1327 = vperm.xlu1 %5780, %v1105_v48   ;;  %v1115_v48 = vld [vmem:[%s7279_s4 + $0x188] sm:$0xff] }
  0xf9   : > { %1322 = vperm.xlu0 %5779, %v1104_v49   ;;  %v1114_v49 = vld [vmem:[%s7279_s4 + $0x180] sm:$0xff] }
  0xfa   : > { %v912_v56 = vmax.f32 %v848_v52, 0.0  ;;  %v913_v57 = vmax.f32 %v849_v53, 0.0  ;;  %v910_v58 = vmax.f32 %v846_v54, 0.0  ;;  %v911_v59 = vmax.f32 %v847_v55, 0.0 }
  0xfb   : > { %v502_v62 = vpop.permute.xlu1 %501  ;;  %v497_v63 = vpop.permute.xlu0 %496 }
  0xfc   : > { %1337 = vperm.xlu1 %5780, %v1107_v60   ;;  %v5345_v0 = vpack.c.bf16 %v913_v57, %v911_v59  ;;  %v5347_v1 = vpack.c.bf16 %v912_v56, %v910_v58  ;;  %v596_v2 = vmul.f32 %v502_v62, %v6138_v7  ;;  %v597_v5 = vmul.f32 %v502_v62, %v6143_v10  ;;  %v1117_v58 = vld [vmem:[%s7279_s4 + $0x198] sm:$0xff]  ;;  %v1116_v59 = vld [vmem:[%s7279_s4 + $0x190] sm:$0xff] }
  0xfd   : > { %1332 = vperm.xlu0 %5779, %v1106_v61   ;;  %v594_v6 = vmul.f32 %v497_v63, %v6132_v3  ;;  %v595_v8 = vmul.f32 %v497_v63, %v6135_v4 }
  0xfe   : > { %5346 = vmatprep.subr.bf16.mxu0 %v5345_v0 }
  0xff   : > { %v758_v12 = vpop.permute.xlu1 %757  ;;  %v753_v13 = vpop.permute.xlu0 %752  ;;  %5348 = vmatpush1.bf16.msra.mxu0 %v5347_v1 }
 0x100   : > { %v852_v14 = vadd.f32 %v758_v12, %v596_v2  ;;  %v853_v15 = vadd.f32 %v758_v12, %v597_v5  ;;  %v850_v16 = vadd.f32 %v753_v13, %v594_v6  ;;  %v851_v17 = vadd.f32 %v753_v13, %v595_v8  ;;  %1347 = vperm.xlu1 %5780, %v1109_v9   ;;  %v1119_v9 = vld [vmem:[%s7279_s4 + $0x1a8] sm:$0xff] }
 0x101   : > { %1342 = vperm.xlu0 %5779, %v1108_v11   ;;  %v1118_v11 = vld [vmem:[%s7279_s4 + $0x1a0] sm:$0xff] }
 0x102   : > { %v916_v18 = vmax.f32 %v852_v14, 0.0  ;;  %v917_v19 = vmax.f32 %v853_v15, 0.0  ;;  %v914_v20 = vmax.f32 %v850_v16, 0.0  ;;  %v915_v22 = vmax.f32 %v851_v17, 0.0 }
 0x103   : > { %v512_v25 = vpop.permute.xlu1 %511  ;;  %v507_v27 = vpop.permute.xlu0 %506 }
 0x104   : > { %1357 = vperm.xlu1 %5780, %v1111_v23   ;;  %v5349_v30 = vpack.c.bf16 %v917_v19, %v915_v22  ;;  %v5351_v31 = vpack.c.bf16 %v916_v18, %v914_v20  ;;  %v600_v32 = vmul.f32 %v512_v25, %v6160_v21  ;;  %v601_v33 = vmul.f32 %v512_v25, %v6166_v26  ;;  %v1121_v20 = vld [vmem:[%s7279_s4 + $0x1b8] sm:$0xff]  ;;  %v1120_v22 = vld [vmem:[%s7279_s4 + $0x1b0] sm:$0xff] }
 0x105   : > { %1352 = vperm.xlu0 %5779, %v1110_v24   ;;  %v598_v34 = vmul.f32 %v507_v27, %v6169_v28  ;;  %v599_v35 = vmul.f32 %v507_v27, %v6172_v29 }
 0x106   : > { %5350 = vmatprep.subr.bf16.mxu0 %v5349_v30 }
 0x107   : > { %v768_v38 = vpop.permute.xlu1 %767  ;;  %v763_v39 = vpop.permute.xlu0 %762  ;;  %5352 = vmatpush1.bf16.msra.mxu0 %v5351_v31 }
 0x108   : > { %v856_v40 = vadd.f32 %v768_v38, %v600_v32  ;;  %v857_v41 = vadd.f32 %v768_v38, %v601_v33  ;;  %v854_v42 = vadd.f32 %v763_v39, %v598_v34  ;;  %v855_v43 = vadd.f32 %v763_v39, %v599_v35  ;;  %1367 = vperm.xlu1 %5780, %v1113_v36   ;;  %v1123_v36 = vld [vmem:[%s7279_s4 + $0x1c8] sm:$0xff] }
 0x109   : > { %1362 = vperm.xlu0 %5779, %v1112_v37   ;;  %v1122_v37 = vld [vmem:[%s7279_s4 + $0x1c0] sm:$0xff] }
 0x10a   : > { %v920_v44 = vmax.f32 %v856_v40, 0.0  ;;  %v921_v45 = vmax.f32 %v857_v41, 0.0  ;;  %v918_v46 = vmax.f32 %v854_v42, 0.0  ;;  %v919_v47 = vmax.f32 %v855_v43, 0.0 }
 0x10b   : > { %v522_v50 = vpop.permute.xlu1 %521  ;;  %v517_v51 = vpop.permute.xlu0 %516 }
 0x10c   : > { %1377 = vperm.xlu1 %5780, %v1115_v48   ;;  %v5353_v52 = vpack.c.bf16 %v921_v45, %v919_v47  ;;  %v5355_v53 = vpack.c.bf16 %v920_v44, %v918_v46  ;;  %v604_v54 = vmul.f32 %v522_v50, %v6138_v7  ;;  %v605_v55 = vmul.f32 %v522_v50, %v6143_v10  ;;  %v1125_v46 = vld [vmem:[%s7279_s4 + $0x1d8] sm:$0xff]  ;;  %v1124_v47 = vld [vmem:[%s7279_s4 + $0x1d0] sm:$0xff] }
 0x10d   : > { %1372 = vperm.xlu0 %5779, %v1114_v49   ;;  %v602_v56 = vmul.f32 %v517_v51, %v6132_v3  ;;  %v603_v57 = vmul.f32 %v517_v51, %v6135_v4 }
 0x10e   : > { %5354 = vmatprep.subr.bf16.mxu0 %v5353_v52 }
 0x10f   : > { %v778_v60 = vpop.permute.xlu1 %777  ;;  %v773_v61 = vpop.permute.xlu0 %772  ;;  %5356 = vmatpush1.bf16.msra.mxu0 %v5355_v53 }
 0x110   : > { %v860_v62 = vadd.f32 %v778_v60, %v604_v54  ;;  %v861_v63 = vadd.f32 %v778_v60, %v605_v55  ;;  %v858_v0 = vadd.f32 %v773_v61, %v602_v56  ;;  %v859_v1 = vadd.f32 %v773_v61, %v603_v57  ;;  %1387 = vperm.xlu1 %5780, %v1117_v58   ;;  %v1127_v54 = vld [vmem:[%s7279_s4 + $0x1e8] sm:$0xff]  ;;  %v1126_v55 = vld [vmem:[%s7279_s4 + $0x1e0] sm:$0xff] }
 0x111   : > { %1382 = vperm.xlu0 %5779, %v1116_v59  }
 0x112   : > { %v924_v2 = vmax.f32 %v860_v62, 0.0  ;;  %v925_v5 = vmax.f32 %v861_v63, 0.0  ;;  %v922_v6 = vmax.f32 %v858_v0, 0.0  ;;  %v923_v8 = vmax.f32 %v859_v1, 0.0  ;;  %v1129_v0 = vld [vmem:[%s7279_s4 + $0x1f8] sm:$0xff]  ;;  %v1128_v1 = vld [vmem:[%s7279_s4 + $0x1f0] sm:$0xff] }
 0x113   : > { %v532_v12 = vpop.permute.xlu1 %531  ;;  %v527_v13 = vpop.permute.xlu0 %526 }
 0x114   : > { %1397 = vperm.xlu1 %5780, %v1119_v9   ;;  %v5357_v14 = vpack.c.bf16 %v925_v5, %v923_v8  ;;  %v5359_v15 = vpack.c.bf16 %v924_v2, %v922_v6  ;;  %v608_v16 = vmul.f32 %v532_v12, %v6160_v21  ;;  %v609_v17 = vmul.f32 %v532_v12, %v6166_v26  ;;  %v2284_v12 = vld [vmem:[%s7281_s6 + $0x8] sm:$0xff] }
 0x115   : > { %1392 = vperm.xlu0 %5779, %v1118_v11   ;;  %v606_v18 = vmul.f32 %v527_v13, %v6169_v28  ;;  %v607_v19 = vmul.f32 %v527_v13, %v6172_v29  ;;  %v2283_v13 = vld [vmem:[%s7281_s6] sm:$0xff] }
 0x116   : > { %5358 = vmatprep.subr.bf16.mxu0 %v5357_v14 }
 0x117   : > { %v788_v23 = vpop.permute.xlu1 %787  ;;  %v783_v24 = vpop.permute.xlu0 %782  ;;  %5360 = vmatpush1.bf16.msra.mxu0 %v5359_v15 }
 0x118   : > { %v864_v25 = vadd.f32 %v788_v23, %v608_v16  ;;  %v865_v27 = vadd.f32 %v788_v23, %v609_v17  ;;  %v862_v30 = vadd.f32 %v783_v24, %v606_v18  ;;  %v863_v31 = vadd.f32 %v783_v24, %v607_v19  ;;  %1407 = vperm.xlu1 %5780, %v1121_v20   ;;  %v2286_v16 = vld [vmem:[%s7281_s6 + $0x18] sm:$0xff]  ;;  %v2285_v17 = vld [vmem:[%s7281_s6 + $0x10] sm:$0xff]  ;;  %v938_v18 = vld [vmem:[%s7278_s3] sm:$0xff] }
 0x119   : > { %1402 = vperm.xlu0 %5779, %v1120_v22   ;;  %v941_v19 = vld [vmem:[%s7278_s3 + $0x18] sm:$0xff]  ;;  %v2288_v20 = vld [vmem:[%s7281_s6 + $0x28] sm:$0xff]  ;;  %v2287_v22 = vld [vmem:[%s7281_s6 + $0x20] sm:$0xff] }
 0x11a   : > { %v928_v32 = vmax.f32 %v864_v25, 0.0  ;;  %v929_v33 = vmax.f32 %v865_v27, 0.0  ;;  %v926_v34 = vmax.f32 %v862_v30, 0.0  ;;  %v927_v35 = vmax.f32 %v863_v31, 0.0  ;;  %v940_v23 = vld [vmem:[%s7278_s3 + $0x10] sm:$0xff]  ;;  %v943_v24 = vld [vmem:[%s7278_s3 + $0x28] sm:$0xff] }
 0x11b   : > { %v542_v38 = vpop.permute.xlu1 %541  ;;  %v537_v39 = vpop.permute.xlu0 %536  ;;  %v2290_v25 = vld [vmem:[%s7281_s6 + $0x38] sm:$0xff]  ;;  %v2289_v27 = vld [vmem:[%s7281_s6 + $0x30] sm:$0xff]  ;;  %v942_v30 = vld [vmem:[%s7278_s3 + $0x20] sm:$0xff] }
 0x11c   : > { %1417 = vperm.xlu1 %5780, %v1123_v36   ;;  %v5361_v40 = vpack.c.bf16 %v929_v33, %v927_v35  ;;  %v5363_v41 = vpack.c.bf16 %v928_v32, %v926_v34  ;;  %v612_v42 = vmul.f32 %v542_v38, %v6138_v7  ;;  %v613_v43 = vmul.f32 %v542_v38, %v6143_v10  ;;  %v945_v31 = vld [vmem:[%s7278_s3 + $0x38] sm:$0xff]  ;;  %v2292_v32 = vld [vmem:[%s7281_s6 + $0x48] sm:$0xff]  ;;  %v2291_v33 = vld [vmem:[%s7281_s6 + $0x40] sm:$0xff] }
 0x11d   : > { %1412 = vperm.xlu0 %5779, %v1122_v37   ;;  %v610_v44 = vmul.f32 %v537_v39, %v6132_v3  ;;  %v611_v45 = vmul.f32 %v537_v39, %v6135_v4  ;;  %v944_v34 = vld [vmem:[%s7278_s3 + $0x30] sm:$0xff]  ;;  %v947_v35 = vld [vmem:[%s7278_s3 + $0x48] sm:$0xff]  ;;  %v2294_v36 = vld [vmem:[%s7281_s6 + $0x58] sm:$0xff] }
 0x11e   : > { %5362 = vmatprep.subr.bf16.mxu0 %v5361_v40  ;;  %v2293_v37 = vld [vmem:[%s7281_s6 + $0x50] sm:$0xff]  ;;  %v946_v38 = vld [vmem:[%s7278_s3 + $0x40] sm:$0xff]  ;;  %v949_v39 = vld [vmem:[%s7278_s3 + $0x58] sm:$0xff] }
 0x11f   : > { %v798_v48 = vpop.permute.xlu1 %797  ;;  %v793_v49 = vpop.permute.xlu0 %792  ;;  %5364 = vmatpush1.bf16.msra.mxu0 %v5363_v41  ;;  %v2296_v40 = vld [vmem:[%s7281_s6 + $0x68] sm:$0xff]  ;;  %v2295_v41 = vld [vmem:[%s7281_s6 + $0x60] sm:$0xff] }
 0x120   : > { %v868_v50 = vadd.f32 %v798_v48, %v612_v42  ;;  %v869_v51 = vadd.f32 %v798_v48, %v613_v43  ;;  %v866_v7 = vadd.f32 %v793_v49, %v610_v44  ;;  %v867_v52 = vadd.f32 %v793_v49, %v611_v45  ;;  %1427 = vperm.xlu1 %5780, %v1125_v46   ;;  %v948_v42 = vld [vmem:[%s7278_s3 + $0x50] sm:$0xff]  ;;  %v951_v43 = vld [vmem:[%s7278_s3 + $0x68] sm:$0xff]  ;;  %v2298_v44 = vld [vmem:[%s7281_s6 + $0x78] sm:$0xff] }
 0x121   : > { %1422 = vperm.xlu0 %5779, %v1124_v47   ;;  %v2297_v45 = vld [vmem:[%s7281_s6 + $0x70] sm:$0xff]  ;;  %v950_v46 = vld [vmem:[%s7278_s3 + $0x60] sm:$0xff]  ;;  %v953_v47 = vld [vmem:[%s7278_s3 + $0x78] sm:$0xff] }
 0x122   : > { %v932_v3 = vmax.f32 %v868_v50, 0.0  ;;  %v933_v4 = vmax.f32 %v869_v51, 0.0  ;;  %v930_v10 = vmax.f32 %v866_v7, 0.0  ;;  %v931_v53 = vmax.f32 %v867_v52, 0.0  ;;  %v2300_v48 = vld [vmem:[%s7281_s6 + $0x88] sm:$0xff]  ;;  %v2299_v49 = vld [vmem:[%s7281_s6 + $0x80] sm:$0xff] }
 0x123   : > { %v552_v56 = vpop.permute.xlu1 %551  ;;  %v547_v57 = vpop.permute.xlu0 %546  ;;  %v952_v50 = vld [vmem:[%s7278_s3 + $0x70] sm:$0xff]  ;;  %v955_v51 = vld [vmem:[%s7278_s3 + $0x88] sm:$0xff]  ;;  %v2302_v7 = vld [vmem:[%s7281_s6 + $0x98] sm:$0xff] }
 0x124   : > { %1437 = vperm.xlu1 %5780, %v1127_v54   ;;  %v5365_v58 = vpack.c.bf16 %v933_v4, %v931_v53  ;;  %v5367_v59 = vpack.c.bf16 %v932_v3, %v930_v10  ;;  %v616_v60 = vmul.f32 %v552_v56, %v6160_v21  ;;  %v617_v61 = vmul.f32 %v552_v56, %v6166_v26  ;;  %v2301_v52 = vld [vmem:[%s7281_s6 + $0x90] sm:$0xff]  ;;  %v954_v3 = vld [vmem:[%s7278_s3 + $0x80] sm:$0xff]  ;;  %v957_v4 = vld [vmem:[%s7278_s3 + $0x98] sm:$0xff] }
 0x125   : > { %1432 = vperm.xlu0 %5779, %v1126_v55   ;;  %v614_v62 = vmul.f32 %v547_v57, %v6169_v28  ;;  %v615_v63 = vmul.f32 %v547_v57, %v6172_v29  ;;  %v2304_v10 = vld [vmem:[%s7281_s6 + $0xa8] sm:$0xff]  ;;  %v2303_v53 = vld [vmem:[%s7281_s6 + $0xa0] sm:$0xff]  ;;  %v956_v54 = vld [vmem:[%s7278_s3 + $0x90] sm:$0xff] }
 0x126   : > { %5366 = vmatprep.subr.bf16.mxu0 %v5365_v58  ;;  %v959_v55 = vld [vmem:[%s7278_s3 + $0xa8] sm:$0xff]  ;;  %v2306_v58 = vld [vmem:[%s7281_s6 + $0xb8] sm:$0xff] }
 0x127   : > { %v808_v2 = vpop.permute.xlu1 %807  ;;  %v803_v5 = vpop.permute.xlu0 %802  ;;  %5368 = vmatpush1.bf16.msra.mxu0 %v5367_v59  ;;  %v2305_v59 = vld [vmem:[%s7281_s6 + $0xb0] sm:$0xff] }
 0x128   : > { %v872_v6 = vadd.f32 %v808_v2, %v616_v60  ;;  %v873_v8 = vadd.f32 %v808_v2, %v617_v61  ;;  %v870_v21 = vadd.f32 %v803_v5, %v614_v62  ;;  %v871_v9 = vadd.f32 %v803_v5, %v615_v63  ;;  %1447 = vperm.xlu1 %5780, %v1129_v0   ;;  %v958_v60 = vld [vmem:[%s7278_s3 + $0xa0] sm:$0xff]  ;;  %v961_v61 = vld [vmem:[%s7278_s3 + $0xb8] sm:$0xff]  ;;  %v2308_v62 = vld [vmem:[%s7281_s6 + $0xc8] sm:$0xff] }
 0x129   : > { %1442 = vperm.xlu0 %5779, %v1128_v1   ;;  %v2307_v63 = vld [vmem:[%s7281_s6 + $0xc0] sm:$0xff]  ;;  %v960_v2 = vld [vmem:[%s7278_s3 + $0xb0] sm:$0xff]  ;;  %v963_v5 = vld [vmem:[%s7278_s3 + $0xc8] sm:$0xff] }
 0x12a   : > { %v936_v26 = vmax.f32 %v872_v6, 0.0  ;;  %v937_v28 = vmax.f32 %v873_v8, 0.0  ;;  %v934_v29 = vmax.f32 %v870_v21, 0.0  ;;  %v935_v11 = vmax.f32 %v871_v9, 0.0  ;;  %v2310_v6 = vld [vmem:[%s7281_s6 + $0xd8] sm:$0xff]  ;;  %v2309_v8 = vld [vmem:[%s7281_s6 + $0xd0] sm:$0xff] }
 0x12b   : > { %v6534_v56 = vpop.permute.xlu1 %1137  ;;  %v6536_v57 = vpop.permute.xlu0 %1132  ;;  %v962_v21 = vld [vmem:[%s7278_s3 + $0xc0] sm:$0xff]  ;;  %v965_v9 = vld [vmem:[%s7278_s3 + $0xd8] sm:$0xff] }
 0x12c   : > { %v5369_v14 = vpack.c.bf16 %v937_v28, %v935_v11  ;;  %v5371_v15 = vpack.c.bf16 %v936_v26, %v934_v29  ;;  %2354 = vperm.xlu1 %5780, %v2284_v12   ;;  %v2312_v29 = vld [vmem:[%s7281_s6 + $0xe8] sm:$0xff]  ;;  %v2311_v11 = vld [vmem:[%s7281_s6 + $0xe0] sm:$0xff]  ;;  %v964_v12 = vld [vmem:[%s7278_s3 + $0xd0] sm:$0xff] }
 0x12d   : > { %2349 = vperm.xlu0 %5779, %v2283_v13   ;;  %v967_v13 = vld [vmem:[%s7278_s3 + $0xe8] sm:$0xff] }
 0x12e   : > { %5370 = vmatprep.subr.bf16.mxu0 %v5369_v14  ;;  %v2314_v14 = vld [vmem:[%s7281_s6 + $0xf8] sm:$0xff] }
 0x12f   : > { %5372 = vmatpush1.bf16.msra.mxu0 %v5371_v15  ;;  %v6556_v0 = vpop.permute.xlu1 %1147  ;;  %v6558_v1 = vpop.permute.xlu0 %1142  ;;  %v2313_v15 = vld [vmem:[%s7281_s6 + $0xf0] sm:$0xff] }
 0x130   : > { %2364 = vperm.xlu1 %5780, %v2286_v16  }
 0x131   : > { %2359 = vperm.xlu0 %5779, %v2285_v17  }
 0x132   : > { %1515 = vmatmul.mubr.f32.vlgmr.msra.gmra.mrb[0].mxu0 %v938_v18  ;;  %v966_v18 = vld [vmem:[%s7278_s3 + $0xe0] sm:$0xff] }
 0x133   : > { %1520 = vmatprep.mubr.f32.mxu0 %v941_v19  ;;  %v6578_v26 = vpop.permute.xlu1 %1157  ;;  %v6580_v28 = vpop.permute.xlu0 %1152  ;;  %v969_v19 = vld [vmem:[%s7278_s3 + $0xf8] sm:$0xff] }
 0x134   : > { %2374 = vperm.xlu1 %5780, %v2288_v20   ;;  %v2316_v20 = vld [vmem:[%s7281_s6 + $0x108] sm:$0xff] }
 0x135   : > { %2369 = vperm.xlu0 %5779, %v2287_v22   ;;  %v2315_v22 = vld [vmem:[%s7281_s6 + $0x100] sm:$0xff] }
 0x136   : > { %1521 = vmatmul.mubr.f32.gmra.mrb[2].mxu0 %v940_v23  ;;  %v968_v23 = vld [vmem:[%s7278_s3 + $0xf0] sm:$0xff] }
 0x137   : > { %1526 = vmatprep.mubr.f32.mxu0 %v943_v24  ;;  %v6600_v16 = vpop.permute.xlu1 %1167  ;;  %v971_v24 = vld [vmem:[%s7278_s3 + $0x108] sm:$0xff] }
 0x138   : > { %2384 = vperm.xlu1 %5780, %v2290_v25   ;;  %v6602_v17 = vpop.permute.xlu0 %1162 }
 0x139   : > { %2379 = vperm.xlu0 %5779, %v2289_v27  }
 0x13a   : > { %1527 = vmatmul.mubr.f32.gmra.mrb[4].mxu0 %v942_v30  ;;  %v2318_v30 = vld [vmem:[%s7281_s6 + $0x118] sm:$0xff] }
 0x13b   : > { %1532 = vmatprep.mubr.f32.mxu0 %v945_v31  ;;  %v6622_v25 = vpop.permute.xlu1 %1177  ;;  %v2317_v31 = vld [vmem:[%s7281_s6 + $0x110] sm:$0xff] }
 0x13c   : > { %2394 = vperm.xlu1 %5780, %v2292_v32   ;;  %v6624_v27 = vpop.permute.xlu0 %1172  ;;  %v970_v32 = vld [vmem:[%s7278_s3 + $0x100] sm:$0xff] }
 0x13d   : > { %2389 = vperm.xlu0 %5779, %v2291_v33   ;;  %v973_v33 = vld [vmem:[%s7278_s3 + $0x118] sm:$0xff] }
 0x13e   : > { %1533 = vmatmul.mubr.f32.gmra.mrb[6].mxu0 %v944_v34  ;;  %v2320_v34 = vld [vmem:[%s7281_s6 + $0x128] sm:$0xff] }
 0x13f   : > { %1538 = vmatprep.mubr.f32.mxu0 %v947_v35  ;;  %v2319_v35 = vld [vmem:[%s7281_s6 + $0x120] sm:$0xff] }
 0x140   : > { %2404 = vperm.xlu1 %5780, %v2294_v36   ;;  %v6644_v36 = vpop.permute.xlu1 %1187 }
 0x141   : > { %2399 = vperm.xlu0 %5779, %v2293_v37   ;;  %v6646_v37 = vpop.permute.xlu0 %1182 }
 0x142   : > { %1539 = vmatmul.mubr.f32.gmra.mrb[8].mxu0 %v946_v38  ;;  %v972_v38 = vld [vmem:[%s7278_s3 + $0x110] sm:$0xff] }
 0x143   : > { %1544 = vmatprep.mubr.f32.mxu0 %v949_v39  ;;  %v975_v39 = vld [vmem:[%s7278_s3 + $0x128] sm:$0xff] }
 0x144   : > { %2414 = vperm.xlu1 %5780, %v2296_v40   ;;  %v2322_v40 = vld [vmem:[%s7281_s6 + $0x138] sm:$0xff] }
 0x145   : > { %2409 = vperm.xlu0 %5779, %v2295_v41   ;;  %v2321_v41 = vld [vmem:[%s7281_s6 + $0x130] sm:$0xff] }
 0x146   : > { %1545 = vmatmul.mubr.f32.gmra.mrb[10].mxu0 %v948_v42  ;;  %v974_v42 = vld [vmem:[%s7278_s3 + $0x120] sm:$0xff] }
 0x147   : > { %1550 = vmatprep.mubr.f32.mxu0 %v951_v43  ;;  %v977_v43 = vld [vmem:[%s7278_s3 + $0x138] sm:$0xff] }
 0x148   : > { %2424 = vperm.xlu1 %5780, %v2298_v44   ;;  %v6666_v44 = vpop.permute.xlu1 %1197 }
 0x149   : > { %2419 = vperm.xlu0 %5779, %v2297_v45   ;;  %v6668_v45 = vpop.permute.xlu0 %1192 }
 0x14a   : > { %1551 = vmatmul.mubr.f32.gmra.mrb[12].mxu0 %v950_v46  ;;  %v2324_v46 = vld [vmem:[%s7281_s6 + $0x148] sm:$0xff] }
 0x14b   : > { %1556 = vmatprep.mubr.f32.mxu0 %v953_v47  ;;  %v2323_v47 = vld [vmem:[%s7281_s6 + $0x140] sm:$0xff] }
 0x14c   : > { %2434 = vperm.xlu1 %5780, %v2300_v48   ;;  %v976_v48 = vld [vmem:[%s7278_s3 + $0x130] sm:$0xff] }
 0x14d   : > { %2429 = vperm.xlu0 %5779, %v2299_v49   ;;  %v979_v49 = vld [vmem:[%s7278_s3 + $0x148] sm:$0xff] }
 0x14e   : > { %1557 = vmatmul.mubr.f32.gmra.mrb[14].mxu0 %v952_v50  ;;  %v2326_v50 = vld [vmem:[%s7281_s6 + $0x158] sm:$0xff] }
 0x14f   : > { %1562 = vmatprep.mubr.f32.mxu0 %v955_v51  ;;  %v2325_v51 = vld [vmem:[%s7281_s6 + $0x150] sm:$0xff] }
 0x150   : > { %2444 = vperm.xlu1 %5780, %v2302_v7   ;;  %v6688_v7 = vpop.permute.xlu1 %1207 }
 0x151   : > { %2439 = vperm.xlu0 %5779, %v2301_v52   ;;  %v6690_v52 = vpop.permute.xlu0 %1202 }
 0x152   : > { %1563 = vmatmul.mubr.f32.gmra.mrb[16].mxu0 %v954_v3  ;;  %v978_v3 = vld [vmem:[%s7278_s3 + $0x140] sm:$0xff] }
 0x153   : > { %1568 = vmatprep.mubr.f32.mxu0 %v957_v4  ;;  %v981_v4 = vld [vmem:[%s7278_s3 + $0x158] sm:$0xff] }
 0x154   : > { %2454 = vperm.xlu1 %5780, %v2304_v10   ;;  %v2328_v10 = vld [vmem:[%s7281_s6 + $0x168] sm:$0xff] }
 0x155   : > { %2449 = vperm.xlu0 %5779, %v2303_v53   ;;  %v2327_v53 = vld [vmem:[%s7281_s6 + $0x160] sm:$0xff] }
 0x156   : > { %1569 = vmatmul.mubr.f32.gmra.mrb[18].mxu0 %v956_v54  ;;  %v980_v54 = vld [vmem:[%s7278_s3 + $0x150] sm:$0xff] }
 0x157   : > { %1574 = vmatprep.mubr.f32.mxu0 %v959_v55  ;;  %v983_v55 = vld [vmem:[%s7278_s3 + $0x168] sm:$0xff] }
 0x158   : > { %2464 = vperm.xlu1 %5780, %v2306_v58   ;;  %v6710_v58 = vpop.permute.xlu1 %1217 }
 0x159   : > { %2459 = vperm.xlu0 %5779, %v2305_v59   ;;  %v6712_v59 = vpop.permute.xlu0 %1212 }
 0x15a   : > { %1575 = vmatmul.mubr.f32.gmra.mrb[20].mxu0 %v958_v60  ;;  %v2330_v60 = vld [vmem:[%s7281_s6 + $0x178] sm:$0xff] }
 0x15b   : > { %1580 = vmatprep.mubr.f32.mxu0 %v961_v61  ;;  %v2329_v61 = vld [vmem:[%s7281_s6 + $0x170] sm:$0xff] }
 0x15c   : > { %2474 = vperm.xlu1 %5780, %v2308_v62   ;;  %v982_v62 = vld [vmem:[%s7278_s3 + $0x160] sm:$0xff] }
 0x15d   : > { %2469 = vperm.xlu0 %5779, %v2307_v63   ;;  %v985_v63 = vld [vmem:[%s7278_s3 + $0x178] sm:$0xff] }
 0x15e   : > { %1581 = vmatmul.mubr.f32.gmra.mrb[22].mxu0 %v960_v2  ;;  %v2332_v2 = vld [vmem:[%s7281_s6 + $0x188] sm:$0xff] }
 0x15f   : > { %1586 = vmatprep.mubr.f32.mxu0 %v963_v5  ;;  %v2331_v5 = vld [vmem:[%s7281_s6 + $0x180] sm:$0xff] }
 0x160   : > { %2484 = vperm.xlu1 %5780, %v2310_v6   ;;  %v6732_v6 = vpop.permute.xlu1 %1227 }
 0x161   : > { %2479 = vperm.xlu0 %5779, %v2309_v8   ;;  %v6734_v8 = vpop.permute.xlu0 %1222 }
 0x162   : > { %1587 = vmatmul.mubr.f32.gmra.mrb[24].mxu0 %v962_v21  ;;  %v984_v21 = vld [vmem:[%s7278_s3 + $0x170] sm:$0xff] }
 0x163   : > { %1592 = vmatprep.mubr.f32.mxu0 %v965_v9  ;;  %v987_v9 = vld [vmem:[%s7278_s3 + $0x188] sm:$0xff] }
 0x164   : > { %2494 = vperm.xlu1 %5780, %v2312_v29   ;;  %v2334_v29 = vld [vmem:[%s7281_s6 + $0x198] sm:$0xff] }
 0x165   : > { %2489 = vperm.xlu0 %5779, %v2311_v11   ;;  %v2333_v11 = vld [vmem:[%s7281_s6 + $0x190] sm:$0xff] }
 0x166   : > { %1593 = vmatmul.mubr.f32.gmra.mrb[26].mxu0 %v964_v12  ;;  %v986_v12 = vld [vmem:[%s7278_s3 + $0x180] sm:$0xff] }
 0x167   : > { %1598 = vmatprep.mubr.f32.mxu0 %v967_v13  ;;  %v989_v13 = vld [vmem:[%s7278_s3 + $0x198] sm:$0xff] }
 0x168   : > { %2504 = vperm.xlu1 %5780, %v2314_v14   ;;  %v6754_v14 = vpop.permute.xlu1 %1237 }
 0x169   : > { %2499 = vperm.xlu0 %5779, %v2313_v15   ;;  %v6756_v15 = vpop.permute.xlu0 %1232 }
 0x16a   : > { %1599 = vmatmul.mubr.f32.gmra.mrb[28].mxu0 %v966_v18  ;;  %v2336_v18 = vld [vmem:[%s7281_s6 + $0x1a8] sm:$0xff] }
 0x16b   : > { %1604 = vmatprep.mubr.f32.mxu0 %v969_v19  ;;  %v2335_v19 = vld [vmem:[%s7281_s6 + $0x1a0] sm:$0xff] }
 0x16c   : > { %2514 = vperm.xlu1 %5780, %v2316_v20   ;;  %v988_v20 = vld [vmem:[%s7278_s3 + $0x190] sm:$0xff] }
 0x16d   : > { %2509 = vperm.xlu0 %5779, %v2315_v22   ;;  %v991_v22 = vld [vmem:[%s7278_s3 + $0x1a8] sm:$0xff] }
 0x16e   : > { %1605 = vmatmul.mubr.f32.gmra.mrb[30].mxu0 %v968_v23  ;;  %v2338_v23 = vld [vmem:[%s7281_s6 + $0x1b8] sm:$0xff] }
 0x16f   : > { %1610 = vmatprep.mubr.f32.mxu0 %v971_v24  ;;  %v2337_v24 = vld [vmem:[%s7281_s6 + $0x1b0] sm:$0xff] }
 0x170   : > { %2524 = vperm.xlu1 %5780, %v2318_v30   ;;  %v6776_v30 = vpop.permute.xlu1 %1247 }
 0x171   : > { %2519 = vperm.xlu0 %5779, %v2317_v31   ;;  %v6778_v31 = vpop.permute.xlu0 %1242 }
 0x172   : > { %1611 = vmatmul.mubr.f32.gmra.mrb[32].mxu0 %v970_v32  ;;  %v990_v32 = vld [vmem:[%s7278_s3 + $0x1a0] sm:$0xff] }
 0x173   : > { %1616 = vmatprep.mubr.f32.mxu0 %v973_v33  ;;  %v993_v33 = vld [vmem:[%s7278_s3 + $0x1b8] sm:$0xff] }
 0x174   : > { %2534 = vperm.xlu1 %5780, %v2320_v34   ;;  %v2340_v34 = vld [vmem:[%s7281_s6 + $0x1c8] sm:$0xff] }
 0x175   : > { %2529 = vperm.xlu0 %5779, %v2319_v35   ;;  %v2339_v35 = vld [vmem:[%s7281_s6 + $0x1c0] sm:$0xff] }
 0x176   : > { %1617 = vmatmul.mubr.f32.gmra.mrb[34].mxu0 %v972_v38  ;;  %v992_v38 = vld [vmem:[%s7278_s3 + $0x1b0] sm:$0xff] }
 0x177   : > { %1622 = vmatprep.mubr.f32.mxu0 %v975_v39  ;;  %v995_v39 = vld [vmem:[%s7278_s3 + $0x1c8] sm:$0xff] }
 0x178   : > { %2544 = vperm.xlu1 %5780, %v2322_v40   ;;  %v6798_v40 = vpop.permute.xlu1 %1257 }
 0x179   : > { %2539 = vperm.xlu0 %5779, %v2321_v41   ;;  %v6800_v41 = vpop.permute.xlu0 %1252 }
 0x17a   : > { %1623 = vmatmul.mubr.f32.gmra.mrb[36].mxu0 %v974_v42  ;;  %v2342_v42 = vld [vmem:[%s7281_s6 + $0x1d8] sm:$0xff] }
 0x17b   : > { %1628 = vmatprep.mubr.f32.mxu0 %v977_v43  ;;  %v2341_v43 = vld [vmem:[%s7281_s6 + $0x1d0] sm:$0xff] }
 0x17c   : > { %2554 = vperm.xlu1 %5780, %v2324_v46   ;;  %v994_v46 = vld [vmem:[%s7278_s3 + $0x1c0] sm:$0xff] }
 0x17d   : > { %2549 = vperm.xlu0 %5779, %v2323_v47   ;;  %v997_v47 = vld [vmem:[%s7278_s3 + $0x1d8] sm:$0xff] }
 0x17e   : > { %1629 = vmatmul.mubr.f32.gmra.mrb[38].mxu0 %v976_v48  ;;  %v2344_v48 = vld [vmem:[%s7281_s6 + $0x1e8] sm:$0xff] }
 0x17f   : > { %1634 = vmatprep.mubr.f32.mxu0 %v979_v49  ;;  %v2343_v49 = vld [vmem:[%s7281_s6 + $0x1e0] sm:$0xff] }
 0x180   : > { %2564 = vperm.xlu1 %5780, %v2326_v50   ;;  %v6820_v50 = vpop.permute.xlu1 %1267 }
 0x181   : > { %2559 = vperm.xlu0 %5779, %v2325_v51   ;;  %v6822_v51 = vpop.permute.xlu0 %1262 }
 0x182   : > { %1635 = vmatmul.mubr.f32.gmra.mrb[40].mxu0 %v978_v3  ;;  %v996_v3 = vld [vmem:[%s7278_s3 + $0x1d0] sm:$0xff] }
 0x183   : > { %1640 = vmatprep.mubr.f32.mxu0 %v981_v4  ;;  %v999_v4 = vld [vmem:[%s7278_s3 + $0x1e8] sm:$0xff] }
 0x184   : > { %2574 = vperm.xlu1 %5780, %v2328_v10   ;;  %v2346_v10 = vld [vmem:[%s7281_s6 + $0x1f8] sm:$0xff] }
 0x185   : > { %2569 = vperm.xlu0 %5779, %v2327_v53   ;;  %v2345_v53 = vld [vmem:[%s7281_s6 + $0x1f0] sm:$0xff] }
 0x186   : > { %1641 = vmatmul.mubr.f32.gmra.mrb[42].mxu0 %v980_v54  ;;  %v998_v54 = vld [vmem:[%s7278_s3 + $0x1e0] sm:$0xff] }
 0x187   : > { %1646 = vmatprep.mubr.f32.mxu0 %v983_v55  ;;  %v1001_v55 = vld [vmem:[%s7278_s3 + $0x1f8] sm:$0xff] }
 0x188   : > { %2584 = vperm.xlu1 %5780, %v2330_v60   ;;  %v6842_v60 = vpop.permute.xlu1 %1277 }
 0x189   : > { %2579 = vperm.xlu0 %5779, %v2329_v61   ;;  %v6844_v61 = vpop.permute.xlu0 %1272 }
 0x18a   : > { %1647 = vmatmul.mubr.f32.gmra.mrb[44].mxu0 %v982_v62  ;;  %v1000_v62 = vld [vmem:[%s7278_s3 + $0x1f0] sm:$0xff] }
 0x18b   : > { %1652 = vmatprep.mubr.f32.mxu0 %v985_v63  ;;  %v1003_v63 = vld [vmem:[%s7278_s3 + $0x208] sm:$0xff] }
 0x18c   : > { %2594 = vperm.xlu1 %5780, %v2332_v2   ;;  %v1002_v2 = vld [vmem:[%s7278_s3 + $0x200] sm:$0xff] }
 0x18d   : > { %2589 = vperm.xlu0 %5779, %v2331_v5   ;;  %v1005_v5 = vld [vmem:[%s7278_s3 + $0x218] sm:$0xff] }
 0x18e   : > { %1653 = vmatmul.mubr.f32.gmra.mrb[46].mxu0 %v984_v21  ;;  %v1004_v21 = vld [vmem:[%s7278_s3 + $0x210] sm:$0xff] }
 0x18f   : > { %1658 = vmatprep.mubr.f32.mxu0 %v987_v9  ;;  %v1007_v9 = vld [vmem:[%s7278_s3 + $0x228] sm:$0xff] }
 0x190   : > { %2604 = vperm.xlu1 %5780, %v2334_v29   ;;  %v1006_v29 = vld [vmem:[%s7278_s3 + $0x220] sm:$0xff] }
 0x191   : > { %2599 = vperm.xlu0 %5779, %v2333_v11   ;;  %v1009_v11 = vld [vmem:[%s7278_s3 + $0x238] sm:$0xff] }
 0x192   : > { %1659 = vmatmul.mubr.f32.gmra.mrb[48].mxu0 %v986_v12  ;;  %v1008_v12 = vld [vmem:[%s7278_s3 + $0x230] sm:$0xff] }
 0x193   : > { %1664 = vmatprep.mubr.f32.mxu0 %v989_v13  ;;  %v1011_v13 = vld [vmem:[%s7278_s3 + $0x248] sm:$0xff] }
 0x194   : > { %2614 = vperm.xlu1 %5780, %v2336_v18   ;;  %v1010_v18 = vld [vmem:[%s7278_s3 + $0x240] sm:$0xff] }
 0x195   : > { %2609 = vperm.xlu0 %5779, %v2335_v19   ;;  %v1013_v19 = vld [vmem:[%s7278_s3 + $0x258] sm:$0xff] }
 0x196   : > { %1665 = vmatmul.mubr.f32.gmra.mrb[50].mxu0 %v988_v20  ;;  %v1012_v20 = vld [vmem:[%s7278_s3 + $0x250] sm:$0xff] }
 0x197   : > { %1670 = vmatprep.mubr.f32.mxu0 %v991_v22  ;;  %v1015_v22 = vld [vmem:[%s7278_s3 + $0x268] sm:$0xff] }
 0x198   : > { %2624 = vperm.xlu1 %5780, %v2338_v23   ;;  %v1014_v23 = vld [vmem:[%s7278_s3 + $0x260] sm:$0xff] }
 0x199   : > { %2619 = vperm.xlu0 %5779, %v2337_v24   ;;  %v1017_v24 = vld [vmem:[%s7278_s3 + $0x278] sm:$0xff] }
 0x19a   : > { %1671 = vmatmul.mubr.f32.gmra.mrb[52].mxu0 %v990_v32  ;;  %v1016_v32 = vld [vmem:[%s7278_s3 + $0x270] sm:$0xff] }
 0x19b   : > { %1676 = vmatprep.mubr.f32.mxu0 %v993_v33  ;;  %v1019_v33 = vld [vmem:[%s7278_s3 + $0x288] sm:$0xff] }
 0x19c   : > { %2634 = vperm.xlu1 %5780, %v2340_v34   ;;  %v1018_v34 = vld [vmem:[%s7278_s3 + $0x280] sm:$0xff] }
 0x19d   : > { %2629 = vperm.xlu0 %5779, %v2339_v35   ;;  %v1021_v35 = vld [vmem:[%s7278_s3 + $0x298] sm:$0xff] }
 0x19e   : > { %1677 = vmatmul.mubr.f32.gmra.mrb[54].mxu0 %v992_v38  ;;  %v1020_v38 = vld [vmem:[%s7278_s3 + $0x290] sm:$0xff] }
 0x19f   : > { %1682 = vmatprep.mubr.f32.mxu0 %v995_v39  ;;  %v1023_v39 = vld [vmem:[%s7278_s3 + $0x2a8] sm:$0xff] }
 0x1a0   : > { %2644 = vperm.xlu1 %5780, %v2342_v42   ;;  %v1022_v42 = vld [vmem:[%s7278_s3 + $0x2a0] sm:$0xff] }
 0x1a1   : > { %2639 = vperm.xlu0 %5779, %v2341_v43   ;;  %v1025_v43 = vld [vmem:[%s7278_s3 + $0x2b8] sm:$0xff] }
 0x1a2   : > { %1683 = vmatmul.mubr.f32.gmra.mrb[56].mxu0 %v994_v46  ;;  %v1024_v46 = vld [vmem:[%s7278_s3 + $0x2b0] sm:$0xff] }
 0x1a3   : > { %1688 = vmatprep.mubr.f32.mxu0 %v997_v47  ;;  %v1027_v47 = vld [vmem:[%s7278_s3 + $0x2c8] sm:$0xff] }
 0x1a4   : > { %2654 = vperm.xlu1 %5780, %v2344_v48   ;;  %v1026_v48 = vld [vmem:[%s7278_s3 + $0x2c0] sm:$0xff] }
 0x1a5   : > { %2649 = vperm.xlu0 %5779, %v2343_v49   ;;  %v1029_v49 = vld [vmem:[%s7278_s3 + $0x2d8] sm:$0xff] }
 0x1a6   : > { %1689 = vmatmul.mubr.f32.gmra.mrb[58].mxu0 %v996_v3  ;;  %v1028_v3 = vld [vmem:[%s7278_s3 + $0x2d0] sm:$0xff] }
 0x1a7   : > { %1694 = vmatprep.mubr.f32.mxu0 %v999_v4  ;;  %v1031_v4 = vld [vmem:[%s7278_s3 + $0x2e8] sm:$0xff] }
 0x1a8   : > { %2664 = vperm.xlu1 %5780, %v2346_v10   ;;  %v1030_v10 = vld [vmem:[%s7278_s3 + $0x2e0] sm:$0xff] }
 0x1a9   : > { %2659 = vperm.xlu0 %5779, %v2345_v53   ;;  %v1033_v53 = vld [vmem:[%s7278_s3 + $0x2f8] sm:$0xff] }
 0x1aa   : > { %1695 = vmatmul.mubr.f32.gmra.mrb[60].mxu0 %v998_v54  ;;  %v1032_v54 = vld [vmem:[%s7278_s3 + $0x2f0] sm:$0xff] }
 0x1ab   : > { %1700 = vmatprep.mubr.f32.mxu0 %v1001_v55  ;;  %v1035_v55 = vld [vmem:[%s7278_s3 + $0x308] sm:$0xff] }
 0x1ae   : > { %1701 = vmatmul.mubr.f32.gmra.mrb[62].mxu0 %v1000_v62  ;;  %v1034_v62 = vld [vmem:[%s7278_s3 + $0x300] sm:$0xff] }
 0x1af   : > { %1706 = vmatprep.mubr.f32.mxu0 %v1003_v63  ;;  %v1037_v63 = vld [vmem:[%s7278_s3 + $0x318] sm:$0xff] }
 0x1b2   : > { %1707 = vmatmul.mubr.f32.gmra.mrb[64].mxu0 %v1002_v2  ;;  %v1036_v2 = vld [vmem:[%s7278_s3 + $0x310] sm:$0xff] }
 0x1b3   : > { %1712 = vmatprep.mubr.f32.mxu0 %v1005_v5  ;;  %v1039_v5 = vld [vmem:[%s7278_s3 + $0x328] sm:$0xff] }
 0x1b6   : > { %1713 = vmatmul.mubr.f32.gmra.mrb[66].mxu0 %v1004_v21  ;;  %v1038_v21 = vld [vmem:[%s7278_s3 + $0x320] sm:$0xff] }
 0x1b7   : > { %1718 = vmatprep.mubr.f32.mxu0 %v1007_v9  ;;  %v1041_v9 = vld [vmem:[%s7278_s3 + $0x338] sm:$0xff] }
 0x1ba   : > { %1719 = vmatmul.mubr.f32.gmra.mrb[68].mxu0 %v1006_v29  ;;  %v1040_v29 = vld [vmem:[%s7278_s3 + $0x330] sm:$0xff] }
 0x1bb   : > { %1724 = vmatprep.mubr.f32.mxu0 %v1009_v11  ;;  %v1043_v11 = vld [vmem:[%s7278_s3 + $0x348] sm:$0xff] }
 0x1be   : > { %1725 = vmatmul.mubr.f32.gmra.mrb[70].mxu0 %v1008_v12  ;;  %v1042_v12 = vld [vmem:[%s7278_s3 + $0x340] sm:$0xff] }
 0x1bf   : > { %1730 = vmatprep.mubr.f32.mxu0 %v1011_v13  ;;  %v1045_v13 = vld [vmem:[%s7278_s3 + $0x358] sm:$0xff] }
 0x1c2   : > { %1731 = vmatmul.mubr.f32.gmra.mrb[72].mxu0 %v1010_v18  ;;  %v1044_v18 = vld [vmem:[%s7278_s3 + $0x350] sm:$0xff] }
 0x1c3   : > { %1736 = vmatprep.mubr.f32.mxu0 %v1013_v19  ;;  %v1047_v19 = vld [vmem:[%s7278_s3 + $0x368] sm:$0xff] }
 0x1c6   : > { %1737 = vmatmul.mubr.f32.gmra.mrb[74].mxu0 %v1012_v20 }
 0x1c7   : > { %1742 = vmatprep.mubr.f32.mxu0 %v1015_v22 }
 0x1ca   : > { %1743 = vmatmul.mubr.f32.gmra.mrb[76].mxu0 %v1014_v23  ;;  %v1046_v23 = vld [vmem:[%s7278_s3 + $0x360] sm:$0xff] }
 0x1cb   : > { %1748 = vmatprep.mubr.f32.mxu0 %v1017_v24 }
 0x1ce   : > { %1749 = vmatmul.mubr.f32.gmra.mrb[78].mxu0 %v1016_v32  ;;  %v1049_v32 = vld [vmem:[%s7278_s3 + $0x378] sm:$0xff] }
 0x1cf   : > { %1754 = vmatprep.mubr.f32.mxu0 %v1019_v33 }
 0x1d2   : > { %1755 = vmatmul.mubr.f32.gmra.mrb[80].mxu0 %v1018_v34 }
 0x1d3   : > { %1760 = vmatprep.mubr.f32.mxu0 %v1021_v35 }
 0x1d6   : > { %1761 = vmatmul.mubr.f32.gmra.mrb[82].mxu0 %v1020_v38 }
 0x1d7   : > { %1766 = vmatprep.mubr.f32.mxu0 %v1023_v39 }
 0x1da   : > { %1767 = vmatmul.mubr.f32.gmra.mrb[84].mxu0 %v1022_v42  ;;  %v1048_v42 = vld [vmem:[%s7278_s3 + $0x370] sm:$0xff] }
 0x1db   : > { %1772 = vmatprep.mubr.f32.mxu0 %v1025_v43 }
 0x1de   : > { %1773 = vmatmul.mubr.f32.gmra.mrb[86].mxu0 %v1024_v46 }
 0x1df   : > { %1778 = vmatprep.mubr.f32.mxu0 %v1027_v47  ;;  %v1051_v47 = vld [vmem:[%s7278_s3 + $0x388] sm:$0xff] }
 0x1e2   : > { %1779 = vmatmul.mubr.f32.gmra.mrb[88].mxu0 %v1026_v48  ;;  %v2028_v48 = vld [vmem:[#allocation2 + $0x8] sm:$0xff] }
 0x1e3   : > { %1784 = vmatprep.mubr.f32.mxu0 %v1029_v49  ;;  %2731 = vmatprep.mubr.f32.mxu1 %v2028_v48 }
 0x1e6   : > { %1785 = vmatmul.mubr.f32.gmra.mrb[90].mxu0 %v1028_v3 }
 0x1e7   : > { %1790 = vmatprep.mubr.f32.mxu0 %v1031_v4 }
 0x1ea   : > { %1791 = vmatmul.mubr.f32.gmra.mrb[92].mxu0 %v1030_v10 }
 0x1eb   : > { %1796 = vmatprep.mubr.f32.mxu0 %v1033_v53  ;;  %v1050_v53 = vld [vmem:[%s7278_s3 + $0x380] sm:$0xff] }
 0x1ee   : > { %1797 = vmatmul.mubr.f32.gmra.mrb[94].mxu0 %v1032_v54 }
 0x1ef   : > { %1802 = vmatprep.mubr.f32.mxu0 %v1035_v55  ;;  %v1053_v55 = vld [vmem:[%s7278_s3 + $0x398] sm:$0xff] }
 0x1f2   : > { %1803 = vmatmul.mubr.f32.gmra.mrb[96].mxu0 %v1034_v62 }
 0x1f3   : > { %1808 = vmatprep.mubr.f32.mxu0 %v1037_v63 }
 0x1f6   : > { %1809 = vmatmul.mubr.f32.gmra.mrb[98].mxu0 %v1036_v2 }
 0x1f7   : > { %1814 = vmatprep.mubr.f32.mxu0 %v1039_v5 }
 0x1fa   : > { %1815 = vmatmul.mubr.f32.gmra.mrb[100].mxu0 %v1038_v21 }
 0x1fb   : > { %1820 = vmatprep.mubr.f32.mxu0 %v1041_v9  ;;  %v1052_v9 = vld [vmem:[%s7278_s3 + $0x390] sm:$0xff] }
 0x1fe   : > { %1821 = vmatmul.mubr.f32.gmra.mrb[102].mxu0 %v1040_v29 }
 0x1ff   : > { %1826 = vmatprep.mubr.f32.mxu0 %v1043_v11 }
 0x202   : > { %1827 = vmatmul.mubr.f32.gmra.mrb[104].mxu0 %v1042_v12 }
 0x203   : > { %1832 = vmatprep.mubr.f32.mxu0 %v1045_v13 }
 0x205   : > { %v1516_v20 = vpop.f32.mrb[0].mxu0 }
 0x206   : > { %v1518_v22 = vpop.f32.mrb[1].mxu0  ;;  %1833 = vmatmul.mubr.f32.gmra.mrb[106].mxu0 %v1044_v18  ;;  %v1517_v24 = vadd.f32 %v1516_v20, %v6536_v57 }
 0x207   : > { %1838 = vmatprep.mubr.f32.mxu0 %v1047_v19  ;;  %v1519_v33 = vadd.f32 %v1518_v22, %v6536_v57 }
 0x208   : > { %v1899_v43 = vmax.f32 %v1517_v24, 0.0  ;;  %v1057_v24 = vld [vmem:[%s7278_s3 + $0x3b8] sm:$0xff] }
 0x209   : > { %v1522_v34 = vpop.f32.mrb[2].mxu0  ;;  %v1900_v57 = vmax.f32 %v1519_v33, 0.0 }
 0x20a   : > { %v1523_v35 = vadd.f32 %v1522_v34, %v6534_v56  ;;  %v1524_v38 = vpop.f32.mrb[3].mxu0  ;;  %1839 = vmatmul.mubr.f32.gmra.mrb[108].mxu0 %v1046_v23 }
 0x20b   : > { %v1525_v39 = vadd.f32 %v1524_v38, %v6534_v56  ;;  %1844 = vmatprep.mubr.f32.mxu0 %v1049_v32 }
 0x20c   : > { %v1901_v46 = vmax.f32 %v1523_v35, 0.0 }
 0x20d   : > { %v1902_v49 = vmax.f32 %v1525_v39, 0.0  ;;  %v1528_v3 = vpop.f32.mrb[4].mxu0  ;;  %v1056_v39 = vld [vmem:[%s7278_s3 + $0x3b0] sm:$0xff] }
 0x20e   : > { %v1530_v4 = vpop.f32.mrb[5].mxu0  ;;  %1845 = vmatmul.mubr.f32.gmra.mrb[110].mxu0 %v1048_v42  ;;  %v5375_v10 = vpack.c.bf16 %v1901_v46, %v1899_v43  ;;  %v1529_v54 = vadd.f32 %v1528_v3, %v6558_v1 }
 0x20f   : > { %1850 = vmatprep.mubr.f32.mxu0 %v1051_v47  ;;  %v5373_v56 = vpack.c.bf16 %v1902_v49, %v1900_v57  ;;  %v1531_v62 = vadd.f32 %v1530_v4, %v6558_v1  ;;  %v1055_v1 = vld [vmem:[%s7278_s3 + $0x3a8] sm:$0xff] }
 0x210   : > { %v1903_v29 = vmax.f32 %v1529_v54, 0.0 }
 0x211   : > { %v1534_v63 = vpop.f32.mrb[6].mxu0  ;;  %5374 = vmatprep.subr.bf16.mxu1 %v5373_v56  ;;  %v1904_v12 = vmax.f32 %v1531_v62, 0.0 }
 0x212   : > { %v1535_v2 = vadd.f32 %v1534_v63, %v6556_v0  ;;  %v1536_v5 = vpop.f32.mrb[7].mxu0  ;;  %1851 = vmatmul.mubr.f32.gmra.mrb[112].mxu0 %v1050_v53  ;;  %5376 = vmatpush1.bf16.msra.mxu1 %v5375_v10  ;;  %v1061_v10 = vld [vmem:[%s7278_s3 + $0x3d8] sm:$0xff]  ;;  %v1060_v63 = vld [vmem:[%s7278_s3 + $0x3d0] sm:$0xff] }
 0x213   : > { %v1537_v21 = vadd.f32 %v1536_v5, %v6556_v0  ;;  %1856 = vmatprep.mubr.f32.mxu0 %v1053_v55  ;;  %v1054_v0 = vld [vmem:[%s7278_s3 + $0x3a0] sm:$0xff] }
 0x214   : > { %v1905_v11 = vmax.f32 %v1535_v2, 0.0 }
 0x215   : > { %v1906_v13 = vmax.f32 %v1537_v21, 0.0  ;;  %v1540_v18 = vpop.f32.mrb[8].mxu0 }
 0x216   : > { %v5379_v19 = vpack.c.bf16 %v1905_v11, %v1903_v29  ;;  %v1542_v20 = vpop.f32.mrb[9].mxu0  ;;  %1857 = vmatmul.mubr.f32.gmra.mrb[114].mxu0 %v1052_v9  ;;  %v1541_v23 = vadd.f32 %v1540_v18, %v6580_v28  ;;  %v1065_v18 = vld [vmem:[%s7278_s3 + $0x3f8] sm:$0xff] }
 0x217   : > { %v5377_v22 = vpack.c.bf16 %v1906_v13, %v1904_v12  ;;  %1862 = vmatprep.mubr.f32.mxu0 %v1055_v1  ;;  %v1543_v32 = vadd.f32 %v1542_v20, %v6580_v28  ;;  %v1059_v28 = vld [vmem:[%s7278_s3 + $0x3c8] sm:$0xff] }
 0x218   : > { %v1907_v42 = vmax.f32 %v1541_v23, 0.0 }
 0x219   : > { %v1546_v33 = vpop.f32.mrb[10].mxu0  ;;  %5378 = vmatprep.subr.bf16.mxu1 %v5377_v22  ;;  %v1908_v46 = vmax.f32 %v1543_v32, 0.0 }
 0x21a   : > { %v1547_v34 = vadd.f32 %v1546_v33, %v6578_v26  ;;  %v1548_v35 = vpop.f32.mrb[11].mxu0  ;;  %1863 = vmatmul.mubr.f32.gmra.mrb[116].mxu0 %v1054_v0  ;;  %5380 = vmatpush1.bf16.msra.mxu1 %v5379_v19 }
 0x21b   : > { %v1549_v38 = vadd.f32 %v1548_v35, %v6578_v26  ;;  %1868 = vmatprep.mubr.f32.mxu0 %v1057_v24  ;;  %v1058_v26 = vld [vmem:[%s7278_s3 + $0x3c0] sm:$0xff]  ;;  %v1064_v24 = vld [vmem:[%s7278_s3 + $0x3f0] sm:$0xff] }
 0x21c   : > { %v1909_v43 = vmax.f32 %v1547_v34, 0.0 }
 0x21d   : > { %v1910_v47 = vmax.f32 %v1549_v38, 0.0  ;;  %v1552_v48 = vpop.f32.mrb[12].mxu0 }
 0x21e   : > { %v5383_v57 = vpack.c.bf16 %v1909_v43, %v1907_v42  ;;  %v1554_v49 = vpop.f32.mrb[13].mxu0  ;;  %1869 = vmatmul.mubr.f32.gmra.mrb[118].mxu0 %v1056_v39  ;;  %v1553_v4 = vadd.f32 %v1552_v48, %v6602_v17 }
 0x21f   : > { %v5381_v3 = vpack.c.bf16 %v1910_v47, %v1908_v46  ;;  %1874 = vmatprep.mubr.f32.mxu0 %v1059_v28  ;;  %v1555_v56 = vadd.f32 %v1554_v49, %v6602_v17  ;;  %v1063_v17 = vld [vmem:[%s7278_s3 + $0x3e8] sm:$0xff] }
 0x220   : > { %v1911_v2 = vmax.f32 %v1553_v4, 0.0 }
 0x221   : > { %v1558_v53 = vpop.f32.mrb[14].mxu0  ;;  %5382 = vmatprep.subr.bf16.mxu1 %v5381_v3  ;;  %v1912_v21 = vmax.f32 %v1555_v56, 0.0 }
 0x222   : > { %v1559_v54 = vadd.f32 %v1558_v53, %v6600_v16  ;;  %v1560_v55 = vpop.f32.mrb[15].mxu0  ;;  %1875 = vmatmul.mubr.f32.gmra.mrb[120].mxu0 %v1058_v26  ;;  %5384 = vmatpush1.bf16.msra.mxu1 %v5383_v57 }
 0x223   : > { %v1561_v62 = vadd.f32 %v1560_v55, %v6600_v16  ;;  %1880 = vmatprep.mubr.f32.mxu0 %v1061_v10  ;;  %v1062_v16 = vld [vmem:[%s7278_s3 + $0x3e0] sm:$0xff] }
 0x224   : > { %v1913_v5 = vmax.f32 %v1559_v54, 0.0 }
 0x225   : > { %v1914_v9 = vmax.f32 %v1561_v62, 0.0  ;;  %v1564_v29 = vpop.f32.mrb[16].mxu0 }
 0x226   : > { %v5387_v11 = vpack.c.bf16 %v1913_v5, %v1911_v2  ;;  %v1566_v1 = vpop.f32.mrb[17].mxu0  ;;  %1881 = vmatmul.mubr.f32.gmra.mrb[122].mxu0 %v1060_v63  ;;  %v1565_v13 = vadd.f32 %v1564_v29, %v6624_v27 }
 0x227   : > { %v5385_v12 = vpack.c.bf16 %v1914_v9, %v1912_v21  ;;  %1886 = vmatprep.mubr.f32.mxu0 %v1063_v17  ;;  %v1567_v19 = vadd.f32 %v1566_v1, %v6624_v27 }
 0x228   : > { %v1915_v32 = vmax.f32 %v1565_v13, 0.0 }
 0x229   : > { %v1570_v20 = vpop.f32.mrb[18].mxu0  ;;  %5386 = vmatprep.subr.bf16.mxu1 %v5385_v12  ;;  %v1916_v34 = vmax.f32 %v1567_v19, 0.0 }
 0x22a   : > { %v1571_v22 = vadd.f32 %v1570_v20, %v6622_v25  ;;  %v1572_v0 = vpop.f32.mrb[19].mxu0  ;;  %1887 = vmatmul.mubr.f32.gmra.mrb[124].mxu0 %v1062_v16  ;;  %5388 = vmatpush1.bf16.msra.mxu1 %v5387_v11 }
 0x22b   : > { %v1573_v23 = vadd.f32 %v1572_v0, %v6622_v25  ;;  %1892 = vmatprep.mubr.f32.mxu0 %v1065_v18 }
 0x22c   : > { %v1917_v33 = vmax.f32 %v1571_v22, 0.0 }
 0x22d   : > { %v1918_v35 = vmax.f32 %v1573_v23, 0.0  ;;  %v1576_v38 = vpop.f32.mrb[20].mxu0 }
 0x22e   : > { %v5391_v27 = vpack.c.bf16 %v1917_v33, %v1915_v32  ;;  %v1578_v39 = vpop.f32.mrb[21].mxu0  ;;  %1893 = vmatmul.mubr.f32.gmra.mrb[126].mxu0 %v1064_v24  ;;  %v1577_v43 = vadd.f32 %v1576_v38, %v6646_v37 }
 0x22f   : > { %v5389_v42 = vpack.c.bf16 %v1918_v35, %v1916_v34  ;;  %v1579_v28 = vadd.f32 %v1578_v39, %v6646_v37 }
 0x230   : > { %v1919_v57 = vmax.f32 %v1577_v43, 0.0 }
 0x231   : > { %v1582_v46 = vpop.f32.mrb[22].mxu0  ;;  %5390 = vmatprep.subr.bf16.mxu1 %v5389_v42  ;;  %v1920_v3 = vmax.f32 %v1579_v28, 0.0 }
 0x232   : > { %v1583_v25 = vadd.f32 %v1582_v46, %v6644_v36  ;;  %v1584_v47 = vpop.f32.mrb[23].mxu0  ;;  %5392 = vmatpush1.bf16.msra.mxu1 %v5391_v27 }
 0x233   : > { %v1585_v48 = vadd.f32 %v1584_v47, %v6644_v36 }
 0x234   : > { %v1921_v49 = vmax.f32 %v1583_v25, 0.0 }
 0x235   : > { %v1922_v26 = vmax.f32 %v1585_v48, 0.0  ;;  %v1588_v4 = vpop.f32.mrb[24].mxu0 }
 0x236   : > { %v5395_v10 = vpack.c.bf16 %v1921_v49, %v1919_v57  ;;  %v1590_v56 = vpop.f32.mrb[25].mxu0  ;;  %v1589_v54 = vadd.f32 %v1588_v4, %v6668_v45 }
 0x237   : > { %v5393_v53 = vpack.c.bf16 %v1922_v26, %v1920_v3  ;;  %v1591_v37 = vadd.f32 %v1590_v56, %v6668_v45 }
 0x238   : > { %v1923_v2 = vmax.f32 %v1589_v54, 0.0 }
 0x239   : > { %v1594_v55 = vpop.f32.mrb[26].mxu0  ;;  %5394 = vmatprep.subr.bf16.mxu1 %v5393_v53  ;;  %v1924_v17 = vmax.f32 %v1591_v37, 0.0 }
 0x23a   : > { %v1595_v62 = vadd.f32 %v1594_v55, %v6666_v44  ;;  %v1596_v63 = vpop.f32.mrb[27].mxu0  ;;  %5396 = vmatpush1.bf16.msra.mxu1 %v5395_v10 }
 0x23b   : > { %v1597_v36 = vadd.f32 %v1596_v63, %v6666_v44 }
 0x23c   : > { %v1925_v5 = vmax.f32 %v1595_v62, 0.0 }
 0x23d   : > { %v1926_v21 = vmax.f32 %v1597_v36, 0.0  ;;  %v1600_v9 = vpop.f32.mrb[28].mxu0 }
 0x23e   : > { %v5399_v29 = vpack.c.bf16 %v1925_v5, %v1923_v2  ;;  %v1602_v11 = vpop.f32.mrb[29].mxu0  ;;  %v1601_v12 = vadd.f32 %v1600_v9, %v6690_v52 }
 0x23f   : > { %v5397_v1 = vpack.c.bf16 %v1926_v21, %v1924_v17  ;;  %v1603_v45 = vadd.f32 %v1602_v11, %v6690_v52 }
 0x240   : > { %v1927_v19 = vmax.f32 %v1601_v12, 0.0 }
 0x241   : > { %v1606_v16 = vpop.f32.mrb[30].mxu0  ;;  %5398 = vmatprep.subr.bf16.mxu1 %v5397_v1  ;;  %v1928_v22 = vmax.f32 %v1603_v45, 0.0 }
 0x242   : > { %v1607_v13 = vadd.f32 %v1606_v16, %v6688_v7  ;;  %v1608_v18 = vpop.f32.mrb[31].mxu0  ;;  %5400 = vmatpush1.bf16.msra.mxu1 %v5399_v29 }
 0x243   : > { %v1609_v44 = vadd.f32 %v1608_v18, %v6688_v7 }
 0x244   : > { %v1929_v20 = vmax.f32 %v1607_v13, 0.0 }
 0x245   : > { %v1930_v0 = vmax.f32 %v1609_v44, 0.0  ;;  %v1612_v23 = vpop.f32.mrb[32].mxu0 }
 0x246   : > { %v5403_v24 = vpack.c.bf16 %v1929_v20, %v1927_v19  ;;  %v1614_v32 = vpop.f32.mrb[33].mxu0  ;;  %v1613_v34 = vadd.f32 %v1612_v23, %v6712_v59 }
 0x247   : > { %v5401_v33 = vpack.c.bf16 %v1930_v0, %v1928_v22  ;;  %v1615_v52 = vadd.f32 %v1614_v32, %v6712_v59 }
 0x248   : > { %v1931_v39 = vmax.f32 %v1613_v34, 0.0 }
 0x249   : > { %v1618_v35 = vpop.f32.mrb[34].mxu0  ;;  %5402 = vmatprep.subr.bf16.mxu1 %v5401_v33  ;;  %v1932_v43 = vmax.f32 %v1615_v52, 0.0 }
 0x24a   : > { %v1619_v38 = vadd.f32 %v1618_v35, %v6710_v58  ;;  %v1620_v27 = vpop.f32.mrb[35].mxu0  ;;  %5404 = vmatpush1.bf16.msra.mxu1 %v5403_v24 }
 0x24b   : > { %v1621_v7 = vadd.f32 %v1620_v27, %v6710_v58 }
 0x24c   : > { %v1933_v42 = vmax.f32 %v1619_v38, 0.0 }
 0x24d   : > { %v1934_v28 = vmax.f32 %v1621_v7, 0.0  ;;  %v1624_v46 = vpop.f32.mrb[36].mxu0 }
 0x24e   : > { %v5407_v25 = vpack.c.bf16 %v1933_v42, %v1931_v39  ;;  %v1626_v47 = vpop.f32.mrb[37].mxu0  ;;  %v1625_v57 = vadd.f32 %v1624_v46, %v6734_v8 }
 0x24f   : > { %v5405_v48 = vpack.c.bf16 %v1934_v28, %v1932_v43  ;;  %v1627_v59 = vadd.f32 %v1626_v47, %v6734_v8 }
 0x250   : > { %v1935_v4 = vmax.f32 %v1625_v57, 0.0 }
 0x251   : > { %v1630_v49 = vpop.f32.mrb[38].mxu0  ;;  %5406 = vmatprep.subr.bf16.mxu1 %v5405_v48  ;;  %v1936_v56 = vmax.f32 %v1627_v59, 0.0 }
 0x252   : > { %v1631_v3 = vadd.f32 %v1630_v49, %v6732_v6  ;;  %v1632_v26 = vpop.f32.mrb[39].mxu0  ;;  %5408 = vmatpush1.bf16.msra.mxu1 %v5407_v25 }
 0x253   : > { %v1633_v58 = vadd.f32 %v1632_v26, %v6732_v6 }
 0x254   : > { %v1937_v10 = vmax.f32 %v1631_v3, 0.0 }
 0x255   : > { %v1938_v53 = vmax.f32 %v1633_v58, 0.0  ;;  %v1636_v54 = vpop.f32.mrb[40].mxu0 }
 0x256   : > { %v5411_v37 = vpack.c.bf16 %v1937_v10, %v1935_v4  ;;  %v1638_v55 = vpop.f32.mrb[41].mxu0  ;;  %v1637_v63 = vadd.f32 %v1636_v54, %v6756_v15 }
 0x257   : > { %v5409_v62 = vpack.c.bf16 %v1938_v53, %v1936_v56  ;;  %v1639_v8 = vadd.f32 %v1638_v55, %v6756_v15 }
 0x258   : > { %v1939_v17 = vmax.f32 %v1637_v63, 0.0 }
 0x259   : > { %v1642_v36 = vpop.f32.mrb[42].mxu0  ;;  %5410 = vmatprep.subr.bf16.mxu1 %v5409_v62  ;;  %v1940_v9 = vmax.f32 %v1639_v8, 0.0 }
 0x25a   : > { %v1643_v2 = vadd.f32 %v1642_v36, %v6754_v14  ;;  %v1644_v5 = vpop.f32.mrb[43].mxu0  ;;  %5412 = vmatpush1.bf16.msra.mxu1 %v5411_v37 }
 0x25b   : > { %v1645_v6 = vadd.f32 %v1644_v5, %v6754_v14 }
 0x25c   : > { %v1941_v21 = vmax.f32 %v1643_v2, 0.0 }
 0x25d   : > { %v1942_v29 = vmax.f32 %v1645_v6, 0.0  ;;  %v1648_v11 = vpop.f32.mrb[44].mxu0 }
 0x25e   : > { %v5415_v1 = vpack.c.bf16 %v1941_v21, %v1939_v17  ;;  %v1650_v12 = vpop.f32.mrb[45].mxu0  ;;  %v1649_v16 = vadd.f32 %v1648_v11, %v6778_v31  ;;  %v1283_v21 = vpop.permute.xlu0 %1282 }
 0x25f   : > { %v5413_v45 = vpack.c.bf16 %v1942_v29, %v1940_v9  ;;  %v1651_v15 = vadd.f32 %v1650_v12, %v6778_v31  ;;  %v1288_v11 = vpop.permute.xlu1 %1287 }
 0x260   : > { %v1943_v19 = vmax.f32 %v1649_v16, 0.0 }
 0x261   : > { %v1654_v13 = vpop.f32.mrb[46].mxu0  ;;  %5414 = vmatprep.subr.bf16.mxu1 %v5413_v45  ;;  %v1944_v22 = vmax.f32 %v1651_v15, 0.0 }
 0x262   : > { %v1655_v18 = vadd.f32 %v1654_v13, %v6776_v30  ;;  %v1656_v44 = vpop.f32.mrb[47].mxu0  ;;  %5416 = vmatpush1.bf16.msra.mxu1 %v5415_v1 }
 0x263   : > { %v1657_v14 = vadd.f32 %v1656_v44, %v6776_v30 }
 0x264   : > { %v1945_v20 = vmax.f32 %v1655_v18, 0.0 }
 0x265   : > { %v1946_v0 = vmax.f32 %v1657_v14, 0.0  ;;  %v1660_v23 = vpop.f32.mrb[48].mxu0 }
 0x266   : > { %v5419_v24 = vpack.c.bf16 %v1945_v20, %v1943_v19  ;;  %v1662_v32 = vpop.f32.mrb[49].mxu0  ;;  %v1661_v34 = vadd.f32 %v1660_v23, %v6800_v41  ;;  %v1293_v20 = vpop.permute.xlu0 %1292 }
 0x267   : > { %v5417_v33 = vpack.c.bf16 %v1946_v0, %v1944_v22  ;;  %v1663_v31 = vadd.f32 %v1662_v32, %v6800_v41  ;;  %v1298_v23 = vpop.permute.xlu1 %1297 }
 0x268   : > { %v1947_v27 = vmax.f32 %v1661_v34, 0.0 }
 0x269   : > { %v1666_v52 = vpop.f32.mrb[50].mxu0  ;;  %5418 = vmatprep.subr.bf16.mxu1 %v5417_v33  ;;  %v1948_v39 = vmax.f32 %v1663_v31, 0.0  ;;  %v2027_v31 = vld [vmem:[#allocation2] sm:$0xff] }
 0x26a   : > { %v1667_v35 = vadd.f32 %v1666_v52, %v6798_v40  ;;  %v1668_v38 = vpop.f32.mrb[51].mxu0  ;;  %5420 = vmatpush1.bf16.msra.mxu1 %v5419_v24 }
 0x26b   : > { %v1669_v30 = vadd.f32 %v1668_v38, %v6798_v40 }
 0x26c   : > { %v1949_v7 = vmax.f32 %v1667_v35, 0.0  ;;  %v2032_v35 = vld [vmem:[#allocation2 + $0x28] sm:$0xff] }
 0x26d   : > { %v1950_v42 = vmax.f32 %v1669_v30, 0.0  ;;  %v1672_v43 = vpop.f32.mrb[52].mxu0 }
 0x26e   : > { %v5423_v28 = vpack.c.bf16 %v1949_v7, %v1947_v27  ;;  %v1674_v46 = vpop.f32.mrb[53].mxu0  ;;  %v1673_v47 = vadd.f32 %v1672_v43, %v6822_v51 }
 0x26f   : > { %v5421_v25 = vpack.c.bf16 %v1950_v42, %v1948_v39  ;;  %v1675_v41 = vadd.f32 %v1674_v46, %v6822_v51  ;;  %v1303_v46 = vpop.permute.xlu0 %1302 }
 0x270   : > { %v1951_v49 = vmax.f32 %v1673_v47, 0.0  ;;  %v2036_v47 = vld [vmem:[#allocation2 + $0x48] sm:$0xff] }
 0x271   : > { %v1678_v48 = vpop.f32.mrb[54].mxu0  ;;  %5422 = vmatprep.subr.bf16.mxu1 %v5421_v25  ;;  %v1952_v26 = vmax.f32 %v1675_v41, 0.0 }
 0x272   : > { %v1679_v57 = vadd.f32 %v1678_v48, %v6820_v50  ;;  %v1680_v59 = vpop.f32.mrb[55].mxu0  ;;  %5424 = vmatpush1.bf16.msra.mxu1 %v5423_v28  ;;  %v2031_v28 = vld [vmem:[#allocation2 + $0x20] sm:$0xff]  ;;  %v1308_v48 = vpop.permute.xlu1 %1307 }
 0x273   : > { %v1681_v40 = vadd.f32 %v1680_v59, %v6820_v50 }
 0x274   : > { %v1953_v3 = vmax.f32 %v1679_v57, 0.0 }
 0x275   : > { %v1954_v58 = vmax.f32 %v1681_v40, 0.0  ;;  %v1684_v4 = vpop.f32.mrb[56].mxu0 }
 0x276   : > { %v5427_v10 = vpack.c.bf16 %v1953_v3, %v1951_v49  ;;  %v1686_v56 = vpop.f32.mrb[57].mxu0  ;;  %v1685_v54 = vadd.f32 %v1684_v4, %v6844_v61  ;;  %v2035_v3 = vld [vmem:[#allocation2 + $0x40] sm:$0xff] }
 0x277   : > { %v5425_v53 = vpack.c.bf16 %v1954_v58, %v1952_v26  ;;  %v1687_v51 = vadd.f32 %v1686_v56, %v6844_v61  ;;  %v2040_v58 = vld [vmem:[#allocation2 + $0x68] sm:$0xff] }
 0x278   : > { %v1955_v63 = vmax.f32 %v1685_v54, 0.0 }
 0x279   : > { %v1690_v37 = vpop.f32.mrb[58].mxu0  ;;  %5426 = vmatprep.subr.bf16.mxu1 %v5425_v53  ;;  %v1956_v36 = vmax.f32 %v1687_v51, 0.0 }
 0x27a   : > { %v1691_v55 = vadd.f32 %v1690_v37, %v6842_v60  ;;  %v1692_v62 = vpop.f32.mrb[59].mxu0  ;;  %5428 = vmatpush1.bf16.msra.mxu1 %v5427_v10 }
 0x27b   : > { %v1693_v50 = vadd.f32 %v1692_v62, %v6842_v60  ;;  %v1313_v62 = vpop.permute.xlu0 %1312 }
 0x27c   : > { %v1957_v8 = vmax.f32 %v1691_v55, 0.0  ;;  %v2039_v55 = vld [vmem:[#allocation2 + $0x60] sm:$0xff] }
 0x27d   : > { %v1958_v2 = vmax.f32 %v1693_v50, 0.0  ;;  %v1696_v5 = vpop.f32.mrb[60].mxu0 }
 0x27e   : > { %v5431_v6 = vpack.c.bf16 %v1957_v8, %v1955_v63  ;;  %v1698_v17 = vpop.f32.mrb[61].mxu0  ;;  %v1697_v29 = vadd.f32 %v1696_v5, %v1283_v21  ;;  %v2044_v63 = vld [vmem:[#allocation2 + $0x88] sm:$0xff] }
 0x27f   : > { %v5429_v9 = vpack.c.bf16 %v1958_v2, %v1956_v36  ;;  %v1699_v61 = vadd.f32 %v1698_v17, %v1283_v21  ;;  %v1318_v36 = vpop.permute.xlu1 %1317  ;;  %v2043_v21 = vld [vmem:[#allocation2 + $0x80] sm:$0xff] }
 0x280   : > { %v1959_v15 = vmax.f32 %v1697_v29, 0.0  ;;  %v2048_v29 = vld [vmem:[#allocation2 + $0xa8] sm:$0xff] }
 0x281   : > { %v1702_v1 = vpop.f32.mrb[62].mxu0  ;;  %5430 = vmatprep.subr.bf16.mxu1 %v5429_v9  ;;  %v1960_v13 = vmax.f32 %v1699_v61, 0.0 }
 0x282   : > { %v1703_v12 = vadd.f32 %v1702_v1, %v1288_v11  ;;  %v1704_v45 = vpop.f32.mrb[63].mxu0  ;;  %5432 = vmatpush1.bf16.msra.mxu1 %v5431_v6 }
 0x283   : > { %v1705_v16 = vadd.f32 %v1704_v45, %v1288_v11 }
 0x284   : > { %v1961_v60 = vmax.f32 %v1703_v12, 0.0 }
 0x285   : > { %v1962_v18 = vmax.f32 %v1705_v16, 0.0  ;;  %v1708_v44 = vpop.f32.mrb[64].mxu0 }
 0x286   : > { %v5435_v14 = vpack.c.bf16 %v1961_v60, %v1959_v15  ;;  %v1710_v19 = vpop.f32.mrb[65].mxu0  ;;  %v1709_v0 = vadd.f32 %v1708_v44, %v1293_v20  ;;  %v2047_v60 = vld [vmem:[#allocation2 + $0xa0] sm:$0xff]  ;;  %v2052_v44 = vld [vmem:[#allocation2 + $0xc8] sm:$0xff] }
 0x287   : > { %v5433_v22 = vpack.c.bf16 %v1962_v18, %v1960_v13  ;;  %v1711_v24 = vadd.f32 %v1710_v19, %v1293_v20  ;;  %v1323_v13 = vpop.permute.xlu0 %1322  ;;  %v1328_v19 = vpop.permute.xlu1 %1327 }
 0x288   : > { %v1963_v38 = vmax.f32 %v1709_v0, 0.0 }
 0x289   : > { %v1714_v32 = vpop.f32.mrb[66].mxu0  ;;  %5434 = vmatprep.subr.bf16.mxu1 %v5433_v22  ;;  %v1964_v27 = vmax.f32 %v1711_v24, 0.0  ;;  %v2051_v24 = vld [vmem:[#allocation2 + $0xc0] sm:$0xff] }
 0x28a   : > { %v1715_v33 = vadd.f32 %v1714_v32, %v1298_v23  ;;  %v1716_v34 = vpop.f32.mrb[67].mxu0  ;;  %5436 = vmatpush1.bf16.msra.mxu1 %v5435_v14 }
 0x28b   : > { %v1717_v52 = vadd.f32 %v1716_v34, %v1298_v23 }
 0x28c   : > { %v1965_v30 = vmax.f32 %v1715_v33, 0.0  ;;  %v2056_v33 = vld [vmem:[#allocation2 + $0xe8] sm:$0xff] }
 0x28d   : > { %v1966_v7 = vmax.f32 %v1717_v52, 0.0  ;;  %v1720_v39 = vpop.f32.mrb[68].mxu0  ;;  %2732 = vmatmul.mubr.f32.vlgmr.msra.gmra.mrb[0].mxu1 %v2027_v31 }
 0x28e   : > { %v5439_v42 = vpack.c.bf16 %v1965_v30, %v1963_v38  ;;  %v1722_v43 = vpop.f32.mrb[69].mxu0  ;;  %2737 = vmatprep.mubr.f32.mxu1 %v2032_v35  ;;  %v1721_v41 = vadd.f32 %v1720_v39, %v1303_v46  ;;  %v1333_v39 = vpop.permute.xlu0 %1332 }
 0x28f   : > { %v5437_v25 = vpack.c.bf16 %v1966_v7, %v1964_v27  ;;  %v1723_v57 = vadd.f32 %v1722_v43, %v1303_v46  ;;  %v2055_v7 = vld [vmem:[#allocation2 + $0xe0] sm:$0xff]  ;;  %v2060_v43 = vld [vmem:[#allocation2 + $0x108] sm:$0xff]  ;;  %v1338_v46 = vpop.permute.xlu1 %1337 }
 0x290   : > { %v1967_v4 = vmax.f32 %v1721_v41, 0.0 }
 0x291   : > { %v1726_v59 = vpop.f32.mrb[70].mxu0  ;;  %2738 = vmatmul.mubr.f32.gmra.mrb[2].mxu1 %v2031_v28  ;;  %5438 = vmatprep.subr.bf16.mxu1 %v5437_v25  ;;  %v1968_v56 = vmax.f32 %v1723_v57, 0.0  ;;  %v2059_v57 = vld [vmem:[#allocation2 + $0x100] sm:$0xff] }
 0x292   : > { %v1727_v40 = vadd.f32 %v1726_v59, %v1308_v48  ;;  %v1728_v49 = vpop.f32.mrb[71].mxu0  ;;  %5440 = vmatpush1.bf16.msra.mxu1 %v5439_v42  ;;  %2743 = vmatprep.mubr.f32.mxu1 %v2036_v47 }
 0x293   : > { %v1729_v26 = vadd.f32 %v1728_v49, %v1308_v48 }
 0x294   : > { %v1969_v10 = vmax.f32 %v1727_v40, 0.0  ;;  %v2064_v40 = vld [vmem:[#allocation2 + $0x128] sm:$0xff] }
 0x295   : > { %v1970_v53 = vmax.f32 %v1729_v26, 0.0  ;;  %v1732_v54 = vpop.f32.mrb[72].mxu0  ;;  %2744 = vmatmul.mubr.f32.gmra.mrb[4].mxu1 %v2035_v3 }
 0x296   : > { %v5443_v51 = vpack.c.bf16 %v1969_v10, %v1967_v4  ;;  %v1734_v37 = vpop.f32.mrb[73].mxu0  ;;  %2749 = vmatprep.mubr.f32.mxu1 %v2040_v58  ;;  %v1733_v8 = vadd.f32 %v1732_v54, %v1313_v62  ;;  %v1343_v54 = vpop.permute.xlu0 %1342 }
 0x297   : > { %v5441_v50 = vpack.c.bf16 %v1970_v53, %v1968_v56  ;;  %v1735_v2 = vadd.f32 %v1734_v37, %v1313_v62  ;;  %v2063_v53 = vld [vmem:[#allocation2 + $0x120] sm:$0xff]  ;;  %v2068_v37 = vld [vmem:[#allocation2 + $0x148] sm:$0xff]  ;;  %v1348_v62 = vpop.permute.xlu1 %1347 }
 0x298   : > { %v1971_v11 = vmax.f32 %v1733_v8, 0.0 }
 0x299   : > { %v1738_v5 = vpop.f32.mrb[74].mxu0  ;;  %2750 = vmatmul.mubr.f32.gmra.mrb[6].mxu1 %v2039_v55  ;;  %5442 = vmatprep.subr.bf16.mxu1 %v5441_v50  ;;  %v1972_v1 = vmax.f32 %v1735_v2, 0.0  ;;  %v2067_v2 = vld [vmem:[#allocation2 + $0x140] sm:$0xff] }
 0x29a   : > { %v1739_v6 = vadd.f32 %v1738_v5, %v1318_v36  ;;  %v1740_v17 = vpop.f32.mrb[75].mxu0  ;;  %5444 = vmatpush1.bf16.msra.mxu1 %v5443_v51  ;;  %2755 = vmatprep.mubr.f32.mxu1 %v2044_v63 }
 0x29b   : > { %v1741_v9 = vadd.f32 %v1740_v17, %v1318_v36 }
 0x29c   : > { %v1973_v61 = vmax.f32 %v1739_v6, 0.0  ;;  %v2072_v6 = vld [vmem:[#allocation2 + $0x168] sm:$0xff] }
 0x29d   : > { %v1974_v12 = vmax.f32 %v1741_v9, 0.0  ;;  %v1744_v45 = vpop.f32.mrb[76].mxu0  ;;  %2756 = vmatmul.mubr.f32.gmra.mrb[8].mxu1 %v2043_v21 }
 0x29e   : > { %v5447_v16 = vpack.c.bf16 %v1973_v61, %v1971_v11  ;;  %v1746_v15 = vpop.f32.mrb[77].mxu0  ;;  %2761 = vmatprep.mubr.f32.mxu1 %v2048_v29  ;;  %v1745_v14 = vadd.f32 %v1744_v45, %v1323_v13  ;;  %v1353_v45 = vpop.permute.xlu0 %1352 }
 0x29f   : > { %v5445_v18 = vpack.c.bf16 %v1974_v12, %v1972_v1  ;;  %v1747_v20 = vadd.f32 %v1746_v15, %v1323_v13  ;;  %v2071_v12 = vld [vmem:[#allocation2 + $0x160] sm:$0xff]  ;;  %v2076_v15 = vld [vmem:[#allocation2 + $0x188] sm:$0xff]  ;;  %v1358_v13 = vpop.permute.xlu1 %1357 }
 0x2a0   : > { %v1975_v34 = vmax.f32 %v1745_v14, 0.0 }
 0x2a1   : > { %v1750_v22 = vpop.f32.mrb[78].mxu0  ;;  %2762 = vmatmul.mubr.f32.gmra.mrb[10].mxu1 %v2047_v60  ;;  %5446 = vmatprep.subr.bf16.mxu1 %v5445_v18  ;;  %v1976_v52 = vmax.f32 %v1747_v20, 0.0  ;;  %v2075_v20 = vld [vmem:[#allocation2 + $0x180] sm:$0xff] }
 0x2a2   : > { %v1751_v0 = vadd.f32 %v1750_v22, %v1328_v19  ;;  %v1752_v23 = vpop.f32.mrb[79].mxu0  ;;  %5448 = vmatpush1.bf16.msra.mxu1 %v5447_v16  ;;  %2767 = vmatprep.mubr.f32.mxu1 %v2052_v44 }
 0x2a3   : > { %v1753_v32 = vadd.f32 %v1752_v23, %v1328_v19 }
 0x2a4   : > { %v1977_v31 = vmax.f32 %v1751_v0, 0.0  ;;  %v2080_v0 = vld [vmem:[#allocation2 + $0x1a8] sm:$0xff] }
 0x2a5   : > { %v1978_v35 = vmax.f32 %v1753_v32, 0.0  ;;  %v1756_v38 = vpop.f32.mrb[80].mxu0  ;;  %2768 = vmatmul.mubr.f32.gmra.mrb[12].mxu1 %v2051_v24 }
 0x2a6   : > { %v5451_v30 = vpack.c.bf16 %v1977_v31, %v1975_v34  ;;  %v1758_v27 = vpop.f32.mrb[81].mxu0  ;;  %2773 = vmatprep.mubr.f32.mxu1 %v2056_v33  ;;  %v1757_v28 = vadd.f32 %v1756_v38, %v1333_v39  ;;  %v1363_v38 = vpop.permute.xlu0 %1362 }
 0x2a7   : > { %v5449_v42 = vpack.c.bf16 %v1978_v35, %v1976_v52  ;;  %v1759_v25 = vadd.f32 %v1758_v27, %v1333_v39  ;;  %v2079_v35 = vld [vmem:[#allocation2 + $0x1a0] sm:$0xff]  ;;  %v2084_v27 = vld [vmem:[#allocation2 + $0x1c8] sm:$0xff]  ;;  %v1368_v39 = vpop.permute.xlu1 %1367 }
 0x2a8   : > { %v1979_v49 = vmax.f32 %v1757_v28, 0.0 }
 0x2a9   : > { %v1762_v47 = vpop.f32.mrb[82].mxu0  ;;  %2774 = vmatmul.mubr.f32.gmra.mrb[14].mxu1 %v2055_v7  ;;  %5450 = vmatprep.subr.bf16.mxu1 %v5449_v42  ;;  %v1980_v26 = vmax.f32 %v1759_v25, 0.0  ;;  %v2083_v25 = vld [vmem:[#allocation2 + $0x1c0] sm:$0xff] }
 0x2aa   : > { %v1763_v41 = vadd.f32 %v1762_v47, %v1338_v46  ;;  %v1764_v48 = vpop.f32.mrb[83].mxu0  ;;  %5452 = vmatpush1.bf16.msra.mxu1 %v5451_v30  ;;  %2779 = vmatprep.mubr.f32.mxu1 %v2060_v43 }
 0x2ab   : > { %v1765_v59 = vadd.f32 %v1764_v48, %v1338_v46 }
 0x2ac   : > { %v1981_v3 = vmax.f32 %v1763_v41, 0.0  ;;  %v2088_v41 = vld [vmem:[#allocation2 + $0x1e8] sm:$0xff] }
 0x2ad   : > { %v1982_v58 = vmax.f32 %v1765_v59, 0.0  ;;  %v1768_v4 = vpop.f32.mrb[84].mxu0  ;;  %2780 = vmatmul.mubr.f32.gmra.mrb[16].mxu1 %v2059_v57 }
 0x2ae   : > { %v5455_v10 = vpack.c.bf16 %v1981_v3, %v1979_v49  ;;  %v1770_v56 = vpop.f32.mrb[85].mxu0  ;;  %2785 = vmatprep.mubr.f32.mxu1 %v2064_v40  ;;  %v1769_v55 = vadd.f32 %v1768_v4, %v1343_v54  ;;  %v1373_v4 = vpop.permute.xlu0 %1372 }
 0x2af   : > { %v5453_v51 = vpack.c.bf16 %v1982_v58, %v1980_v26  ;;  %v1771_v50 = vadd.f32 %v1770_v56, %v1343_v54  ;;  %v2087_v58 = vld [vmem:[#allocation2 + $0x1e0] sm:$0xff]  ;;  %v2092_v56 = vld [vmem:[#allocation2 + $0x208] sm:$0xff]  ;;  %v1378_v54 = vpop.permute.xlu1 %1377 }
 0x2b0   : > { %v1983_v17 = vmax.f32 %v1769_v55, 0.0 }
 0x2b1   : > { %v1774_v63 = vpop.f32.mrb[86].mxu0  ;;  %2786 = vmatmul.mubr.f32.gmra.mrb[18].mxu1 %v2063_v53  ;;  %5454 = vmatprep.subr.bf16.mxu1 %v5453_v51  ;;  %v1984_v9 = vmax.f32 %v1771_v50, 0.0  ;;  %v2091_v50 = vld [vmem:[#allocation2 + $0x200] sm:$0xff] }
 0x2b2   : > { %v1775_v8 = vadd.f32 %v1774_v63, %v1348_v62  ;;  %v1776_v36 = vpop.f32.mrb[87].mxu0  ;;  %5456 = vmatpush1.bf16.msra.mxu1 %v5455_v10  ;;  %2791 = vmatprep.mubr.f32.mxu1 %v2068_v37 }
 0x2b3   : > { %v1777_v5 = vadd.f32 %v1776_v36, %v1348_v62 }
 0x2b4   : > { %v1985_v21 = vmax.f32 %v1775_v8, 0.0  ;;  %v2096_v8 = vld [vmem:[#allocation2 + $0x228] sm:$0xff] }
 0x2b5   : > { %v1986_v29 = vmax.f32 %v1777_v5, 0.0  ;;  %v1780_v11 = vpop.f32.mrb[88].mxu0  ;;  %2792 = vmatmul.mubr.f32.gmra.mrb[20].mxu1 %v2067_v2 }
 0x2b6   : > { %v5459_v61 = vpack.c.bf16 %v1985_v21, %v1983_v17  ;;  %v1782_v1 = vpop.f32.mrb[89].mxu0  ;;  %2797 = vmatprep.mubr.f32.mxu1 %v2072_v6  ;;  %v1781_v60 = vadd.f32 %v1780_v11, %v1353_v45  ;;  %v1383_v11 = vpop.permute.xlu0 %1382 }
 0x2b7   : > { %v5457_v16 = vpack.c.bf16 %v1986_v29, %v1984_v9  ;;  %v1783_v18 = vadd.f32 %v1782_v1, %v1353_v45  ;;  %v2095_v29 = vld [vmem:[#allocation2 + $0x220] sm:$0xff]  ;;  %v2100_v1 = vld [vmem:[#allocation2 + $0x248] sm:$0xff]  ;;  %v1388_v45 = vpop.permute.xlu1 %1387 }
 0x2b8   : > { %v1987_v23 = vmax.f32 %v1781_v60, 0.0 }
 0x2b9   : > { %v1786_v44 = vpop.f32.mrb[90].mxu0  ;;  %2798 = vmatmul.mubr.f32.gmra.mrb[22].mxu1 %v2071_v12  ;;  %5458 = vmatprep.subr.bf16.mxu1 %v5457_v16  ;;  %v1988_v32 = vmax.f32 %v1783_v18, 0.0  ;;  %v2099_v18 = vld [vmem:[#allocation2 + $0x240] sm:$0xff] }
 0x2ba   : > { %v1787_v14 = vadd.f32 %v1786_v44, %v1358_v13  ;;  %v1788_v19 = vpop.f32.mrb[91].mxu0  ;;  %5460 = vmatpush1.bf16.msra.mxu1 %v5459_v61  ;;  %2803 = vmatprep.mubr.f32.mxu1 %v2076_v15 }
 0x2bb   : > { %v1789_v22 = vadd.f32 %v1788_v19, %v1358_v13 }
 0x2bc   : > { %v1989_v24 = vmax.f32 %v1787_v14, 0.0  ;;  %v2104_v14 = vld [vmem:[#allocation2 + $0x268] sm:$0xff] }
 0x2bd   : > { %v1990_v33 = vmax.f32 %v1789_v22, 0.0  ;;  %v1792_v34 = vpop.f32.mrb[92].mxu0  ;;  %2804 = vmatmul.mubr.f32.gmra.mrb[24].mxu1 %v2075_v20 }
 0x2be   : > { %v5463_v31 = vpack.c.bf16 %v1989_v24, %v1987_v23  ;;  %v1794_v52 = vpop.f32.mrb[93].mxu0  ;;  %2809 = vmatprep.mubr.f32.mxu1 %v2080_v0  ;;  %v1793_v7 = vadd.f32 %v1792_v34, %v1363_v38  ;;  %v1393_v34 = vpop.permute.xlu0 %1392 }
 0x2bf   : > { %v5461_v30 = vpack.c.bf16 %v1990_v33, %v1988_v32  ;;  %v1795_v42 = vadd.f32 %v1794_v52, %v1363_v38  ;;  %v2103_v33 = vld [vmem:[#allocation2 + $0x260] sm:$0xff]  ;;  %v2108_v52 = vld [vmem:[#allocation2 + $0x288] sm:$0xff]  ;;  %v1398_v38 = vpop.permute.xlu1 %1397 }
 0x2c0   : > { %v1991_v48 = vmax.f32 %v1793_v7, 0.0 }
 0x2c1   : > { %v1798_v43 = vpop.f32.mrb[94].mxu0  ;;  %2810 = vmatmul.mubr.f32.gmra.mrb[26].mxu1 %v2079_v35  ;;  %5462 = vmatprep.subr.bf16.mxu1 %v5461_v30  ;;  %v1992_v59 = vmax.f32 %v1795_v42, 0.0  ;;  %v2107_v42 = vld [vmem:[#allocation2 + $0x280] sm:$0xff] }
 0x2c2   : > { %v1799_v28 = vadd.f32 %v1798_v43, %v1368_v39  ;;  %v1800_v46 = vpop.f32.mrb[95].mxu0  ;;  %5464 = vmatpush1.bf16.msra.mxu1 %v5463_v31  ;;  %2815 = vmatprep.mubr.f32.mxu1 %v2084_v27 }
 0x2c3   : > { %v1801_v47 = vadd.f32 %v1800_v46, %v1368_v39 }
 0x2c4   : > { %v1993_v57 = vmax.f32 %v1799_v28, 0.0  ;;  %v2112_v28 = vld [vmem:[#allocation2 + $0x2a8] sm:$0xff] }
 0x2c5   : > { %v1994_v40 = vmax.f32 %v1801_v47, 0.0  ;;  %v1804_v49 = vpop.f32.mrb[96].mxu0  ;;  %2816 = vmatmul.mubr.f32.gmra.mrb[28].mxu1 %v2083_v25 }
 0x2c6   : > { %v5467_v3 = vpack.c.bf16 %v1993_v57, %v1991_v48  ;;  %v1806_v26 = vpop.f32.mrb[97].mxu0  ;;  %2821 = vmatprep.mubr.f32.mxu1 %v2088_v41  ;;  %v1805_v53 = vadd.f32 %v1804_v49, %v1373_v4  ;;  %v1403_v49 = vpop.permute.xlu0 %1402 }
 0x2c7   : > { %v5465_v10 = vpack.c.bf16 %v1994_v40, %v1992_v59  ;;  %v1807_v51 = vadd.f32 %v1806_v26, %v1373_v4  ;;  %v2111_v40 = vld [vmem:[#allocation2 + $0x2a0] sm:$0xff]  ;;  %v2116_v26 = vld [vmem:[#allocation2 + $0x2c8] sm:$0xff]  ;;  %v1408_v4 = vpop.permute.xlu1 %1407 }
 0x2c8   : > { %v1995_v36 = vmax.f32 %v1805_v53, 0.0 }
 0x2c9   : > { %v1810_v37 = vpop.f32.mrb[98].mxu0  ;;  %2822 = vmatmul.mubr.f32.gmra.mrb[30].mxu1 %v2087_v58  ;;  %5466 = vmatprep.subr.bf16.mxu1 %v5465_v10  ;;  %v1996_v5 = vmax.f32 %v1807_v51, 0.0  ;;  %v2115_v51 = vld [vmem:[#allocation2 + $0x2c0] sm:$0xff] }
 0x2ca   : > { %v1811_v55 = vadd.f32 %v1810_v37, %v1378_v54  ;;  %v1812_v62 = vpop.f32.mrb[99].mxu0  ;;  %5468 = vmatpush1.bf16.msra.mxu1 %v5467_v3  ;;  %2827 = vmatprep.mubr.f32.mxu1 %v2092_v56 }
 0x2cb   : > { %v1813_v63 = vadd.f32 %v1812_v62, %v1378_v54 }
 0x2cc   : > { %v1997_v2 = vmax.f32 %v1811_v55, 0.0  ;;  %v2120_v55 = vld [vmem:[#allocation2 + $0x2e8] sm:$0xff] }
 0x2cd   : > { %v1998_v6 = vmax.f32 %v1813_v63, 0.0  ;;  %v1816_v17 = vpop.f32.mrb[100].mxu0  ;;  %2828 = vmatmul.mubr.f32.gmra.mrb[32].mxu1 %v2091_v50 }
 0x2ce   : > { %v5471_v21 = vpack.c.bf16 %v1997_v2, %v1995_v36  ;;  %v1818_v9 = vpop.f32.mrb[101].mxu0  ;;  %2833 = vmatprep.mubr.f32.mxu1 %v2096_v8  ;;  %v1817_v12 = vadd.f32 %v1816_v17, %v1383_v11  ;;  %v1413_v17 = vpop.permute.xlu0 %1412 }
 0x2cf   : > { %v5469_v61 = vpack.c.bf16 %v1998_v6, %v1996_v5  ;;  %v1819_v16 = vadd.f32 %v1818_v9, %v1383_v11  ;;  %v2119_v6 = vld [vmem:[#allocation2 + $0x2e0] sm:$0xff]  ;;  %v2124_v9 = vld [vmem:[#allocation2 + $0x308] sm:$0xff]  ;;  %v1418_v11 = vpop.permute.xlu1 %1417 }
 0x2d0   : > { %v1999_v19 = vmax.f32 %v1817_v12, 0.0  ;;  %v3694_v12 = vld [vmem:[%s7282_s7 + $0x8] sm:$0xff] }
 0x2d1   : > { %v1822_v15 = vpop.f32.mrb[102].mxu0  ;;  %2834 = vmatmul.mubr.f32.gmra.mrb[34].mxu1 %v2095_v29  ;;  %5470 = vmatprep.subr.bf16.mxu1 %v5469_v61  ;;  %v2000_v22 = vmax.f32 %v1819_v16, 0.0 }
 0x2d2   : > { %v1823_v60 = vadd.f32 %v1822_v15, %v1388_v45  ;;  %v1824_v13 = vpop.f32.mrb[103].mxu0  ;;  %5472 = vmatpush1.bf16.msra.mxu1 %v5471_v21  ;;  %2839 = vmatprep.mubr.f32.mxu1 %v2100_v1  ;;  %v2123_v15 = vld [vmem:[#allocation2 + $0x300] sm:$0xff] }
 0x2d3   : > { %v1825_v44 = vadd.f32 %v1824_v13, %v1388_v45  ;;  %3725 = vmatprep.subr.mxu0 %v3694_v12  ;;  %v2147_v12 = vld [vmem:[#allocation2 + $0x3c0] sm:$0xff] }
 0x2d4   : > { %v2001_v20 = vmax.f32 %v1823_v60, 0.0  ;;  %v3693_v60 = vld [vmem:[%s7282_s7] sm:$0xff] }
 0x2d5   : > { %v2002_v0 = vmax.f32 %v1825_v44, 0.0  ;;  %v1828_v23 = vpop.f32.mrb[104].mxu0  ;;  %2840 = vmatmul.mubr.f32.gmra.mrb[36].mxu1 %v2099_v18  ;;  %v2128_v18 = vld [vmem:[#allocation2 + $0x328] sm:$0xff]  ;;  %3726 = vmatpush1.xpose.msra.mxu0 %v3693_v60 }
 0x2d6   : > { %v5475_v24 = vpack.c.bf16 %v2001_v20, %v1999_v19  ;;  %v1830_v32 = vpop.f32.mrb[105].mxu0  ;;  %2845 = vmatprep.mubr.f32.mxu1 %v2104_v14  ;;  %v1829_v35 = vadd.f32 %v1828_v23, %v1393_v34 }
 0x2d7   : > { %v5473_v31 = vpack.c.bf16 %v2002_v0, %v2000_v22  ;;  %v1831_v30 = vadd.f32 %v1830_v32, %v1393_v34  ;;  %v1423_v32 = vpop.permute.xlu0 %1422  ;;  %v2132_v34 = vld [vmem:[#allocation2 + $0x348] sm:$0xff] }
 0x2d8   : > { %v2003_v46 = vmax.f32 %v1829_v35, 0.0 }
 0x2d9   : > { %v1834_v27 = vpop.f32.mrb[106].mxu0  ;;  %2846 = vmatmul.mubr.f32.gmra.mrb[38].mxu1 %v2103_v33  ;;  %5474 = vmatprep.subr.bf16.mxu1 %v5473_v31  ;;  %v2004_v47 = vmax.f32 %v1831_v30, 0.0 }
 0x2da   : > { %v1835_v7 = vadd.f32 %v1834_v27, %v1398_v38  ;;  %v1836_v39 = vpop.f32.mrb[107].mxu0  ;;  %5476 = vmatpush1.bf16.msra.mxu1 %v5475_v24  ;;  %2851 = vmatprep.mubr.f32.mxu1 %v2108_v52  ;;  %v2127_v24 = vld [vmem:[#allocation2 + $0x320] sm:$0xff]  ;;  %v1428_v52 = vpop.permute.xlu1 %1427 }
 0x2db   : > { %v1837_v43 = vadd.f32 %v1836_v39, %v1398_v38 }
 0x2dc   : > { %v2005_v25 = vmax.f32 %v1835_v7, 0.0  ;;  %v2131_v7 = vld [vmem:[#allocation2 + $0x340] sm:$0xff] }
 0x2dd   : > { %v2006_v41 = vmax.f32 %v1837_v43, 0.0  ;;  %v1840_v48 = vpop.f32.mrb[108].mxu0  ;;  %2852 = vmatmul.mubr.f32.gmra.mrb[40].mxu1 %v2107_v42  ;;  %v2136_v42 = vld [vmem:[#allocation2 + $0x368] sm:$0xff] }
 0x2de   : > { %v5479_v57 = vpack.c.bf16 %v2005_v25, %v2003_v46  ;;  %v1842_v59 = vpop.f32.mrb[109].mxu0  ;;  %2857 = vmatprep.mubr.f32.mxu1 %v2112_v28  ;;  %v1841_v58 = vadd.f32 %v1840_v48, %v1403_v49 }
 0x2df   : > { %v5477_v3 = vpack.c.bf16 %v2006_v41, %v2004_v47  ;;  %v1843_v10 = vadd.f32 %v1842_v59, %v1403_v49  ;;  %v1433_v59 = vpop.permute.xlu0 %1432  ;;  %v2140_v49 = vld [vmem:[#allocation2 + $0x388] sm:$0xff] }
 0x2e0   : > { %v2007_v62 = vmax.f32 %v1841_v58, 0.0 }
 0x2e1   : > { %v1846_v56 = vpop.f32.mrb[110].mxu0  ;;  %2858 = vmatmul.mubr.f32.gmra.mrb[42].mxu1 %v2111_v40  ;;  %5478 = vmatprep.subr.bf16.mxu1 %v5477_v3  ;;  %v2008_v63 = vmax.f32 %v1843_v10, 0.0 }
 0x2e2   : > { %v1847_v53 = vadd.f32 %v1846_v56, %v1408_v4  ;;  %v1848_v54 = vpop.f32.mrb[111].mxu0  ;;  %5480 = vmatpush1.bf16.msra.mxu1 %v5479_v57  ;;  %2863 = vmatprep.mubr.f32.mxu1 %v2116_v26  ;;  %v2135_v57 = vld [vmem:[#allocation2 + $0x360] sm:$0xff]  ;;  %v1438_v26 = vpop.permute.xlu1 %1437 }
 0x2e3   : > { %v1849_v37 = vadd.f32 %v1848_v54, %v1408_v4 }
 0x2e4   : > { %v2009_v50 = vmax.f32 %v1847_v53, 0.0  ;;  %v2139_v53 = vld [vmem:[#allocation2 + $0x380] sm:$0xff] }
 0x2e5   : > { %v2010_v8 = vmax.f32 %v1849_v37, 0.0  ;;  %v1852_v36 = vpop.f32.mrb[112].mxu0  ;;  %2864 = vmatmul.mubr.f32.gmra.mrb[44].mxu1 %v2115_v51  ;;  %v2144_v51 = vld [vmem:[#allocation2 + $0x3a8] sm:$0xff] }
 0x2e6   : > { %v5483_v2 = vpack.c.bf16 %v2009_v50, %v2007_v62  ;;  %v1854_v5 = vpop.f32.mrb[113].mxu0  ;;  %2869 = vmatprep.mubr.f32.mxu1 %v2120_v55  ;;  %v1853_v29 = vadd.f32 %v1852_v36, %v1413_v17 }
 0x2e7   : > { %v5481_v21 = vpack.c.bf16 %v2010_v8, %v2008_v63  ;;  %v1855_v61 = vadd.f32 %v1854_v5, %v1413_v17  ;;  %v1443_v5 = vpop.permute.xlu0 %1442  ;;  %v2148_v17 = vld [vmem:[#allocation2 + $0x3c8] sm:$0xff] }
 0x2e8   : > { %v2011_v44 = vmax.f32 %v1853_v29, 0.0 }
 0x2e9   : > { %v1858_v1 = vpop.f32.mrb[114].mxu0  ;;  %2870 = vmatmul.mubr.f32.gmra.mrb[46].mxu1 %v2119_v6  ;;  %5482 = vmatprep.subr.bf16.mxu1 %v5481_v21  ;;  %v2012_v19 = vmax.f32 %v1855_v61, 0.0 }
 0x2ea   : > { %v1859_v45 = vadd.f32 %v1858_v1, %v1418_v11  ;;  %v1860_v16 = vpop.f32.mrb[115].mxu0  ;;  %5484 = vmatpush1.bf16.msra.mxu1 %v5483_v2  ;;  %2875 = vmatprep.mubr.f32.mxu1 %v2124_v9  ;;  %v2143_v2 = vld [vmem:[#allocation2 + $0x3a0] sm:$0xff]  ;;  %v1448_v9 = vpop.permute.xlu1 %1447 }
 0x2eb   : > { %v1861_v13 = vadd.f32 %v1860_v16, %v1418_v11  ;;  %v2152_v16 = vld [vmem:[#allocation2 + $0x3e8] sm:$0xff] }
 0x2ec   : > { %v2013_v14 = vmax.f32 %v1859_v45, 0.0 }
 0x2ed   : > { %v2014_v20 = vmax.f32 %v1861_v13, 0.0  ;;  %v1864_v22 = vpop.f32.mrb[116].mxu0  ;;  %2876 = vmatmul.mubr.f32.gmra.mrb[48].mxu1 %v2123_v15 }
 0x2ee   : > { %v5487_v0 = vpack.c.bf16 %v2013_v14, %v2011_v44  ;;  %v1866_v23 = vpop.f32.mrb[117].mxu0  ;;  %2881 = vmatprep.mubr.f32.mxu1 %v2128_v18  ;;  %v1865_v31 = vadd.f32 %v1864_v22, %v1423_v32  ;;  %v2151_v14 = vld [vmem:[#allocation2 + $0x3e0] sm:$0xff] }
 0x2ef   : > { %v5485_v33 = vpack.c.bf16 %v2014_v20, %v2012_v19  ;;  %v1867_v35 = vadd.f32 %v1866_v23, %v1423_v32  ;;  %v2156_v20 = vld [vmem:[#allocation2 + $0x408] sm:$0xff]  ;;  %v2155_v22 = vld [vmem:[#allocation2 + $0x400] sm:$0xff] }
 0x2f0   : > { %v2015_v43 = vmax.f32 %v1865_v31, 0.0  ;;  %v2159_v23 = vld [vmem:[#allocation2 + $0x420] sm:$0xff]  ;;  %v2172_v31 = vld [vmem:[#allocation2 + $0x488] sm:$0xff] }
 0x2f1   : > { %v1870_v38 = vpop.f32.mrb[118].mxu0  ;;  %2882 = vmatmul.mubr.f32.gmra.mrb[50].mxu1 %v2127_v24  ;;  %5486 = vmatprep.subr.bf16.mxu1 %v5485_v33  ;;  %v2016_v46 = vmax.f32 %v1867_v35, 0.0  ;;  %v2164_v24 = vld [vmem:[#allocation2 + $0x448] sm:$0xff]  ;;  %v2163_v32 = vld [vmem:[#allocation2 + $0x440] sm:$0xff] }
 0x2f2   : > { %v1871_v30 = vadd.f32 %v1870_v38, %v1428_v52  ;;  %v1872_v27 = vpop.f32.mrb[119].mxu0  ;;  %5488 = vmatpush1.bf16.msra.mxu1 %v5487_v0  ;;  %2887 = vmatprep.mubr.f32.mxu1 %v2132_v34  ;;  %v2160_v0 = vld [vmem:[#allocation2 + $0x428] sm:$0xff]  ;;  %v2167_v34 = vld [vmem:[#allocation2 + $0x460] sm:$0xff] }
 0x2f3   : > { %v1873_v39 = vadd.f32 %v1872_v27, %v1428_v52  ;;  %v2168_v33 = vld [vmem:[#allocation2 + $0x468] sm:$0xff]  ;;  %v2171_v52 = vld [vmem:[#allocation2 + $0x480] sm:$0xff] }
 0x2f4   : > { %v2017_v28 = vmax.f32 %v1871_v30, 0.0  ;;  %v2176_v35 = vld [vmem:[#allocation2 + $0x4a8] sm:$0xff]  ;;  %v2175_v38 = vld [vmem:[#allocation2 + $0x4a0] sm:$0xff] }
 0x2f5   : > { %v2018_v25 = vmax.f32 %v1873_v39, 0.0  ;;  %v1876_v47 = vpop.f32.mrb[120].mxu0  ;;  %2888 = vmatmul.mubr.f32.gmra.mrb[52].mxu1 %v2131_v7  ;;  %v2180_v30 = vld [vmem:[#allocation2 + $0x4c8] sm:$0xff]  ;;  %v2179_v27 = vld [vmem:[#allocation2 + $0x4c0] sm:$0xff] }
 0x2f6   : > { %v5491_v41 = vpack.c.bf16 %v2017_v28, %v2015_v43  ;;  %v1878_v48 = vpop.f32.mrb[121].mxu0  ;;  %2893 = vmatprep.mubr.f32.mxu1 %v2136_v42  ;;  %v1877_v3 = vadd.f32 %v1876_v47, %v1433_v59  ;;  %v2184_v7 = vld [vmem:[#allocation2 + $0x4e8] sm:$0xff]  ;;  %v2183_v39 = vld [vmem:[#allocation2 + $0x4e0] sm:$0xff] }
 0x2f7   : > { %v5489_v40 = vpack.c.bf16 %v2018_v25, %v2016_v46  ;;  %v1879_v58 = vadd.f32 %v1878_v48, %v1433_v59  ;;  %v2188_v42 = vld [vmem:[#allocation2 + $0x508] sm:$0xff]  ;;  %v2187_v43 = vld [vmem:[#allocation2 + $0x500] sm:$0xff] }
 0x2f8   : > { %v2019_v37 = vmax.f32 %v1877_v3, 0.0  ;;  %v2192_v28 = vld [vmem:[#allocation2 + $0x528] sm:$0xff]  ;;  %v2191_v46 = vld [vmem:[#allocation2 + $0x520] sm:$0xff] }
 0x2f9   : > { %v1882_v4 = vpop.f32.mrb[122].mxu0  ;;  %2894 = vmatmul.mubr.f32.gmra.mrb[54].mxu1 %v2135_v57  ;;  %5490 = vmatprep.subr.bf16.mxu1 %v5489_v40  ;;  %v2020_v62 = vmax.f32 %v1879_v58, 0.0  ;;  %v2196_v25 = vld [vmem:[#allocation2 + $0x548] sm:$0xff]  ;;  %v2195_v47 = vld [vmem:[#allocation2 + $0x540] sm:$0xff] }
 0x2fa   : > { %v1883_v10 = vadd.f32 %v1882_v4, %v1438_v26  ;;  %v1884_v56 = vpop.f32.mrb[123].mxu0  ;;  %5492 = vmatpush1.bf16.msra.mxu1 %v5491_v41  ;;  %2899 = vmatprep.mubr.f32.mxu1 %v2140_v49  ;;  %v2200_v41 = vld [vmem:[#allocation2 + $0x568] sm:$0xff]  ;;  %v2199_v48 = vld [vmem:[#allocation2 + $0x560] sm:$0xff] }
 0x2fb   : > { %v1885_v54 = vadd.f32 %v1884_v56, %v1438_v26  ;;  %v2204_v57 = vld [vmem:[#allocation2 + $0x588] sm:$0xff]  ;;  %v2203_v59 = vld [vmem:[#allocation2 + $0x580] sm:$0xff] }
 0x2fc   : > { %v2021_v55 = vmax.f32 %v1883_v10, 0.0  ;;  %v2208_v40 = vld [vmem:[#allocation2 + $0x5a8] sm:$0xff]  ;;  %v2207_v49 = vld [vmem:[#allocation2 + $0x5a0] sm:$0xff] }
 0x2fd   : > { %v2022_v50 = vmax.f32 %v1885_v54, 0.0  ;;  %v1888_v63 = vpop.f32.mrb[124].mxu0  ;;  %2900 = vmatmul.mubr.f32.gmra.mrb[56].mxu1 %v2139_v53  ;;  %v2212_v3 = vld [vmem:[#allocation2 + $0x5c8] sm:$0xff]  ;;  %v2211_v26 = vld [vmem:[#allocation2 + $0x5c0] sm:$0xff] }
 0x2fe   : > { %v5495_v8 = vpack.c.bf16 %v2021_v55, %v2019_v37  ;;  %v1890_v36 = vpop.f32.mrb[125].mxu0  ;;  %2905 = vmatprep.mubr.f32.mxu1 %v2144_v51  ;;  %v1889_v21 = vadd.f32 %v1888_v63, %v1443_v5  ;;  %v2216_v58 = vld [vmem:[#allocation2 + $0x5e8] sm:$0xff]  ;;  %v2215_v4 = vld [vmem:[#allocation2 + $0x5e0] sm:$0xff] }
 0x2ff   : > { %v5493_v6 = vpack.c.bf16 %v2022_v50, %v2020_v62  ;;  %v1891_v29 = vadd.f32 %v1890_v36, %v1443_v5  ;;  %v2220_v10 = vld [vmem:[#allocation2 + $0x608] sm:$0xff]  ;;  %v2219_v56 = vld [vmem:[#allocation2 + $0x600] sm:$0xff] }
 0x300   : > { %v2023_v15 = vmax.f32 %v1889_v21, 0.0  ;;  %v2224_v53 = vld [vmem:[#allocation2 + $0x628] sm:$0xff]  ;;  %v2223_v54 = vld [vmem:[#allocation2 + $0x620] sm:$0xff] }
 0x301   : > { %v1894_v11 = vpop.f32.mrb[126].mxu0  ;;  %2906 = vmatmul.mubr.f32.gmra.mrb[58].mxu1 %v2143_v2  ;;  %5494 = vmatprep.subr.bf16.mxu1 %v5493_v6  ;;  %v2024_v13 = vmax.f32 %v1891_v29, 0.0  ;;  %v2228_v51 = vld [vmem:[#allocation2 + $0x648] sm:$0xff]  ;;  %v2227_v37 = vld [vmem:[#allocation2 + $0x640] sm:$0xff] }
 0x302   : > { %v1895_v61 = vadd.f32 %v1894_v11, %v1448_v9  ;;  %v1896_v1 = vpop.f32.mrb[127].mxu0  ;;  %5496 = vmatpush1.bf16.msra.mxu1 %v5495_v8  ;;  %2911 = vmatprep.mubr.f32.mxu1 %v2148_v17  ;;  %v2232_v55 = vld [vmem:[#allocation2 + $0x668] sm:$0xff]  ;;  %v2231_v62 = vld [vmem:[#allocation2 + $0x660] sm:$0xff] }
 0x303   : > { %v1897_v45 = vadd.f32 %v1896_v1, %v1448_v9  ;;  %v2236_v50 = vld [vmem:[#allocation2 + $0x688] sm:$0xff]  ;;  %v2235_v63 = vld [vmem:[#allocation2 + $0x680] sm:$0xff] }
 0x304   : > { %v2025_v60 = vmax.f32 %v1895_v61, 0.0  ;;  %v2240_v8 = vld [vmem:[#allocation2 + $0x6a8] sm:$0xff]  ;;  %v2239_v36 = vld [vmem:[#allocation2 + $0x6a0] sm:$0xff] }
 0x305   : > { %v2026_v18 = vmax.f32 %v1897_v45, 0.0  ;;  %2912 = vmatmul.mubr.f32.gmra.mrb[60].mxu1 %v2147_v12  ;;  %v2244_v2 = vld [vmem:[#allocation2 + $0x6c8] sm:$0xff]  ;;  %v2243_v5 = vld [vmem:[#allocation2 + $0x6c0] sm:$0xff] }
 0x306   : > { %v5499_v44 = vpack.c.bf16 %v2025_v60, %v2023_v15  ;;  %2917 = vmatprep.mubr.f32.mxu1 %v2152_v16  ;;  %v2248_v6 = vld [vmem:[#allocation2 + $0x6e8] sm:$0xff]  ;;  %v2247_v17 = vld [vmem:[#allocation2 + $0x6e0] sm:$0xff] }
 0x307   : > { %v5497_v19 = vpack.c.bf16 %v2026_v18, %v2024_v13  ;;  %v2252_v21 = vld [vmem:[#allocation2 + $0x708] sm:$0xff]  ;;  %v2251_v9 = vld [vmem:[#allocation2 + $0x700] sm:$0xff] }
 0x308   : > { %v2256_v29 = vld [vmem:[#allocation2 + $0x728] sm:$0xff]  ;;  %v2255_v11 = vld [vmem:[#allocation2 + $0x720] sm:$0xff] }
 0x309   : > { %2918 = vmatmul.mubr.f32.gmra.mrb[62].mxu1 %v2151_v14  ;;  %5498 = vmatprep.subr.bf16.mxu1 %v5497_v19  ;;  %v2260_v61 = vld [vmem:[#allocation2 + $0x748] sm:$0xff]  ;;  %v2259_v1 = vld [vmem:[#allocation2 + $0x740] sm:$0xff] }
 0x30a   : > { %5500 = vmatpush1.bf16.msra.mxu1 %v5499_v44  ;;  %2923 = vmatprep.mubr.f32.mxu1 %v2156_v20  ;;  %v2264_v12 = vld [vmem:[#allocation2 + $0x768] sm:$0xff]  ;;  %v2263_v45 = vld [vmem:[#allocation2 + $0x760] sm:$0xff]  ;;  %v2030_v20 = vld [vmem:[#allocation2 + $0x18] sm:$0xff] }
 0x30b   : > { %v2268_v16 = vld [vmem:[#allocation2 + $0x788] sm:$0xff]  ;;  %v2267_v15 = vld [vmem:[#allocation2 + $0x780] sm:$0xff] }
 0x30c   : > { %v2272_v60 = vld [vmem:[#allocation2 + $0x7a8] sm:$0xff]  ;;  %v2271_v13 = vld [vmem:[#allocation2 + $0x7a0] sm:$0xff] }
 0x30d   : > { %2924 = vmatmul.mubr.f32.gmra.mrb[64].mxu1 %v2155_v22  ;;  %v2276_v18 = vld [vmem:[#allocation2 + $0x7c8] sm:$0xff]  ;;  %v2275_v44 = vld [vmem:[#allocation2 + $0x7c0] sm:$0xff]  ;;  %v2029_v22 = vld [vmem:[#allocation2 + $0x10] sm:$0xff] }
 0x30e   : > { %2929 = vmatprep.mubr.f32.mxu1 %v2160_v0  ;;  %v2280_v14 = vld [vmem:[#allocation2 + $0x7e8] sm:$0xff]  ;;  %v2279_v19 = vld [vmem:[#allocation2 + $0x7e0] sm:$0xff]  ;;  %v2034_v0 = vld [vmem:[#allocation2 + $0x38] sm:$0xff] }
 0x311   : > { %2930 = vmatmul.mubr.f32.gmra.mrb[66].mxu1 %v2159_v23  ;;  %v2033_v23 = vld [vmem:[#allocation2 + $0x30] sm:$0xff] }
 0x312   : > { %2935 = vmatprep.mubr.f32.mxu1 %v2164_v24  ;;  %v2038_v24 = vld [vmem:[#allocation2 + $0x58] sm:$0xff] }
 0x315   : > { %2936 = vmatmul.mubr.f32.gmra.mrb[68].mxu1 %v2163_v32  ;;  %v2037_v32 = vld [vmem:[#allocation2 + $0x50] sm:$0xff] }
 0x316   : > { %2941 = vmatprep.mubr.f32.mxu1 %v2168_v33  ;;  %v2042_v33 = vld [vmem:[#allocation2 + $0x78] sm:$0xff] }
 0x319   : > { %2942 = vmatmul.mubr.f32.gmra.mrb[70].mxu1 %v2167_v34  ;;  %v2041_v34 = vld [vmem:[#allocation2 + $0x70] sm:$0xff] }
 0x31a   : > { %2947 = vmatprep.mubr.f32.mxu1 %v2172_v31  ;;  %v2046_v31 = vld [vmem:[#allocation2 + $0x98] sm:$0xff] }
 0x31d   : > { %2948 = vmatmul.mubr.f32.gmra.mrb[72].mxu1 %v2171_v52  ;;  %v2045_v52 = vld [vmem:[#allocation2 + $0x90] sm:$0xff] }
 0x31e   : > { %2953 = vmatprep.mubr.f32.mxu1 %v2176_v35  ;;  %v2050_v35 = vld [vmem:[#allocation2 + $0xb8] sm:$0xff] }
 0x321   : > { %2954 = vmatmul.mubr.f32.gmra.mrb[74].mxu1 %v2175_v38  ;;  %v2049_v38 = vld [vmem:[#allocation2 + $0xb0] sm:$0xff] }
 0x322   : > { %2959 = vmatprep.mubr.f32.mxu1 %v2180_v30  ;;  %v2054_v30 = vld [vmem:[#allocation2 + $0xd8] sm:$0xff] }
 0x325   : > { %2960 = vmatmul.mubr.f32.gmra.mrb[76].mxu1 %v2179_v27  ;;  %v2053_v27 = vld [vmem:[#allocation2 + $0xd0] sm:$0xff] }
 0x326   : > { %2965 = vmatprep.mubr.f32.mxu1 %v2184_v7  ;;  %v2058_v7 = vld [vmem:[#allocation2 + $0xf8] sm:$0xff] }
 0x329   : > { %2966 = vmatmul.mubr.f32.gmra.mrb[78].mxu1 %v2183_v39  ;;  %v2057_v39 = vld [vmem:[#allocation2 + $0xf0] sm:$0xff] }
 0x32a   : > { %2971 = vmatprep.mubr.f32.mxu1 %v2188_v42  ;;  %v2062_v42 = vld [vmem:[#allocation2 + $0x118] sm:$0xff] }
 0x32d   : > { %2972 = vmatmul.mubr.f32.gmra.mrb[80].mxu1 %v2187_v43  ;;  %v2061_v43 = vld [vmem:[#allocation2 + $0x110] sm:$0xff] }
 0x32e   : > { %2977 = vmatprep.mubr.f32.mxu1 %v2192_v28  ;;  %v2066_v28 = vld [vmem:[#allocation2 + $0x138] sm:$0xff] }
 0x331   : > { %2978 = vmatmul.mubr.f32.gmra.mrb[82].mxu1 %v2191_v46  ;;  %v2065_v46 = vld [vmem:[#allocation2 + $0x130] sm:$0xff] }
 0x332   : > { %2983 = vmatprep.mubr.f32.mxu1 %v2196_v25  ;;  %v2070_v25 = vld [vmem:[#allocation2 + $0x158] sm:$0xff] }
 0x335   : > { %2984 = vmatmul.mubr.f32.gmra.mrb[84].mxu1 %v2195_v47  ;;  %v2069_v47 = vld [vmem:[#allocation2 + $0x150] sm:$0xff] }
 0x336   : > { %2989 = vmatprep.mubr.f32.mxu1 %v2200_v41  ;;  %v2074_v41 = vld [vmem:[#allocation2 + $0x178] sm:$0xff] }
 0x339   : > { %2990 = vmatmul.mubr.f32.gmra.mrb[86].mxu1 %v2199_v48  ;;  %v2073_v48 = vld [vmem:[#allocation2 + $0x170] sm:$0xff] }
 0x33a   : > { %2995 = vmatprep.mubr.f32.mxu1 %v2204_v57  ;;  %v2078_v57 = vld [vmem:[#allocation2 + $0x198] sm:$0xff] }
 0x33d   : > { %2996 = vmatmul.mubr.f32.gmra.mrb[88].mxu1 %v2203_v59  ;;  %v2077_v59 = vld [vmem:[#allocation2 + $0x190] sm:$0xff] }
 0x33e   : > { %3001 = vmatprep.mubr.f32.mxu1 %v2208_v40  ;;  %v2082_v40 = vld [vmem:[#allocation2 + $0x1b8] sm:$0xff] }
 0x341   : > { %3002 = vmatmul.mubr.f32.gmra.mrb[90].mxu1 %v2207_v49  ;;  %v2081_v49 = vld [vmem:[#allocation2 + $0x1b0] sm:$0xff] }
 0x342   : > { %3007 = vmatprep.mubr.f32.mxu1 %v2212_v3  ;;  %v2086_v3 = vld [vmem:[#allocation2 + $0x1d8] sm:$0xff] }
 0x345   : > { %3008 = vmatmul.mubr.f32.gmra.mrb[92].mxu1 %v2211_v26  ;;  %v2085_v26 = vld [vmem:[#allocation2 + $0x1d0] sm:$0xff] }
 0x346   : > { %3013 = vmatprep.mubr.f32.mxu1 %v2216_v58  ;;  %v2090_v58 = vld [vmem:[#allocation2 + $0x1f8] sm:$0xff] }
 0x349   : > { %3014 = vmatmul.mubr.f32.gmra.mrb[94].mxu1 %v2215_v4  ;;  %v2089_v4 = vld [vmem:[#allocation2 + $0x1f0] sm:$0xff] }
 0x34a   : > { %3019 = vmatprep.mubr.f32.mxu1 %v2220_v10  ;;  %v2094_v10 = vld [vmem:[#allocation2 + $0x218] sm:$0xff] }
 0x34d   : > { %3020 = vmatmul.mubr.f32.gmra.mrb[96].mxu1 %v2219_v56  ;;  %v2093_v56 = vld [vmem:[#allocation2 + $0x210] sm:$0xff] }
 0x34e   : > { %3025 = vmatprep.mubr.f32.mxu1 %v2224_v53  ;;  %v2098_v53 = vld [vmem:[#allocation2 + $0x238] sm:$0xff] }
 0x351   : > { %3026 = vmatmul.mubr.f32.gmra.mrb[98].mxu1 %v2223_v54  ;;  %v2097_v54 = vld [vmem:[#allocation2 + $0x230] sm:$0xff] }
 0x352   : > { %3031 = vmatprep.mubr.f32.mxu1 %v2228_v51  ;;  %v2102_v51 = vld [vmem:[#allocation2 + $0x258] sm:$0xff] }
 0x355   : > { %3032 = vmatmul.mubr.f32.gmra.mrb[100].mxu1 %v2227_v37  ;;  %v2101_v37 = vld [vmem:[#allocation2 + $0x250] sm:$0xff] }
 0x356   : > { %3037 = vmatprep.mubr.f32.mxu1 %v2232_v55  ;;  %v2106_v55 = vld [vmem:[#allocation2 + $0x278] sm:$0xff] }
 0x359   : > { %3038 = vmatmul.mubr.f32.gmra.mrb[102].mxu1 %v2231_v62  ;;  %v2105_v62 = vld [vmem:[#allocation2 + $0x270] sm:$0xff] }
 0x35a   : > { %3043 = vmatprep.mubr.f32.mxu1 %v2236_v50  ;;  %v2110_v50 = vld [vmem:[#allocation2 + $0x298] sm:$0xff] }
 0x35d   : > { %3044 = vmatmul.mubr.f32.gmra.mrb[104].mxu1 %v2235_v63  ;;  %v2109_v63 = vld [vmem:[#allocation2 + $0x290] sm:$0xff] }
 0x35e   : > { %3049 = vmatprep.mubr.f32.mxu1 %v2240_v8  ;;  %v2114_v8 = vld [vmem:[#allocation2 + $0x2b8] sm:$0xff] }
 0x361   : > { %3050 = vmatmul.mubr.f32.gmra.mrb[106].mxu1 %v2239_v36  ;;  %v2113_v36 = vld [vmem:[#allocation2 + $0x2b0] sm:$0xff] }
 0x362   : > { %3055 = vmatprep.mubr.f32.mxu1 %v2244_v2  ;;  %v2118_v2 = vld [vmem:[#allocation2 + $0x2d8] sm:$0xff] }
 0x365   : > { %3056 = vmatmul.mubr.f32.gmra.mrb[108].mxu1 %v2243_v5  ;;  %v2117_v5 = vld [vmem:[#allocation2 + $0x2d0] sm:$0xff] }
 0x366   : > { %3061 = vmatprep.mubr.f32.mxu1 %v2248_v6  ;;  %v2122_v6 = vld [vmem:[#allocation2 + $0x2f8] sm:$0xff] }
 0x369   : > { %3062 = vmatmul.mubr.f32.gmra.mrb[110].mxu1 %v2247_v17  ;;  %v2121_v17 = vld [vmem:[#allocation2 + $0x2f0] sm:$0xff] }
 0x36a   : > { %3067 = vmatprep.mubr.f32.mxu1 %v2252_v21  ;;  %v2126_v21 = vld [vmem:[#allocation2 + $0x318] sm:$0xff] }
 0x36d   : > { %3068 = vmatmul.mubr.f32.gmra.mrb[112].mxu1 %v2251_v9  ;;  %v2125_v9 = vld [vmem:[#allocation2 + $0x310] sm:$0xff] }
 0x36e   : > { %3073 = vmatprep.mubr.f32.mxu1 %v2256_v29  ;;  %v2130_v29 = vld [vmem:[#allocation2 + $0x338] sm:$0xff] }
 0x371   : > { %3074 = vmatmul.mubr.f32.gmra.mrb[114].mxu1 %v2255_v11  ;;  %v3696_v11 = vld [vmem:[%s7282_s7 + $0x18] sm:$0xff] }
 0x372   : > { %3079 = vmatprep.mubr.f32.mxu1 %v2260_v61  ;;  %3810 = vmatprep.subr.mxu0 %v3696_v11  ;;  %v2129_v61 = vld [vmem:[#allocation2 + $0x330] sm:$0xff] }
 0x373   : > { %v2245_v11 = vld [vmem:[#allocation2 + $0x6d0] sm:$0xff] }
 0x375   : > { %3080 = vmatmul.mubr.f32.gmra.mrb[116].mxu1 %v2259_v1  ;;  %v2134_v1 = vld [vmem:[#allocation2 + $0x358] sm:$0xff] }
 0x376   : > { %3085 = vmatprep.mubr.f32.mxu1 %v2264_v12  ;;  %v2133_v12 = vld [vmem:[#allocation2 + $0x350] sm:$0xff] }
 0x379   : > { %3086 = vmatmul.mubr.f32.gmra.mrb[118].mxu1 %v2263_v45  ;;  %v2138_v45 = vld [vmem:[#allocation2 + $0x378] sm:$0xff] }
 0x37a   : > { %3091 = vmatprep.mubr.f32.mxu1 %v2268_v16  ;;  %v2137_v16 = vld [vmem:[#allocation2 + $0x370] sm:$0xff] }
 0x37d   : > { %3092 = vmatmul.mubr.f32.gmra.mrb[120].mxu1 %v2267_v15  ;;  %v2142_v15 = vld [vmem:[#allocation2 + $0x398] sm:$0xff] }
 0x37e   : > { %3097 = vmatprep.mubr.f32.mxu1 %v2272_v60  ;;  %v2141_v60 = vld [vmem:[#allocation2 + $0x390] sm:$0xff] }
 0x381   : > { %3098 = vmatmul.mubr.f32.gmra.mrb[122].mxu1 %v2271_v13  ;;  %v2146_v13 = vld [vmem:[#allocation2 + $0x3b8] sm:$0xff] }
 0x382   : > { %3103 = vmatprep.mubr.f32.mxu1 %v2276_v18  ;;  %v2145_v18 = vld [vmem:[#allocation2 + $0x3b0] sm:$0xff] }
 0x385   : > { %3104 = vmatmul.mubr.f32.gmra.mrb[124].mxu1 %v2275_v44  ;;  %v2150_v44 = vld [vmem:[#allocation2 + $0x3d8] sm:$0xff] }
 0x386   : > { %3109 = vmatprep.mubr.f32.mxu1 %v2280_v14  ;;  %v2149_v14 = vld [vmem:[#allocation2 + $0x3d0] sm:$0xff] }
 0x389   : > { %3110 = vmatmul.mubr.f32.gmra.mrb[126].mxu1 %v2279_v19  ;;  %v2154_v19 = vld [vmem:[#allocation2 + $0x3f8] sm:$0xff] }
 0x38a   : > { %3180 = vmatprep.mubr.f32.mxu1 %v2030_v20  ;;  %v2153_v20 = vld [vmem:[#allocation2 + $0x3f0] sm:$0xff] }
 0x38d   : > { %3181 = vmatmul.mubr.f32.vlgmr.msra.gmra.mrb[0].mxu1 %v2029_v22  ;;  %v2158_v22 = vld [vmem:[#allocation2 + $0x418] sm:$0xff] }
 0x38e   : > { %3186 = vmatprep.mubr.f32.mxu1 %v2034_v0  ;;  %v2157_v0 = vld [vmem:[#allocation2 + $0x410] sm:$0xff] }
 0x391   : > { %3187 = vmatmul.mubr.f32.gmra.mrb[2].mxu1 %v2033_v23  ;;  %v2162_v23 = vld [vmem:[#allocation2 + $0x438] sm:$0xff] }
 0x392   : > { %3192 = vmatprep.mubr.f32.mxu1 %v2038_v24  ;;  %v2161_v24 = vld [vmem:[#allocation2 + $0x430] sm:$0xff] }
 0x395   : > { %3193 = vmatmul.mubr.f32.gmra.mrb[4].mxu1 %v2037_v32  ;;  %v2166_v32 = vld [vmem:[#allocation2 + $0x458] sm:$0xff] }
 0x396   : > { %3198 = vmatprep.mubr.f32.mxu1 %v2042_v33  ;;  %v2165_v33 = vld [vmem:[#allocation2 + $0x450] sm:$0xff] }
 0x399   : > { %3199 = vmatmul.mubr.f32.gmra.mrb[6].mxu1 %v2041_v34  ;;  %v2170_v34 = vld [vmem:[#allocation2 + $0x478] sm:$0xff] }
 0x39a   : > { %3204 = vmatprep.mubr.f32.mxu1 %v2046_v31  ;;  %v2169_v31 = vld [vmem:[#allocation2 + $0x470] sm:$0xff] }
 0x39d   : > { %3205 = vmatmul.mubr.f32.gmra.mrb[8].mxu1 %v2045_v52  ;;  %v2174_v52 = vld [vmem:[#allocation2 + $0x498] sm:$0xff] }
 0x39e   : > { %3210 = vmatprep.mubr.f32.mxu1 %v2050_v35  ;;  %v2173_v35 = vld [vmem:[#allocation2 + $0x490] sm:$0xff] }
 0x3a1   : > { %3211 = vmatmul.mubr.f32.gmra.mrb[10].mxu1 %v2049_v38  ;;  %v2178_v38 = vld [vmem:[#allocation2 + $0x4b8] sm:$0xff] }
 0x3a2   : > { %3216 = vmatprep.mubr.f32.mxu1 %v2054_v30  ;;  %v2177_v30 = vld [vmem:[#allocation2 + $0x4b0] sm:$0xff] }
 0x3a5   : > { %3217 = vmatmul.mubr.f32.gmra.mrb[12].mxu1 %v2053_v27  ;;  %v2182_v27 = vld [vmem:[#allocation2 + $0x4d8] sm:$0xff] }
 0x3a6   : > { %3222 = vmatprep.mubr.f32.mxu1 %v2058_v7  ;;  %v2181_v7 = vld [vmem:[#allocation2 + $0x4d0] sm:$0xff] }
 0x3a9   : > { %3223 = vmatmul.mubr.f32.gmra.mrb[14].mxu1 %v2057_v39  ;;  %v2186_v39 = vld [vmem:[#allocation2 + $0x4f8] sm:$0xff] }
 0x3aa   : > { %3228 = vmatprep.mubr.f32.mxu1 %v2062_v42  ;;  %v2185_v42 = vld [vmem:[#allocation2 + $0x4f0] sm:$0xff] }
 0x3ad   : > { %3229 = vmatmul.mubr.f32.gmra.mrb[16].mxu1 %v2061_v43  ;;  %v2190_v43 = vld [vmem:[#allocation2 + $0x518] sm:$0xff] }
 0x3ae   : > { %3234 = vmatprep.mubr.f32.mxu1 %v2066_v28  ;;  %v2189_v28 = vld [vmem:[#allocation2 + $0x510] sm:$0xff] }
 0x3b1   : > { %3235 = vmatmul.mubr.f32.gmra.mrb[18].mxu1 %v2065_v46  ;;  %v2194_v46 = vld [vmem:[#allocation2 + $0x538] sm:$0xff] }
 0x3b2   : > { %3240 = vmatprep.mubr.f32.mxu1 %v2070_v25  ;;  %v2193_v25 = vld [vmem:[#allocation2 + $0x530] sm:$0xff] }
 0x3b5   : > { %3241 = vmatmul.mubr.f32.gmra.mrb[20].mxu1 %v2069_v47  ;;  %v2198_v47 = vld [vmem:[#allocation2 + $0x558] sm:$0xff] }
 0x3b6   : > { %3246 = vmatprep.mubr.f32.mxu1 %v2074_v41  ;;  %v2197_v41 = vld [vmem:[#allocation2 + $0x550] sm:$0xff] }
 0x3b9   : > { %3247 = vmatmul.mubr.f32.gmra.mrb[22].mxu1 %v2073_v48  ;;  %v2202_v48 = vld [vmem:[#allocation2 + $0x578] sm:$0xff] }
 0x3ba   : > { %3252 = vmatprep.mubr.f32.mxu1 %v2078_v57  ;;  %v2201_v57 = vld [vmem:[#allocation2 + $0x570] sm:$0xff] }
 0x3bd   : > { %3253 = vmatmul.mubr.f32.gmra.mrb[24].mxu1 %v2077_v59  ;;  %v2206_v59 = vld [vmem:[#allocation2 + $0x598] sm:$0xff] }
 0x3be   : > { %3258 = vmatprep.mubr.f32.mxu1 %v2082_v40  ;;  %v2205_v40 = vld [vmem:[#allocation2 + $0x590] sm:$0xff] }
 0x3c1   : > { %3259 = vmatmul.mubr.f32.gmra.mrb[26].mxu1 %v2081_v49  ;;  %v2210_v49 = vld [vmem:[#allocation2 + $0x5b8] sm:$0xff] }
 0x3c2   : > { %3264 = vmatprep.mubr.f32.mxu1 %v2086_v3  ;;  %v2209_v3 = vld [vmem:[#allocation2 + $0x5b0] sm:$0xff] }
 0x3c5   : > { %3265 = vmatmul.mubr.f32.gmra.mrb[28].mxu1 %v2085_v26  ;;  %v2214_v26 = vld [vmem:[#allocation2 + $0x5d8] sm:$0xff] }
 0x3c6   : > { %3270 = vmatprep.mubr.f32.mxu1 %v2090_v58  ;;  %v2213_v58 = vld [vmem:[#allocation2 + $0x5d0] sm:$0xff] }
 0x3c9   : > { %3271 = vmatmul.mubr.f32.gmra.mrb[30].mxu1 %v2089_v4  ;;  %v2218_v4 = vld [vmem:[#allocation2 + $0x5f8] sm:$0xff] }
 0x3ca   : > { %3276 = vmatprep.mubr.f32.mxu1 %v2094_v10  ;;  %v2217_v10 = vld [vmem:[#allocation2 + $0x5f0] sm:$0xff] }
 0x3cd   : > { %3277 = vmatmul.mubr.f32.gmra.mrb[32].mxu1 %v2093_v56  ;;  %v2222_v56 = vld [vmem:[#allocation2 + $0x618] sm:$0xff] }
 0x3ce   : > { %3282 = vmatprep.mubr.f32.mxu1 %v2098_v53  ;;  %v2221_v53 = vld [vmem:[#allocation2 + $0x610] sm:$0xff] }
 0x3d1   : > { %3283 = vmatmul.mubr.f32.gmra.mrb[34].mxu1 %v2097_v54  ;;  %v2226_v54 = vld [vmem:[#allocation2 + $0x638] sm:$0xff] }
 0x3d2   : > { %3288 = vmatprep.mubr.f32.mxu1 %v2102_v51  ;;  %v2225_v51 = vld [vmem:[#allocation2 + $0x630] sm:$0xff] }
 0x3d5   : > { %3289 = vmatmul.mubr.f32.gmra.mrb[36].mxu1 %v2101_v37  ;;  %v2230_v37 = vld [vmem:[#allocation2 + $0x658] sm:$0xff] }
 0x3d6   : > { %3294 = vmatprep.mubr.f32.mxu1 %v2106_v55  ;;  %v2229_v55 = vld [vmem:[#allocation2 + $0x650] sm:$0xff] }
 0x3d9   : > { %3295 = vmatmul.mubr.f32.gmra.mrb[38].mxu1 %v2105_v62  ;;  %v2234_v62 = vld [vmem:[#allocation2 + $0x678] sm:$0xff] }
 0x3da   : > { %3300 = vmatprep.mubr.f32.mxu1 %v2110_v50  ;;  %v2233_v50 = vld [vmem:[#allocation2 + $0x670] sm:$0xff] }
 0x3dd   : > { %3301 = vmatmul.mubr.f32.gmra.mrb[40].mxu1 %v2109_v63  ;;  %v2238_v63 = vld [vmem:[#allocation2 + $0x698] sm:$0xff] }
 0x3de   : > { %3306 = vmatprep.mubr.f32.mxu1 %v2114_v8  ;;  %v2237_v8 = vld [vmem:[#allocation2 + $0x690] sm:$0xff] }
 0x3e1   : > { %3307 = vmatmul.mubr.f32.gmra.mrb[42].mxu1 %v2113_v36  ;;  %v2242_v36 = vld [vmem:[#allocation2 + $0x6b8] sm:$0xff] }
 0x3e2   : > { %3312 = vmatprep.mubr.f32.mxu1 %v2118_v2  ;;  %v2241_v2 = vld [vmem:[#allocation2 + $0x6b0] sm:$0xff] }
 0x3e5   : > { %3313 = vmatmul.mubr.f32.gmra.mrb[44].mxu1 %v2117_v5  ;;  %v2246_v5 = vld [vmem:[#allocation2 + $0x6d8] sm:$0xff] }
 0x3e6   : > { %3318 = vmatprep.mubr.f32.mxu1 %v2122_v6  ;;  %v2350_v6 = vpop.permute.xlu0 %2349 }
 0x3e9   : > { %3319 = vmatmul.mubr.f32.gmra.mrb[46].mxu1 %v2121_v17 }
 0x3ea   : > { %3324 = vmatprep.mubr.f32.mxu1 %v2126_v21 }
 0x3ed   : > { %3325 = vmatmul.mubr.f32.gmra.mrb[48].mxu1 %v2125_v9 }
 0x3ee   : > { %3330 = vmatprep.mubr.f32.mxu1 %v2130_v29 }
 0x3f1   : > { %3331 = vmatmul.mubr.f32.gmra.mrb[50].mxu1 %v2129_v61  ;;  %v2250_v61 = vld [vmem:[#allocation2 + $0x6f8] sm:$0xff] }
 0x3f2   : > { %3336 = vmatprep.mubr.f32.mxu1 %v2134_v1  ;;  %v2355_v1 = vpop.permute.xlu1 %2354 }
 0x3f5   : > { %3337 = vmatmul.mubr.f32.gmra.mrb[52].mxu1 %v2133_v12 }
 0x3f6   : > { %3342 = vmatprep.mubr.f32.mxu1 %v2138_v45 }
 0x3f9   : > { %3343 = vmatmul.mubr.f32.gmra.mrb[54].mxu1 %v2137_v16 }
 0x3fa   : > { %3348 = vmatprep.mubr.f32.mxu1 %v2142_v15 }
 0x3fd   : > { %3349 = vmatmul.mubr.f32.gmra.mrb[56].mxu1 %v2141_v60 }
 0x3fe   : > { %3354 = vmatprep.mubr.f32.mxu1 %v2146_v13  ;;  %v3695_v13 = vld [vmem:[%s7282_s7 + $0x10] sm:$0xff] }
 0x401   : > { %3355 = vmatmul.mubr.f32.gmra.mrb[58].mxu1 %v2145_v18 }
 0x402   : > { %3360 = vmatprep.mubr.f32.mxu1 %v2150_v44  ;;  %v2249_v44 = vld [vmem:[#allocation2 + $0x6f0] sm:$0xff] }
 0x405   : > { %3361 = vmatmul.mubr.f32.gmra.mrb[60].mxu1 %v2149_v14  ;;  %v3698_v14 = vld [vmem:[%s7282_s7 + $0x28] sm:$0xff] }
 0x406   : > { %3366 = vmatprep.mubr.f32.mxu1 %v2154_v19  ;;  %v2254_v19 = vld [vmem:[#allocation2 + $0x718] sm:$0xff] }
 0x409   : > { %3367 = vmatmul.mubr.f32.gmra.mrb[62].mxu1 %v2153_v20  ;;  %v2360_v20 = vpop.permute.xlu0 %2359 }
 0x40a   : > { %3372 = vmatprep.mubr.f32.mxu1 %v2158_v22 }
 0x40d   : > { %3373 = vmatmul.mubr.f32.gmra.mrb[64].mxu1 %v2157_v0 }
 0x40e   : > { %3378 = vmatprep.mubr.f32.mxu1 %v2162_v23 }
 0x411   : > { %3379 = vmatmul.mubr.f32.gmra.mrb[66].mxu1 %v2161_v24 }
 0x412   : > { %3384 = vmatprep.mubr.f32.mxu1 %v2166_v32 }
 0x415   : > { %3385 = vmatmul.mubr.f32.gmra.mrb[68].mxu1 %v2165_v33 }
 0x416   : > { %3390 = vmatprep.mubr.f32.mxu1 %v2170_v34  ;;  %v2253_v34 = vld [vmem:[#allocation2 + $0x710] sm:$0xff] }
 0x419   : > { %3391 = vmatmul.mubr.f32.gmra.mrb[70].mxu1 %v2169_v31  ;;  %v2258_v31 = vld [vmem:[#allocation2 + $0x738] sm:$0xff] }
 0x41a   : > { %3396 = vmatprep.mubr.f32.mxu1 %v2174_v52  ;;  %v2365_v52 = vpop.permute.xlu1 %2364 }
 0x41d   : > { %3397 = vmatmul.mubr.f32.gmra.mrb[72].mxu1 %v2173_v35 }
 0x41e   : > { %3402 = vmatprep.mubr.f32.mxu1 %v2178_v38 }
 0x421   : > { %3403 = vmatmul.mubr.f32.gmra.mrb[74].mxu1 %v2177_v30 }
 0x422   : > { %3408 = vmatprep.mubr.f32.mxu1 %v2182_v27 }
 0x425   : > { %3409 = vmatmul.mubr.f32.gmra.mrb[76].mxu1 %v2181_v7 }
 0x426   : > { %3414 = vmatprep.mubr.f32.mxu1 %v2186_v39 }
 0x429   : > { %3415 = vmatmul.mubr.f32.gmra.mrb[78].mxu1 %v2185_v42  ;;  %v2257_v42 = vld [vmem:[#allocation2 + $0x730] sm:$0xff] }
 0x42a   : > { %3420 = vmatprep.mubr.f32.mxu1 %v2190_v43  ;;  %v2262_v43 = vld [vmem:[#allocation2 + $0x758] sm:$0xff] }
 0x42d   : > { %3421 = vmatmul.mubr.f32.gmra.mrb[80].mxu1 %v2189_v28  ;;  %v2370_v28 = vpop.permute.xlu0 %2369 }
 0x42e   : > { %3426 = vmatprep.mubr.f32.mxu1 %v2194_v46 }
 0x431   : > { %3427 = vmatmul.mubr.f32.gmra.mrb[82].mxu1 %v2193_v25 }
 0x432   : > { %3432 = vmatprep.mubr.f32.mxu1 %v2198_v47 }
 0x435   : > { %3433 = vmatmul.mubr.f32.gmra.mrb[84].mxu1 %v2197_v41 }
 0x436   : > { %3438 = vmatprep.mubr.f32.mxu1 %v2202_v48 }
 0x439   : > { %3439 = vmatmul.mubr.f32.gmra.mrb[86].mxu1 %v2201_v57 }
 0x43a   : > { %3444 = vmatprep.mubr.f32.mxu1 %v2206_v59  ;;  %v2261_v59 = vld [vmem:[#allocation2 + $0x750] sm:$0xff] }
 0x43d   : > { %3445 = vmatmul.mubr.f32.gmra.mrb[88].mxu1 %v2205_v40  ;;  %v2266_v40 = vld [vmem:[#allocation2 + $0x778] sm:$0xff] }
 0x43e   : > { %3450 = vmatprep.mubr.f32.mxu1 %v2210_v49  ;;  %v2375_v49 = vpop.permute.xlu1 %2374 }
 0x441   : > { %3451 = vmatmul.mubr.f32.gmra.mrb[90].mxu1 %v2209_v3 }
 0x442   : > { %3456 = vmatprep.mubr.f32.mxu1 %v2214_v26 }
 0x445   : > { %3457 = vmatmul.mubr.f32.gmra.mrb[92].mxu1 %v2213_v58 }
 0x446   : > { %3462 = vmatprep.mubr.f32.mxu1 %v2218_v4 }
 0x449   : > { %3463 = vmatmul.mubr.f32.gmra.mrb[94].mxu1 %v2217_v10 }
 0x44a   : > { %3468 = vmatprep.mubr.f32.mxu1 %v2222_v56  ;;  %v3697_v56 = vld [vmem:[%s7282_s7 + $0x20] sm:$0xff] }
 0x44d   : > { %3469 = vmatmul.mubr.f32.gmra.mrb[96].mxu1 %v2221_v53 }
 0x44e   : > { %3474 = vmatprep.mubr.f32.mxu1 %v2226_v54  ;;  %v2265_v54 = vld [vmem:[#allocation2 + $0x770] sm:$0xff] }
 0x451   : > { %3475 = vmatmul.mubr.f32.gmra.mrb[98].mxu1 %v2225_v51  ;;  %v3700_v51 = vld [vmem:[%s7282_s7 + $0x38] sm:$0xff] }
 0x452   : > { %3480 = vmatprep.mubr.f32.mxu1 %v2230_v37  ;;  %v2270_v37 = vld [vmem:[#allocation2 + $0x798] sm:$0xff] }
 0x455   : > { %3481 = vmatmul.mubr.f32.gmra.mrb[100].mxu1 %v2229_v55  ;;  %v2380_v55 = vpop.permute.xlu0 %2379 }
 0x456   : > { %3486 = vmatprep.mubr.f32.mxu1 %v2234_v62 }
 0x459   : > { %3487 = vmatmul.mubr.f32.gmra.mrb[102].mxu1 %v2233_v50 }
 0x45a   : > { %3492 = vmatprep.mubr.f32.mxu1 %v2238_v63 }
 0x45d   : > { %3493 = vmatmul.mubr.f32.gmra.mrb[104].mxu1 %v2237_v8 }
 0x45e   : > { %3498 = vmatprep.mubr.f32.mxu1 %v2242_v36 }
 0x460   : > { %v3182_v17 = vpop.f32.mrb[0].mxu1 }
 0x461   : > { %v5501_v21 = vadd.f32 %v3182_v17, %v2350_v6  ;;  %v3184_v9 = vpop.f32.mrb[1].mxu1  ;;  %3499 = vmatmul.mubr.f32.gmra.mrb[106].mxu1 %v2241_v2  ;;  %v2385_v17 = vpop.permute.xlu1 %2384 }
 0x462   : > { %v5502_v29 = vadd.f32 %v3184_v9, %v2350_v6  ;;  %3504 = vmatprep.mubr.f32.mxu1 %v2246_v5  ;;  %v2269_v5 = vld [vmem:[#allocation2 + $0x790] sm:$0xff]  ;;  %v2274_v6 = vld [vmem:[#allocation2 + $0x7b8] sm:$0xff] }
 0x463   : > { %v3565_v16 = vmax.f32 %v5501_v21, 0.0 }
 0x464   : > { %v3566_v12 = vmax.f32 %v5502_v29, 0.0  ;;  %v3188_v45 = vpop.f32.mrb[2].mxu1 }
 0x465   : > { %v5503_v15 = vadd.f32 %v3188_v45, %v2355_v1  ;;  %v3190_v60 = vpop.f32.mrb[3].mxu1  ;;  %3505 = vmatmul.mubr.f32.gmra.mrb[108].mxu1 %v2245_v11  ;;  %v2278_v45 = vld [vmem:[#allocation2 + $0x7d8] sm:$0xff] }
 0x466   : > { %v5504_v18 = vadd.f32 %v3190_v60, %v2355_v1  ;;  %3789 = vmatprep.mubr.f32.mxu0 %v3566_v12  ;;  %3510 = vmatprep.mubr.f32.mxu1 %v2250_v61  ;;  %v2273_v12 = vld [vmem:[#allocation2 + $0x7b0] sm:$0xff] }
 0x467   : > { %3790 = vmatmul.mubr.f32.vlgmr.msra.gmra.mrb[128].mxu0 %v3565_v16  ;;  %v3567_v23 = vmax.f32 %v5503_v15, 0.0  ;;  %v2390_v16 = vpop.permute.xlu0 %2389 }
 0x468   : > { %v3568_v22 = vmax.f32 %v5504_v18, 0.0  ;;  %v3194_v0 = vpop.f32.mrb[4].mxu1  ;;  %3811 = vmatpush1.xpose.msra.mxu0 %v3695_v13 }
 0x469   : > { %v5505_v24 = vadd.f32 %v3194_v0, %v2360_v20  ;;  %v3196_v32 = vpop.f32.mrb[5].mxu1  ;;  %3511 = vmatmul.mubr.f32.gmra.mrb[110].mxu1 %v2249_v44  ;;  %3895 = vmatprep.subr.mxu0 %v3698_v14 }
 0x46a   : > { %v5506_v33 = vadd.f32 %v3196_v32, %v2360_v20  ;;  %3794 = vmatprep.mubr.f32.mxu0 %v3568_v22  ;;  %3516 = vmatprep.mubr.f32.mxu1 %v2254_v19  ;;  %v2277_v19 = vld [vmem:[#allocation2 + $0x7d0] sm:$0xff]  ;;  %v2282_v20 = vld [vmem:[#allocation2 + $0x7f8] sm:$0xff]  ;;  %v2395_v22 = vpop.permute.xlu1 %2394 }
 0x46b   : > { %3795 = vmatmul.mubr.f32.gmra.mrb[130].mxu0 %v3567_v23  ;;  %v3569_v30 = vmax.f32 %v5505_v24, 0.0 }
 0x46c   : > { %v3570_v35 = vmax.f32 %v5506_v33, 0.0  ;;  %v3200_v38 = vpop.f32.mrb[6].mxu1 }
 0x46d   : > { %v5507_v27 = vadd.f32 %v3200_v38, %v2365_v52  ;;  %v3202_v7 = vpop.f32.mrb[7].mxu1  ;;  %3517 = vmatmul.mubr.f32.gmra.mrb[112].mxu1 %v2253_v34  ;;  %v3699_v34 = vld [vmem:[%s7282_s7 + $0x30] sm:$0xff]  ;;  %v2400_v38 = vpop.permute.xlu0 %2399 }
 0x46e   : > { %v5508_v39 = vadd.f32 %v3202_v7, %v2365_v52  ;;  %3799 = vmatprep.mubr.f32.mxu0 %v3570_v35  ;;  %3522 = vmatprep.mubr.f32.mxu1 %v2258_v31  ;;  %v2281_v52 = vld [vmem:[#allocation2 + $0x7f0] sm:$0xff]  ;;  %v3702_v35 = vld [vmem:[%s7282_s7 + $0x48] sm:$0xff] }
 0x46f   : > { %3800 = vmatmul.mubr.f32.gmra.mrb[132].mxu0 %v3569_v30  ;;  %v3571_v47 = vmax.f32 %v5507_v27, 0.0 }
 0x470   : > { %v3572_v46 = vmax.f32 %v5508_v39, 0.0  ;;  %v3206_v25 = vpop.f32.mrb[8].mxu1 }
 0x471   : > { %v5509_v41 = vadd.f32 %v3206_v25, %v2370_v28  ;;  %v3208_v48 = vpop.f32.mrb[9].mxu1  ;;  %3523 = vmatmul.mubr.f32.gmra.mrb[114].mxu1 %v2257_v42 }
 0x472   : > { %v5510_v57 = vadd.f32 %v3208_v48, %v2370_v28  ;;  %3804 = vmatprep.mubr.f32.mxu0 %v3572_v46  ;;  %3528 = vmatprep.mubr.f32.mxu1 %v2262_v43  ;;  %v2405_v28 = vpop.permute.xlu1 %2404 }
 0x473   : > { %3805 = vmatmul.mubr.f32.gmra.mrb[134].mxu0 %v3571_v47  ;;  %v3573_v58 = vmax.f32 %v5509_v41, 0.0 }
 0x474   : > { %v3574_v3 = vmax.f32 %v5510_v57, 0.0  ;;  %v3212_v26 = vpop.f32.mrb[10].mxu1 }
 0x475   : > { %v5511_v4 = vadd.f32 %v3212_v26, %v2375_v49  ;;  %v3214_v10 = vpop.f32.mrb[11].mxu1  ;;  %3529 = vmatmul.mubr.f32.gmra.mrb[116].mxu1 %v2261_v59  ;;  %v2410_v59 = vpop.permute.xlu0 %2409 }
 0x476   : > { %v5512_v53 = vadd.f32 %v3214_v10, %v2375_v49  ;;  %3874 = vmatprep.mubr.f32.mxu0 %v3574_v3  ;;  %3534 = vmatprep.mubr.f32.mxu1 %v2266_v40  ;;  %v2415_v10 = vpop.permute.xlu1 %2414 }
 0x477   : > { %3875 = vmatmul.mubr.f32.vlgmr.msra.gmra.mrb[136].mxu0 %v3573_v58  ;;  %v3575_v63 = vmax.f32 %v5511_v4, 0.0 }
 0x478   : > { %v3576_v62 = vmax.f32 %v5512_v53, 0.0  ;;  %v3218_v50 = vpop.f32.mrb[12].mxu1  ;;  %3896 = vmatpush1.xpose.msra.mxu0 %v3697_v56 }
 0x479   : > { %v5513_v8 = vadd.f32 %v3218_v50, %v2380_v55  ;;  %v3220_v36 = vpop.f32.mrb[13].mxu1  ;;  %3535 = vmatmul.mubr.f32.gmra.mrb[118].mxu1 %v2265_v54  ;;  %3980 = vmatprep.subr.mxu0 %v3700_v51  ;;  %v3704_v50 = vld [vmem:[%s7282_s7 + $0x58] sm:$0xff] }
 0x47a   : > { %v5514_v2 = vadd.f32 %v3220_v36, %v2380_v55  ;;  %3879 = vmatprep.mubr.f32.mxu0 %v3576_v62  ;;  %3540 = vmatprep.mubr.f32.mxu1 %v2270_v37  ;;  %v3701_v55 = vld [vmem:[%s7282_s7 + $0x40] sm:$0xff] }
 0x47b   : > { %3880 = vmatmul.mubr.f32.gmra.mrb[138].mxu0 %v3575_v63  ;;  %v3577_v29 = vmax.f32 %v5513_v8, 0.0  ;;  %v2420_v63 = vpop.permute.xlu0 %2419 }
 0x47c   : > { %v3578_v21 = vmax.f32 %v5514_v2, 0.0  ;;  %v3224_v9 = vpop.f32.mrb[14].mxu1 }
 0x47d   : > { %v5515_v11 = vadd.f32 %v3224_v9, %v2385_v17  ;;  %v3226_v61 = vpop.f32.mrb[15].mxu1  ;;  %3541 = vmatmul.mubr.f32.gmra.mrb[120].mxu1 %v2269_v5 }
 0x47e   : > { %v5516_v1 = vadd.f32 %v3226_v61, %v2385_v17  ;;  %3884 = vmatprep.mubr.f32.mxu0 %v3578_v21  ;;  %3546 = vmatprep.mubr.f32.mxu1 %v2274_v6  ;;  %v2425_v21 = vpop.permute.xlu1 %2424 }
 0x47f   : > { %3885 = vmatmul.mubr.f32.gmra.mrb[140].mxu0 %v3577_v29  ;;  %v3579_v13 = vmax.f32 %v5515_v11, 0.0 }
 0x480   : > { %v3580_v15 = vmax.f32 %v5516_v1, 0.0  ;;  %v3230_v60 = vpop.f32.mrb[16].mxu1 }
 0x481   : > { %v5517_v18 = vadd.f32 %v3230_v60, %v2390_v16  ;;  %v3232_v44 = vpop.f32.mrb[17].mxu1  ;;  %3547 = vmatmul.mubr.f32.gmra.mrb[122].mxu1 %v2273_v12 }
 0x482   : > { %v5518_v14 = vadd.f32 %v3232_v44, %v2390_v16  ;;  %3889 = vmatprep.mubr.f32.mxu0 %v3580_v15  ;;  %3552 = vmatprep.mubr.f32.mxu1 %v2278_v45  ;;  %v2430_v45 = vpop.permute.xlu0 %2429 }
 0x483   : > { %3890 = vmatmul.mubr.f32.gmra.mrb[142].mxu0 %v3579_v13  ;;  %v3581_v24 = vmax.f32 %v5517_v18, 0.0 }
 0x484   : > { %v3582_v0 = vmax.f32 %v5518_v14, 0.0  ;;  %v3236_v23 = vpop.f32.mrb[18].mxu1  ;;  %v2435_v14 = vpop.permute.xlu1 %2434 }
 0x485   : > { %v5519_v32 = vadd.f32 %v3236_v23, %v2395_v22  ;;  %v3238_v33 = vpop.f32.mrb[19].mxu1  ;;  %3553 = vmatmul.mubr.f32.gmra.mrb[124].mxu1 %v2277_v19 }
 0x486   : > { %v5520_v31 = vadd.f32 %v3238_v33, %v2395_v22  ;;  %3959 = vmatprep.mubr.f32.mxu0 %v3582_v0  ;;  %3558 = vmatprep.mubr.f32.mxu1 %v2282_v20  ;;  %v3706_v33 = vld [vmem:[%s7282_s7 + $0x68] sm:$0xff] }
 0x487   : > { %3960 = vmatmul.mubr.f32.vlgmr.msra.gmra.mrb[144].mxu0 %v3581_v24  ;;  %v3583_v7 = vmax.f32 %v5519_v32, 0.0  ;;  %v3703_v24 = vld [vmem:[%s7282_s7 + $0x50] sm:$0xff] }
 0x488   : > { %v3584_v30 = vmax.f32 %v5520_v31, 0.0  ;;  %v3242_v27 = vpop.f32.mrb[20].mxu1  ;;  %3981 = vmatpush1.xpose.msra.mxu0 %v3699_v34  ;;  %v2440_v34 = vpop.permute.xlu0 %2439 }
 0x489   : > { %v5521_v39 = vadd.f32 %v3242_v27, %v2400_v38  ;;  %v3244_v42 = vpop.f32.mrb[21].mxu1  ;;  %3559 = vmatmul.mubr.f32.gmra.mrb[126].mxu1 %v2281_v52  ;;  %4065 = vmatprep.subr.mxu0 %v3702_v35 }
 0x48a   : > { %v5522_v43 = vadd.f32 %v3244_v42, %v2400_v38  ;;  %3964 = vmatprep.mubr.f32.mxu0 %v3584_v30 }
 0x48b   : > { %3965 = vmatmul.mubr.f32.gmra.mrb[146].mxu0 %v3583_v7  ;;  %v3585_v47 = vmax.f32 %v5521_v39, 0.0  ;;  %v2445_v7 = vpop.permute.xlu1 %2444 }
 0x48c   : > { %v3586_v46 = vmax.f32 %v5522_v43, 0.0  ;;  %v3248_v25 = vpop.f32.mrb[22].mxu1 }
 0x48d   : > { %v5523_v41 = vadd.f32 %v3248_v25, %v2405_v28  ;;  %v3250_v48 = vpop.f32.mrb[23].mxu1 }
 0x48e   : > { %v5524_v57 = vadd.f32 %v3250_v48, %v2405_v28  ;;  %3969 = vmatprep.mubr.f32.mxu0 %v3586_v46 }
 0x48f   : > { %3970 = vmatmul.mubr.f32.gmra.mrb[148].mxu0 %v3585_v47  ;;  %v3587_v3 = vmax.f32 %v5523_v41, 0.0  ;;  %v2450_v47 = vpop.permute.xlu0 %2449 }
 0x490   : > { %v3588_v40 = vmax.f32 %v5524_v57, 0.0  ;;  %v3254_v49 = vpop.f32.mrb[24].mxu1 }
 0x491   : > { %v5525_v26 = vadd.f32 %v3254_v49, %v2410_v59  ;;  %v3256_v58 = vpop.f32.mrb[25].mxu1 }
 0x492   : > { %v5526_v4 = vadd.f32 %v3256_v58, %v2410_v59  ;;  %3974 = vmatprep.mubr.f32.mxu0 %v3588_v40 }
 0x493   : > { %3975 = vmatmul.mubr.f32.gmra.mrb[150].mxu0 %v3587_v3  ;;  %v3589_v54 = vmax.f32 %v5525_v26, 0.0  ;;  %v2455_v3 = vpop.permute.xlu1 %2454 }
 0x494   : > { %v3590_v56 = vmax.f32 %v5526_v4, 0.0  ;;  %v3260_v53 = vpop.f32.mrb[26].mxu1 }
 0x495   : > { %v5527_v51 = vadd.f32 %v3260_v53, %v2415_v10  ;;  %v3262_v37 = vpop.f32.mrb[27].mxu1  ;;  %v3705_v53 = vld [vmem:[%s7282_s7 + $0x60] sm:$0xff] }
 0x496   : > { %v5528_v62 = vadd.f32 %v3262_v37, %v2415_v10  ;;  %4044 = vmatprep.mubr.f32.mxu0 %v3590_v56  ;;  %v2460_v37 = vpop.permute.xlu0 %2459 }
 0x497   : > { %4045 = vmatmul.mubr.f32.vlgmr.msra.gmra.mrb[152].mxu0 %v3589_v54  ;;  %v3591_v2 = vmax.f32 %v5527_v51, 0.0  ;;  %v3708_v51 = vld [vmem:[%s7282_s7 + $0x78] sm:$0xff] }
 0x498   : > { %v3592_v8 = vmax.f32 %v5528_v62, 0.0  ;;  %v3266_v36 = vpop.f32.mrb[28].mxu1  ;;  %4066 = vmatpush1.xpose.msra.mxu0 %v3701_v55 }
 0x499   : > { %v5529_v5 = vadd.f32 %v3266_v36, %v2420_v63  ;;  %v3268_v6 = vpop.f32.mrb[29].mxu1  ;;  %4150 = vmatprep.subr.mxu0 %v3704_v50 }
 0x49a   : > { %v5530_v17 = vadd.f32 %v3268_v6, %v2420_v63  ;;  %4049 = vmatprep.mubr.f32.mxu0 %v3592_v8 }
 0x49b   : > { %4050 = vmatmul.mubr.f32.gmra.mrb[154].mxu0 %v3591_v2  ;;  %v3593_v11 = vmax.f32 %v5529_v5, 0.0  ;;  %v2465_v2 = vpop.permute.xlu1 %2464 }
 0x49c   : > { %v3594_v9 = vmax.f32 %v5530_v17, 0.0  ;;  %v3272_v29 = vpop.f32.mrb[30].mxu1 }
 0x49d   : > { %v5531_v61 = vadd.f32 %v3272_v29, %v2425_v21  ;;  %v3274_v1 = vpop.f32.mrb[31].mxu1 }
 0x49e   : > { %v5532_v12 = vadd.f32 %v3274_v1, %v2425_v21  ;;  %4054 = vmatprep.mubr.f32.mxu0 %v3594_v9 }
 0x49f   : > { %4055 = vmatmul.mubr.f32.gmra.mrb[156].mxu0 %v3593_v11  ;;  %v3595_v60 = vmax.f32 %v5531_v61, 0.0  ;;  %v2470_v11 = vpop.permute.xlu0 %2469 }
 0x4a0   : > { %v3596_v16 = vmax.f32 %v5532_v12, 0.0  ;;  %v3278_v15 = vpop.f32.mrb[32].mxu1 }
 0x4a1   : > { %v5533_v13 = vadd.f32 %v3278_v15, %v2430_v45  ;;  %v3280_v18 = vpop.f32.mrb[33].mxu1 }
 0x4a2   : > { %v5534_v44 = vadd.f32 %v3280_v18, %v2430_v45  ;;  %4059 = vmatprep.mubr.f32.mxu0 %v3596_v16 }
 0x4a3   : > { %4060 = vmatmul.mubr.f32.gmra.mrb[158].mxu0 %v3595_v60  ;;  %v3597_v22 = vmax.f32 %v5533_v13, 0.0  ;;  %v2475_v60 = vpop.permute.xlu1 %2474 }
 0x4a4   : > { %v3598_v19 = vmax.f32 %v5534_v44, 0.0  ;;  %v3284_v20 = vpop.f32.mrb[34].mxu1 }
 0x4a5   : > { %v5535_v0 = vadd.f32 %v3284_v20, %v2435_v14  ;;  %v3286_v23 = vpop.f32.mrb[35].mxu1  ;;  %v3707_v20 = vld [vmem:[%s7282_s7 + $0x70] sm:$0xff] }
 0x4a6   : > { %v5536_v32 = vadd.f32 %v3286_v23, %v2435_v14  ;;  %4129 = vmatprep.mubr.f32.mxu0 %v3598_v19  ;;  %v2480_v23 = vpop.permute.xlu0 %2479 }
 0x4a7   : > { %4130 = vmatmul.mubr.f32.vlgmr.msra.gmra.mrb[160].mxu0 %v3597_v22  ;;  %v3599_v35 = vmax.f32 %v5535_v0, 0.0  ;;  %v3710_v0 = vld [vmem:[%s7282_s7 + $0x88] sm:$0xff] }
 0x4a8   : > { %v3600_v31 = vmax.f32 %v5536_v32, 0.0  ;;  %v3290_v52 = vpop.f32.mrb[36].mxu1  ;;  %4151 = vmatpush1.xpose.msra.mxu0 %v3703_v24 }
 0x4a9   : > { %v5537_v38 = vadd.f32 %v3290_v52, %v2440_v34  ;;  %v3292_v30 = vpop.f32.mrb[37].mxu1  ;;  %4235 = vmatprep.subr.mxu0 %v3706_v33 }
 0x4aa   : > { %v5538_v27 = vadd.f32 %v3292_v30, %v2440_v34  ;;  %4134 = vmatprep.mubr.f32.mxu0 %v3600_v31 }
 0x4ab   : > { %4135 = vmatmul.mubr.f32.gmra.mrb[162].mxu0 %v3599_v35  ;;  %v3601_v43 = vmax.f32 %v5537_v38, 0.0  ;;  %v2485_v35 = vpop.permute.xlu1 %2484 }
 0x4ac   : > { %v3602_v39 = vmax.f32 %v5538_v27, 0.0  ;;  %v3296_v42 = vpop.f32.mrb[38].mxu1 }
 0x4ad   : > { %v5539_v28 = vadd.f32 %v3296_v42, %v2445_v7  ;;  %v3298_v46 = vpop.f32.mrb[39].mxu1 }
 0x4ae   : > { %v5540_v25 = vadd.f32 %v3298_v46, %v2445_v7  ;;  %4139 = vmatprep.mubr.f32.mxu0 %v3602_v39 }
 0x4af   : > { %4140 = vmatmul.mubr.f32.gmra.mrb[164].mxu0 %v3601_v43  ;;  %v3603_v57 = vmax.f32 %v5539_v28, 0.0  ;;  %v2490_v43 = vpop.permute.xlu0 %2489 }
 0x4b0   : > { %v3604_v41 = vmax.f32 %v5540_v25, 0.0  ;;  %v3302_v48 = vpop.f32.mrb[40].mxu1 }
 0x4b1   : > { %v5541_v59 = vadd.f32 %v3302_v48, %v2450_v47  ;;  %v3304_v40 = vpop.f32.mrb[41].mxu1 }
 0x4b2   : > { %v5542_v49 = vadd.f32 %v3304_v40, %v2450_v47  ;;  %4144 = vmatprep.mubr.f32.mxu0 %v3604_v41 }
 0x4b3   : > { %4145 = vmatmul.mubr.f32.gmra.mrb[166].mxu0 %v3603_v57  ;;  %v3605_v4 = vmax.f32 %v5541_v59, 0.0  ;;  %v2495_v57 = vpop.permute.xlu1 %2494 }
 0x4b4   : > { %v3606_v26 = vmax.f32 %v5542_v49, 0.0  ;;  %v3308_v58 = vpop.f32.mrb[42].mxu1 }
 0x4b5   : > { %v5543_v10 = vadd.f32 %v3308_v58, %v2455_v3  ;;  %v3310_v56 = vpop.f32.mrb[43].mxu1  ;;  %v3709_v58 = vld [vmem:[%s7282_s7 + $0x80] sm:$0xff] }
 0x4b6   : > { %v5544_v54 = vadd.f32 %v3310_v56, %v2455_v3  ;;  %4214 = vmatprep.mubr.f32.mxu0 %v3606_v26  ;;  %v2500_v56 = vpop.permute.xlu0 %2499 }
 0x4b7   : > { %4215 = vmatmul.mubr.f32.vlgmr.msra.gmra.mrb[168].mxu0 %v3605_v4  ;;  %v3607_v50 = vmax.f32 %v5543_v10, 0.0  ;;  %v3712_v10 = vld [vmem:[%s7282_s7 + $0x98] sm:$0xff] }
 0x4b8   : > { %v3608_v55 = vmax.f32 %v5544_v54, 0.0  ;;  %v3314_v62 = vpop.f32.mrb[44].mxu1  ;;  %4236 = vmatpush1.xpose.msra.mxu0 %v3705_v53 }
 0x4b9   : > { %v5545_v63 = vadd.f32 %v3314_v62, %v2460_v37  ;;  %v3316_v8 = vpop.f32.mrb[45].mxu1  ;;  %4320 = vmatprep.subr.mxu0 %v3708_v51 }
 0x4ba   : > { %v5546_v36 = vadd.f32 %v3316_v8, %v2460_v37  ;;  %4219 = vmatprep.mubr.f32.mxu0 %v3608_v55 }
 0x4bb   : > { %4220 = vmatmul.mubr.f32.gmra.mrb[170].mxu0 %v3607_v50  ;;  %v3609_v17 = vmax.f32 %v5545_v63, 0.0  ;;  %v2505_v50 = vpop.permute.xlu1 %2504 }
 0x4bc   : > { %v3610_v5 = vmax.f32 %v5546_v36, 0.0  ;;  %v3320_v6 = vpop.f32.mrb[46].mxu1 }
 0x4bd   : > { %v5547_v21 = vadd.f32 %v3320_v6, %v2465_v2  ;;  %v3322_v9 = vpop.f32.mrb[47].mxu1 }
 0x4be   : > { %v5548_v29 = vadd.f32 %v3322_v9, %v2465_v2  ;;  %4224 = vmatprep.mubr.f32.mxu0 %v3610_v5 }
 0x4bf   : > { %4225 = vmatmul.mubr.f32.gmra.mrb[172].mxu0 %v3609_v17  ;;  %v3611_v12 = vmax.f32 %v5547_v21, 0.0  ;;  %v2510_v17 = vpop.permute.xlu0 %2509 }
 0x4c0   : > { %v3612_v61 = vmax.f32 %v5548_v29, 0.0  ;;  %v3326_v1 = vpop.f32.mrb[48].mxu1 }
 0x4c1   : > { %v5549_v45 = vadd.f32 %v3326_v1, %v2470_v11  ;;  %v3328_v16 = vpop.f32.mrb[49].mxu1 }
 0x4c2   : > { %v5550_v15 = vadd.f32 %v3328_v16, %v2470_v11  ;;  %4229 = vmatprep.mubr.f32.mxu0 %v3612_v61 }
 0x4c3   : > { %4230 = vmatmul.mubr.f32.gmra.mrb[174].mxu0 %v3611_v12  ;;  %v3613_v44 = vmax.f32 %v5549_v45, 0.0  ;;  %v2515_v12 = vpop.permute.xlu1 %2514 }
 0x4c4   : > { %v3614_v13 = vmax.f32 %v5550_v15, 0.0  ;;  %v3332_v18 = vpop.f32.mrb[50].mxu1 }
 0x4c5   : > { %v5551_v14 = vadd.f32 %v3332_v18, %v2475_v60  ;;  %v3334_v19 = vpop.f32.mrb[51].mxu1  ;;  %v3711_v18 = vld [vmem:[%s7282_s7 + $0x90] sm:$0xff] }
 0x4c6   : > { %v5552_v22 = vadd.f32 %v3334_v19, %v2475_v60  ;;  %4299 = vmatprep.mubr.f32.mxu0 %v3614_v13  ;;  %v2520_v19 = vpop.permute.xlu0 %2519 }
 0x4c7   : > { %4300 = vmatmul.mubr.f32.vlgmr.msra.gmra.mrb[176].mxu0 %v3613_v44  ;;  %v3615_v33 = vmax.f32 %v5551_v14, 0.0  ;;  %v3714_v14 = vld [vmem:[%s7282_s7 + $0xa8] sm:$0xff] }
 0x4c8   : > { %v3616_v24 = vmax.f32 %v5552_v22, 0.0  ;;  %v3338_v32 = vpop.f32.mrb[52].mxu1  ;;  %4321 = vmatpush1.xpose.msra.mxu0 %v3707_v20 }
 0x4c9   : > { %v5553_v34 = vadd.f32 %v3338_v32, %v2480_v23  ;;  %v3340_v31 = vpop.f32.mrb[53].mxu1  ;;  %4405 = vmatprep.subr.mxu0 %v3710_v0 }
 0x4ca   : > { %v5554_v52 = vadd.f32 %v3340_v31, %v2480_v23  ;;  %4304 = vmatprep.mubr.f32.mxu0 %v3616_v24 }
 0x4cb   : > { %4305 = vmatmul.mubr.f32.gmra.mrb[178].mxu0 %v3615_v33  ;;  %v3617_v27 = vmax.f32 %v5553_v34, 0.0  ;;  %v2525_v33 = vpop.permute.xlu1 %2524 }
 0x4cc   : > { %v3618_v38 = vmax.f32 %v5554_v52, 0.0  ;;  %v3344_v30 = vpop.f32.mrb[54].mxu1 }
 0x4cd   : > { %v5555_v7 = vadd.f32 %v3344_v30, %v2485_v35  ;;  %v3346_v39 = vpop.f32.mrb[55].mxu1 }
 0x4ce   : > { %v5556_v42 = vadd.f32 %v3346_v39, %v2485_v35  ;;  %4309 = vmatprep.mubr.f32.mxu0 %v3618_v38 }
 0x4cf   : > { %4310 = vmatmul.mubr.f32.gmra.mrb[180].mxu0 %v3617_v27  ;;  %v3619_v25 = vmax.f32 %v5555_v7, 0.0  ;;  %v2530_v27 = vpop.permute.xlu0 %2529 }
 0x4d0   : > { %v3620_v28 = vmax.f32 %v5556_v42, 0.0  ;;  %v3350_v46 = vpop.f32.mrb[56].mxu1 }
 0x4d1   : > { %v5557_v47 = vadd.f32 %v3350_v46, %v2490_v43  ;;  %v3352_v41 = vpop.f32.mrb[57].mxu1 }
 0x4d2   : > { %v5558_v48 = vadd.f32 %v3352_v41, %v2490_v43  ;;  %4314 = vmatprep.mubr.f32.mxu0 %v3620_v28 }
 0x4d3   : > { %4315 = vmatmul.mubr.f32.gmra.mrb[182].mxu0 %v3619_v25  ;;  %v3621_v49 = vmax.f32 %v5557_v47, 0.0  ;;  %v2535_v25 = vpop.permute.xlu1 %2534 }
 0x4d4   : > { %v3622_v59 = vmax.f32 %v5558_v48, 0.0  ;;  %v3356_v40 = vpop.f32.mrb[58].mxu1 }
 0x4d5   : > { %v5559_v3 = vadd.f32 %v3356_v40, %v2495_v57  ;;  %v3358_v26 = vpop.f32.mrb[59].mxu1  ;;  %v3713_v40 = vld [vmem:[%s7282_s7 + $0xa0] sm:$0xff] }
 0x4d6   : > { %v5560_v4 = vadd.f32 %v3358_v26, %v2495_v57  ;;  %4384 = vmatprep.mubr.f32.mxu0 %v3622_v59  ;;  %v2540_v26 = vpop.permute.xlu0 %2539 }
 0x4d7   : > { %4385 = vmatmul.mubr.f32.vlgmr.msra.gmra.mrb[184].mxu0 %v3621_v49  ;;  %v3623_v51 = vmax.f32 %v5559_v3, 0.0  ;;  %v3716_v3 = vld [vmem:[%s7282_s7 + $0xb8] sm:$0xff] }
 0x4d8   : > { %v3624_v53 = vmax.f32 %v5560_v4, 0.0  ;;  %v3362_v54 = vpop.f32.mrb[60].mxu1  ;;  %4406 = vmatpush1.xpose.msra.mxu0 %v3709_v58 }
 0x4d9   : > { %v5561_v37 = vadd.f32 %v3362_v54, %v2500_v56  ;;  %v3364_v55 = vpop.f32.mrb[61].mxu1  ;;  %4490 = vmatprep.subr.mxu0 %v3712_v10 }
 0x4da   : > { %v5562_v62 = vadd.f32 %v3364_v55, %v2500_v56  ;;  %4389 = vmatprep.mubr.f32.mxu0 %v3624_v53 }
 0x4db   : > { %4390 = vmatmul.mubr.f32.gmra.mrb[186].mxu0 %v3623_v51  ;;  %v3625_v36 = vmax.f32 %v5561_v37, 0.0  ;;  %v2545_v51 = vpop.permute.xlu1 %2544 }
 0x4dc   : > { %v3626_v63 = vmax.f32 %v5562_v62, 0.0  ;;  %v3368_v8 = vpop.f32.mrb[62].mxu1 }
 0x4dd   : > { %v5563_v2 = vadd.f32 %v3368_v8, %v2505_v50  ;;  %v3370_v5 = vpop.f32.mrb[63].mxu1 }
 0x4de   : > { %v5564_v6 = vadd.f32 %v3370_v5, %v2505_v50  ;;  %4394 = vmatprep.mubr.f32.mxu0 %v3626_v63 }
 0x4df   : > { %4395 = vmatmul.mubr.f32.gmra.mrb[188].mxu0 %v3625_v36  ;;  %v3627_v29 = vmax.f32 %v5563_v2, 0.0  ;;  %v2550_v36 = vpop.permute.xlu0 %2549 }
 0x4e0   : > { %v3628_v21 = vmax.f32 %v5564_v6, 0.0  ;;  %v3374_v9 = vpop.f32.mrb[64].mxu1 }
 0x4e1   : > { %v5565_v11 = vadd.f32 %v3374_v9, %v2510_v17  ;;  %v3376_v61 = vpop.f32.mrb[65].mxu1 }
 0x4e2   : > { %v5566_v1 = vadd.f32 %v3376_v61, %v2510_v17  ;;  %4399 = vmatprep.mubr.f32.mxu0 %v3628_v21 }
 0x4e3   : > { %4400 = vmatmul.mubr.f32.gmra.mrb[190].mxu0 %v3627_v29  ;;  %v3629_v15 = vmax.f32 %v5565_v11, 0.0  ;;  %v2555_v29 = vpop.permute.xlu1 %2554 }
 0x4e4   : > { %v3630_v45 = vmax.f32 %v5566_v1, 0.0  ;;  %v3380_v16 = vpop.f32.mrb[66].mxu1 }
 0x4e5   : > { %v5567_v60 = vadd.f32 %v3380_v16, %v2515_v12  ;;  %v3382_v13 = vpop.f32.mrb[67].mxu1  ;;  %v3715_v16 = vld [vmem:[%s7282_s7 + $0xb0] sm:$0xff] }
 0x4e6   : > { %v5568_v44 = vadd.f32 %v3382_v13, %v2515_v12  ;;  %4469 = vmatprep.mubr.f32.mxu0 %v3630_v45  ;;  %v2560_v13 = vpop.permute.xlu0 %2559 }
 0x4e7   : > { %4470 = vmatmul.mubr.f32.vlgmr.msra.gmra.mrb[192].mxu0 %v3629_v15  ;;  %v3631_v0 = vmax.f32 %v5567_v60, 0.0  ;;  %v3718_v60 = vld [vmem:[%s7282_s7 + $0xc8] sm:$0xff] }
 0x4e8   : > { %v3632_v20 = vmax.f32 %v5568_v44, 0.0  ;;  %v3386_v22 = vpop.f32.mrb[68].mxu1  ;;  %4491 = vmatpush1.xpose.msra.mxu0 %v3711_v18 }
 0x4e9   : > { %v5569_v23 = vadd.f32 %v3386_v22, %v2520_v19  ;;  %v3388_v24 = vpop.f32.mrb[69].mxu1  ;;  %4575 = vmatprep.subr.mxu0 %v3714_v14 }
 0x4ea   : > { %v5570_v32 = vadd.f32 %v3388_v24, %v2520_v19  ;;  %4474 = vmatprep.mubr.f32.mxu0 %v3632_v20 }
 0x4eb   : > { %4475 = vmatmul.mubr.f32.gmra.mrb[194].mxu0 %v3631_v0  ;;  %v3633_v52 = vmax.f32 %v5569_v23, 0.0  ;;  %v2565_v0 = vpop.permute.xlu1 %2564 }
 0x4ec   : > { %v3634_v34 = vmax.f32 %v5570_v32, 0.0  ;;  %v3392_v31 = vpop.f32.mrb[70].mxu1 }
 0x4ed   : > { %v5571_v35 = vadd.f32 %v3392_v31, %v2525_v33  ;;  %v3394_v38 = vpop.f32.mrb[71].mxu1 }
 0x4ee   : > { %v5572_v30 = vadd.f32 %v3394_v38, %v2525_v33  ;;  %4479 = vmatprep.mubr.f32.mxu0 %v3634_v34 }
 0x4ef   : > { %4480 = vmatmul.mubr.f32.gmra.mrb[196].mxu0 %v3633_v52  ;;  %v3635_v42 = vmax.f32 %v5571_v35, 0.0  ;;  %v2570_v52 = vpop.permute.xlu0 %2569 }
 0x4f0   : > { %v3636_v7 = vmax.f32 %v5572_v30, 0.0  ;;  %v3398_v39 = vpop.f32.mrb[72].mxu1 }
 0x4f1   : > { %v5573_v43 = vadd.f32 %v3398_v39, %v2530_v27  ;;  %v3400_v28 = vpop.f32.mrb[73].mxu1 }
 0x4f2   : > { %v5574_v46 = vadd.f32 %v3400_v28, %v2530_v27  ;;  %4484 = vmatprep.mubr.f32.mxu0 %v3636_v7 }
 0x4f3   : > { %4485 = vmatmul.mubr.f32.gmra.mrb[198].mxu0 %v3635_v42  ;;  %v3637_v48 = vmax.f32 %v5573_v43, 0.0  ;;  %v2575_v42 = vpop.permute.xlu1 %2574 }
 0x4f4   : > { %v3638_v47 = vmax.f32 %v5574_v46, 0.0  ;;  %v3404_v41 = vpop.f32.mrb[74].mxu1 }
 0x4f5   : > { %v5575_v57 = vadd.f32 %v3404_v41, %v2535_v25  ;;  %v3406_v59 = vpop.f32.mrb[75].mxu1  ;;  %v3717_v41 = vld [vmem:[%s7282_s7 + $0xc0] sm:$0xff] }
 0x4f6   : > { %v5576_v49 = vadd.f32 %v3406_v59, %v2535_v25  ;;  %4554 = vmatprep.mubr.f32.mxu0 %v3638_v47  ;;  %v2580_v59 = vpop.permute.xlu0 %2579 }
 0x4f7   : > { %4555 = vmatmul.mubr.f32.vlgmr.msra.gmra.mrb[200].mxu0 %v3637_v48  ;;  %v3639_v10 = vmax.f32 %v5575_v57, 0.0  ;;  %v3720_v57 = vld [vmem:[%s7282_s7 + $0xd8] sm:$0xff] }
 0x4f8   : > { %v3640_v58 = vmax.f32 %v5576_v49, 0.0  ;;  %v3410_v4 = vpop.f32.mrb[76].mxu1  ;;  %4576 = vmatpush1.xpose.msra.mxu0 %v3713_v40 }
 0x4f9   : > { %v5577_v56 = vadd.f32 %v3410_v4, %v2540_v26  ;;  %v3412_v53 = vpop.f32.mrb[77].mxu1  ;;  %4660 = vmatprep.subr.mxu0 %v3716_v3 }
 0x4fa   : > { %v5578_v54 = vadd.f32 %v3412_v53, %v2540_v26  ;;  %4559 = vmatprep.mubr.f32.mxu0 %v3640_v58 }
 0x4fb   : > { %4560 = vmatmul.mubr.f32.gmra.mrb[202].mxu0 %v3639_v10  ;;  %v3641_v62 = vmax.f32 %v5577_v56, 0.0  ;;  %v2585_v10 = vpop.permute.xlu1 %2584 }
 0x4fc   : > { %v3642_v37 = vmax.f32 %v5578_v54, 0.0  ;;  %v3416_v55 = vpop.f32.mrb[78].mxu1 }
 0x4fd   : > { %v5579_v50 = vadd.f32 %v3416_v55, %v2545_v51  ;;  %v3418_v63 = vpop.f32.mrb[79].mxu1 }
 0x4fe   : > { %v5580_v8 = vadd.f32 %v3418_v63, %v2545_v51  ;;  %4564 = vmatprep.mubr.f32.mxu0 %v3642_v37 }
 0x4ff   : > { %4565 = vmatmul.mubr.f32.gmra.mrb[204].mxu0 %v3641_v62  ;;  %v3643_v6 = vmax.f32 %v5579_v50, 0.0  ;;  %v2590_v62 = vpop.permute.xlu0 %2589 }
 0x500   : > { %v3644_v2 = vmax.f32 %v5580_v8, 0.0  ;;  %v3422_v5 = vpop.f32.mrb[80].mxu1 }
 0x501   : > { %v5581_v17 = vadd.f32 %v3422_v5, %v2550_v36  ;;  %v3424_v21 = vpop.f32.mrb[81].mxu1 }
 0x502   : > { %v5582_v9 = vadd.f32 %v3424_v21, %v2550_v36  ;;  %4569 = vmatprep.mubr.f32.mxu0 %v3644_v2 }
 0x503   : > { %4570 = vmatmul.mubr.f32.gmra.mrb[206].mxu0 %v3643_v6  ;;  %v3645_v1 = vmax.f32 %v5581_v17, 0.0  ;;  %v2595_v6 = vpop.permute.xlu1 %2594 }
 0x504   : > { %v3646_v11 = vmax.f32 %v5582_v9, 0.0  ;;  %v3428_v61 = vpop.f32.mrb[82].mxu1 }
 0x505   : > { %v5583_v12 = vadd.f32 %v3428_v61, %v2555_v29  ;;  %v3430_v45 = vpop.f32.mrb[83].mxu1  ;;  %v3719_v61 = vld [vmem:[%s7282_s7 + $0xd0] sm:$0xff] }
 0x506   : > { %v5584_v15 = vadd.f32 %v3430_v45, %v2555_v29  ;;  %4639 = vmatprep.mubr.f32.mxu0 %v3646_v11  ;;  %v2600_v45 = vpop.permute.xlu0 %2599 }
 0x507   : > { %4640 = vmatmul.mubr.f32.vlgmr.msra.gmra.mrb[208].mxu0 %v3645_v1  ;;  %v3647_v14 = vmax.f32 %v5583_v12, 0.0  ;;  %v3722_v12 = vld [vmem:[%s7282_s7 + $0xe8] sm:$0xff] }
 0x508   : > { %v3648_v18 = vmax.f32 %v5584_v15, 0.0  ;;  %v3434_v44 = vpop.f32.mrb[84].mxu1  ;;  %4661 = vmatpush1.xpose.msra.mxu0 %v3715_v16 }
 0x509   : > { %v5585_v19 = vadd.f32 %v3434_v44, %v2560_v13  ;;  %v3436_v20 = vpop.f32.mrb[85].mxu1  ;;  %4745 = vmatprep.subr.mxu0 %v3718_v60 }
 0x50a   : > { %v5586_v22 = vadd.f32 %v3436_v20, %v2560_v13  ;;  %4644 = vmatprep.mubr.f32.mxu0 %v3648_v18 }
 0x50b   : > { %4645 = vmatmul.mubr.f32.gmra.mrb[210].mxu0 %v3647_v14  ;;  %v3649_v32 = vmax.f32 %v5585_v19, 0.0  ;;  %v2605_v14 = vpop.permute.xlu1 %2604 }
 0x50c   : > { %v3650_v23 = vmax.f32 %v5586_v22, 0.0  ;;  %v3440_v24 = vpop.f32.mrb[86].mxu1 }
 0x50d   : > { %v5587_v33 = vadd.f32 %v3440_v24, %v2565_v0  ;;  %v3442_v34 = vpop.f32.mrb[87].mxu1 }
 0x50e   : > { %v5588_v31 = vadd.f32 %v3442_v34, %v2565_v0  ;;  %4649 = vmatprep.mubr.f32.mxu0 %v3650_v23 }
 0x50f   : > { %4650 = vmatmul.mubr.f32.gmra.mrb[212].mxu0 %v3649_v32  ;;  %v3651_v30 = vmax.f32 %v5587_v33, 0.0  ;;  %v2610_v32 = vpop.permute.xlu0 %2609 }
 0x510   : > { %v3652_v35 = vmax.f32 %v5588_v31, 0.0  ;;  %v3446_v38 = vpop.f32.mrb[88].mxu1 }
 0x511   : > { %v5589_v27 = vadd.f32 %v3446_v38, %v2570_v52  ;;  %v3448_v7 = vpop.f32.mrb[89].mxu1 }
 0x512   : > { %v5590_v39 = vadd.f32 %v3448_v7, %v2570_v52  ;;  %4654 = vmatprep.mubr.f32.mxu0 %v3652_v35 }
 0x513   : > { %4655 = vmatmul.mubr.f32.gmra.mrb[214].mxu0 %v3651_v30  ;;  %v3653_v46 = vmax.f32 %v5589_v27, 0.0  ;;  %v2615_v30 = vpop.permute.xlu1 %2614 }
 0x514   : > { %v3654_v43 = vmax.f32 %v5590_v39, 0.0  ;;  %v3452_v28 = vpop.f32.mrb[90].mxu1 }
 0x515   : > { %v5591_v25 = vadd.f32 %v3452_v28, %v2575_v42  ;;  %v3454_v47 = vpop.f32.mrb[91].mxu1  ;;  %v3721_v28 = vld [vmem:[%s7282_s7 + $0xe0] sm:$0xff] }
 0x516   : > { %v5592_v48 = vadd.f32 %v3454_v47, %v2575_v42  ;;  %4724 = vmatprep.mubr.f32.mxu0 %v3654_v43  ;;  %v2620_v47 = vpop.permute.xlu0 %2619 }
 0x517   : > { %4725 = vmatmul.mubr.f32.vlgmr.msra.gmra.mrb[216].mxu0 %v3653_v46  ;;  %v3655_v3 = vmax.f32 %v5591_v25, 0.0  ;;  %v3724_v25 = vld [vmem:[%s7282_s7 + $0xf8] sm:$0xff] }
 0x518   : > { %v3656_v40 = vmax.f32 %v5592_v48, 0.0  ;;  %v3458_v49 = vpop.f32.mrb[92].mxu1  ;;  %4746 = vmatpush1.xpose.msra.mxu0 %v3717_v41 }
 0x519   : > { %v5593_v26 = vadd.f32 %v3458_v49, %v2580_v59  ;;  %v3460_v58 = vpop.f32.mrb[93].mxu1  ;;  %4830 = vmatprep.subr.mxu0 %v3720_v57 }
 0x51a   : > { %v5594_v4 = vadd.f32 %v3460_v58, %v2580_v59  ;;  %4729 = vmatprep.mubr.f32.mxu0 %v3656_v40  ;;  %v2625_v58 = vpop.permute.xlu1 %2624 }
 0x51b   : > { %4730 = vmatmul.mubr.f32.gmra.mrb[218].mxu0 %v3655_v3  ;;  %v3657_v54 = vmax.f32 %v5593_v26, 0.0 }
 0x51c   : > { %v3658_v56 = vmax.f32 %v5594_v4, 0.0  ;;  %v3464_v53 = vpop.f32.mrb[94].mxu1 }
 0x51d   : > { %v5595_v51 = vadd.f32 %v3464_v53, %v2585_v10  ;;  %v3466_v37 = vpop.f32.mrb[95].mxu1 }
 0x51e   : > { %v5596_v55 = vadd.f32 %v3466_v37, %v2585_v10  ;;  %4734 = vmatprep.mubr.f32.mxu0 %v3658_v56 }
 0x51f   : > { %4735 = vmatmul.mubr.f32.gmra.mrb[220].mxu0 %v3657_v54  ;;  %v3659_v8 = vmax.f32 %v5595_v51, 0.0 }
 0x520   : > { %v3660_v50 = vmax.f32 %v5596_v55, 0.0  ;;  %v3470_v63 = vpop.f32.mrb[96].mxu1 }
 0x521   : > { %v5597_v36 = vadd.f32 %v3470_v63, %v2590_v62  ;;  %v3472_v2 = vpop.f32.mrb[97].mxu1 }
 0x522   : > { %v5598_v5 = vadd.f32 %v3472_v2, %v2590_v62  ;;  %4739 = vmatprep.mubr.f32.mxu0 %v3660_v50  ;;  %v2630_v62 = vpop.permute.xlu0 %2629 }
 0x523   : > { %4740 = vmatmul.mubr.f32.gmra.mrb[222].mxu0 %v3659_v8  ;;  %v3661_v9 = vmax.f32 %v5597_v36, 0.0 }
 0x524   : > { %v3662_v17 = vmax.f32 %v5598_v5, 0.0  ;;  %v3476_v21 = vpop.f32.mrb[98].mxu1 }
 0x525   : > { %v5599_v29 = vadd.f32 %v3476_v21, %v2595_v6  ;;  %v3478_v11 = vpop.f32.mrb[99].mxu1  ;;  %v2635_v21 = vpop.permute.xlu1 %2634 }
 0x526   : > { %v5600_v1 = vadd.f32 %v3478_v11, %v2595_v6  ;;  %4809 = vmatprep.mubr.f32.mxu0 %v3662_v17 }
 0x527   : > { %4810 = vmatmul.mubr.f32.vlgmr.msra.gmra.mrb[224].mxu0 %v3661_v9  ;;  %v3663_v60 = vmax.f32 %v5599_v29, 0.0 }
 0x528   : > { %v3664_v16 = vmax.f32 %v5600_v1, 0.0  ;;  %v3482_v15 = vpop.f32.mrb[100].mxu1  ;;  %4831 = vmatpush1.xpose.msra.mxu0 %v3719_v61 }
 0x529   : > { %v5601_v13 = vadd.f32 %v3482_v15, %v2600_v45  ;;  %v3484_v18 = vpop.f32.mrb[101].mxu1  ;;  %4915 = vmatprep.subr.mxu0 %v3722_v12  ;;  %v3723_v12 = vld [vmem:[%s7282_s7 + $0xf0] sm:$0xff] }
 0x52a   : > { %v5602_v44 = vadd.f32 %v3484_v18, %v2600_v45  ;;  %4814 = vmatprep.mubr.f32.mxu0 %v3664_v16 }
 0x52b   : > { %4815 = vmatmul.mubr.f32.gmra.mrb[226].mxu0 %v3663_v60  ;;  %v3665_v22 = vmax.f32 %v5601_v13, 0.0  ;;  %v2640_v60 = vpop.permute.xlu0 %2639 }
 0x52c   : > { %v3666_v19 = vmax.f32 %v5602_v44, 0.0  ;;  %v3488_v20 = vpop.f32.mrb[102].mxu1 }
 0x52d   : > { %v5603_v0 = vadd.f32 %v3488_v20, %v2605_v14  ;;  %v3490_v23 = vpop.f32.mrb[103].mxu1 }
 0x52e   : > { %v5604_v24 = vadd.f32 %v3490_v23, %v2605_v14  ;;  %4819 = vmatprep.mubr.f32.mxu0 %v3666_v19 }
 0x52f   : > { %4820 = vmatmul.mubr.f32.gmra.mrb[228].mxu0 %v3665_v22  ;;  %v3667_v31 = vmax.f32 %v5603_v0, 0.0 }
 0x530   : > { %v3668_v33 = vmax.f32 %v5604_v24, 0.0  ;;  %v3494_v34 = vpop.f32.mrb[104].mxu1 }
 0x531   : > { %v5605_v52 = vadd.f32 %v3494_v34, %v2610_v32  ;;  %v3496_v35 = vpop.f32.mrb[105].mxu1 }
 0x532   : > { %v5606_v38 = vadd.f32 %v3496_v35, %v2610_v32  ;;  %4824 = vmatprep.mubr.f32.mxu0 %v3668_v33  ;;  %v2645_v32 = vpop.permute.xlu1 %2644 }
 0x533   : > { %4825 = vmatmul.mubr.f32.gmra.mrb[230].mxu0 %v3667_v31  ;;  %v3669_v39 = vmax.f32 %v5605_v52, 0.0 }
 0x534   : > { %v3670_v27 = vmax.f32 %v5606_v38, 0.0  ;;  %v3500_v7 = vpop.f32.mrb[106].mxu1 }
 0x535   : > { %v5607_v42 = vadd.f32 %v3500_v7, %v2615_v30  ;;  %v3502_v43 = vpop.f32.mrb[107].mxu1 }
 0x536   : > { %v5608_v46 = vadd.f32 %v3502_v43, %v2615_v30  ;;  %4894 = vmatprep.mubr.f32.mxu0 %v3670_v27  ;;  %v2650_v43 = vpop.permute.xlu0 %2649 }
 0x537   : > { %4895 = vmatmul.mubr.f32.vlgmr.msra.gmra.mrb[232].mxu0 %v3669_v39  ;;  %v3671_v57 = vmax.f32 %v5607_v42, 0.0 }
 0x538   : > { %v3672_v41 = vmax.f32 %v5608_v46, 0.0  ;;  %v3506_v48 = vpop.f32.mrb[108].mxu1  ;;  %4916 = vmatpush1.xpose.msra.mxu0 %v3721_v28 }
 0x539   : > { %v5609_v59 = vadd.f32 %v3506_v48, %v2620_v47  ;;  %v3508_v40 = vpop.f32.mrb[109].mxu1  ;;  %5000 = vmatprep.subr.mxu0 %v3724_v25 }
 0x53a   : > { %v5610_v49 = vadd.f32 %v3508_v40, %v2620_v47  ;;  %v3791_v3 = vpop.f32.mrb[128].mxu0  ;;  %4899 = vmatprep.mubr.f32.mxu0 %v3672_v41 }
 0x53b   : > { %v3793_v26 = vpop.f32.mrb[129].mxu0  ;;  %4900 = vmatmul.mubr.f32.gmra.mrb[234].mxu0 %v3671_v57  ;;  %v3673_v56 = vmax.f32 %v5609_v59, 0.0  ;;  %v5086_v0 = vsel %vm5085_vm0, %v3791_v3, 0.0 }
 0x53c   : > { %v3674_v4 = vmax.f32 %v5610_v49, 0.0  ;;  %v3512_v10 = vpop.f32.mrb[110].mxu1  ;;  %v2655_v26 = vpop.permute.xlu1 %2654 }
 0x53d   : > { %v5611_v53 = vadd.f32 %v3512_v10, %v2625_v58  ;;  %v3514_v54 = vpop.f32.mrb[111].mxu1 }
 0x53e   : > { %v5612_v51 = vadd.f32 %v3514_v54, %v2625_v58  ;;  %v3796_v37 = vpop.f32.mrb[130].mxu0  ;;  %4904 = vmatprep.mubr.f32.mxu0 %v3674_v4 }
 0x53f   : > { %v3798_v55 = vpop.f32.mrb[131].mxu0  ;;  %4905 = vmatmul.mubr.f32.gmra.mrb[236].mxu0 %v3673_v56  ;;  %v3675_v8 = vmax.f32 %v5611_v53, 0.0  ;;  %v5117_v7 = vsel %vm5085_vm0, %v3796_v37, 0.0 }
 0x540   : > { %v3676_v50 = vmax.f32 %v5612_v51, 0.0  ;;  %v3518_v63 = vpop.f32.mrb[112].mxu1 }
 0x541   : > { %v5613_v36 = vadd.f32 %v3518_v63, %v2630_v62  ;;  %v3520_v2 = vpop.f32.mrb[113].mxu1  ;;  %v2660_v63 = vpop.permute.xlu0 %2659 }
 0x542   : > { %v5614_v5 = vadd.f32 %v3520_v2, %v2630_v62  ;;  %v3801_v6 = vpop.f32.mrb[132].mxu0  ;;  %4909 = vmatprep.mubr.f32.mxu0 %v3676_v50 }
 0x543   : > { %v3803_v17 = vpop.f32.mrb[133].mxu0  ;;  %4910 = vmatmul.mubr.f32.gmra.mrb[238].mxu0 %v3675_v8  ;;  %v3677_v11 = vmax.f32 %v5613_v36, 0.0  ;;  %v5148_v40 = vsel %vm5085_vm0, %v3801_v6, 0.0 }
 0x544   : > { %v3678_v9 = vmax.f32 %v5614_v5, 0.0  ;;  %v3524_v29 = vpop.f32.mrb[114].mxu1 }
 0x545   : > { %v5615_v61 = vadd.f32 %v3524_v29, %v2635_v21  ;;  %v3526_v1 = vpop.f32.mrb[115].mxu1 }
 0x546   : > { %v5616_v45 = vadd.f32 %v3526_v1, %v2635_v21  ;;  %v3806_v16 = vpop.f32.mrb[134].mxu0  ;;  %4979 = vmatprep.mubr.f32.mxu0 %v3678_v9 }
 0x547   : > { %v3808_v15 = vpop.f32.mrb[135].mxu0  ;;  %4980 = vmatmul.mubr.f32.vlgmr.msra.gmra.mrb[240].mxu0 %v3677_v11  ;;  %v3679_v44 = vmax.f32 %v5615_v61, 0.0  ;;  %v5179_v55 = vsel %vm5085_vm0, %v3806_v16, 0.0  ;;  %v2665_v61 = vpop.permute.xlu1 %2664 }
 0x548   : > { %v3680_v13 = vmax.f32 %v5616_v45, 0.0  ;;  %v3530_v18 = vpop.f32.mrb[116].mxu1  ;;  %5001 = vmatpush1.xpose.msra.mxu0 %v3723_v12 }
 0x549   : > { %v5617_v14 = vadd.f32 %v3530_v18, %v2640_v60  ;;  %v3532_v19 = vpop.f32.mrb[117].mxu1 }
 0x54a   : > { %v5618_v20 = vadd.f32 %v3532_v19, %v2640_v60  ;;  %v3876_v22 = vpop.f32.mrb[136].mxu0  ;;  %4984 = vmatprep.mubr.f32.mxu0 %v3680_v13 }
 0x54b   : > { %v5087_v23 = vsel %vm5085_vm0, %v3876_v22, 0.0  ;;  %v3878_v24 = vpop.f32.mrb[137].mxu0  ;;  %4985 = vmatmul.mubr.f32.gmra.mrb[242].mxu0 %v3679_v44  ;;  %v3681_v52 = vmax.f32 %v5617_v14, 0.0 }
 0x54c   : > { %v3682_v33 = vmax.f32 %v5618_v20, 0.0  ;;  %v5088_v34 = vadd.f32 %v5087_v23, %v5086_v0  ;;  %v3536_v31 = vpop.f32.mrb[118].mxu1 }
 0x54d   : > { %v5619_v35 = vadd.f32 %v3536_v31, %v2645_v32  ;;  %v3538_v38 = vpop.f32.mrb[119].mxu1 }
 0x54e   : > { %v5620_v30 = vadd.f32 %v3538_v38, %v2645_v32  ;;  %v3881_v27 = vpop.f32.mrb[138].mxu0  ;;  %4989 = vmatprep.mubr.f32.mxu0 %v3682_v33 }
 0x54f   : > { %v5118_v39 = vsel %vm5085_vm0, %v3881_v27, 0.0  ;;  %v3883_v42 = vpop.f32.mrb[139].mxu0  ;;  %4990 = vmatmul.mubr.f32.gmra.mrb[244].mxu0 %v3681_v52  ;;  %v3683_v47 = vmax.f32 %v5619_v35, 0.0 }
 0x550   : > { %v3684_v28 = vmax.f32 %v5620_v30, 0.0  ;;  %v5119_v46 = vadd.f32 %v5118_v39, %v5117_v7  ;;  %v3542_v25 = vpop.f32.mrb[120].mxu1 }
 0x551   : > { %v5621_v41 = vadd.f32 %v3542_v25, %v2650_v43  ;;  %v3544_v48 = vpop.f32.mrb[121].mxu1 }
 0x552   : > { %v5622_v57 = vadd.f32 %v3544_v48, %v2650_v43  ;;  %v3886_v59 = vpop.f32.mrb[140].mxu0  ;;  %4994 = vmatprep.mubr.f32.mxu0 %v3684_v28 }
 0x553   : > { %v5149_v49 = vsel %vm5085_vm0, %v3886_v59, 0.0  ;;  %v3888_v3 = vpop.f32.mrb[141].mxu0  ;;  %4995 = vmatmul.mubr.f32.gmra.mrb[246].mxu0 %v3683_v47  ;;  %v3685_v56 = vmax.f32 %v5621_v41, 0.0 }
 0x554   : > { %v3686_v58 = vmax.f32 %v5622_v57, 0.0  ;;  %v5150_v4 = vadd.f32 %v5149_v49, %v5148_v40  ;;  %v3548_v10 = vpop.f32.mrb[122].mxu1 }
 0x555   : > { %v5623_v53 = vadd.f32 %v3548_v10, %v2655_v26  ;;  %v3550_v54 = vpop.f32.mrb[123].mxu1 }
 0x556   : > { %v5624_v51 = vadd.f32 %v3550_v54, %v2655_v26  ;;  %v3891_v37 = vpop.f32.mrb[142].mxu0  ;;  %5064 = vmatprep.mubr.f32.mxu0 %v3686_v58 }
 0x557   : > { %v5180_v62 = vsel %vm5085_vm0, %v3891_v37, 0.0  ;;  %v3893_v50 = vpop.f32.mrb[143].mxu0  ;;  %5065 = vmatmul.mubr.f32.vlgmr.msra.gmra.mrb[248].mxu0 %v3685_v56  ;;  %v3687_v5 = vmax.f32 %v5623_v53, 0.0 }
 0x558   : > { %v3688_v8 = vmax.f32 %v5624_v51, 0.0  ;;  %v5181_v36 = vadd.f32 %v5180_v62, %v5179_v55  ;;  %v3554_v2 = vpop.f32.mrb[124].mxu1 }
 0x559   : > { %v5625_v6 = vadd.f32 %v3554_v2, %v2660_v63  ;;  %v3556_v17 = vpop.f32.mrb[125].mxu1 }
 0x55a   : > { %v5626_v21 = vadd.f32 %v3556_v17, %v2660_v63  ;;  %v3961_v9 = vpop.f32.mrb[144].mxu0  ;;  %5069 = vmatprep.mubr.f32.mxu0 %v3688_v8 }
 0x55b   : > { %v5089_v29 = vsel %vm5085_vm0, %v3961_v9, 0.0  ;;  %v3963_v11 = vpop.f32.mrb[145].mxu0  ;;  %5070 = vmatmul.mubr.f32.gmra.mrb[250].mxu0 %v3687_v5  ;;  %v3689_v16 = vmax.f32 %v5625_v6, 0.0 }
 0x55c   : > { %v3690_v1 = vmax.f32 %v5626_v21, 0.0  ;;  %v5090_v12 = vadd.f32 %v5089_v29, %v5088_v34  ;;  %v3560_v45 = vpop.f32.mrb[126].mxu1 }
 0x55d   : > { %v5627_v15 = vadd.f32 %v3560_v45, %v2665_v61  ;;  %v3562_v60 = vpop.f32.mrb[127].mxu1 }
 0x55e   : > { %v5628_v13 = vadd.f32 %v3562_v60, %v2665_v61  ;;  %v3966_v18 = vpop.f32.mrb[146].mxu0  ;;  %5074 = vmatprep.mubr.f32.mxu0 %v3690_v1 }
 0x55f   : > { %v5120_v44 = vsel %vm5085_vm0, %v3966_v18, 0.0  ;;  %v3968_v14 = vpop.f32.mrb[147].mxu0  ;;  %5075 = vmatmul.mubr.f32.gmra.mrb[252].mxu0 %v3689_v16  ;;  %v3691_v22 = vmax.f32 %v5627_v15, 0.0 }
 0x560   : > { %v3692_v19 = vmax.f32 %v5628_v13, 0.0  ;;  %v5121_v20 = vadd.f32 %v5120_v44, %v5119_v46 }
 0x562   : > { %v3971_v0 = vpop.f32.mrb[148].mxu0  ;;  %5079 = vmatprep.mubr.f32.mxu0 %v3692_v19 }
 0x563   : > { %v5151_v23 = vsel %vm5085_vm0, %v3971_v0, 0.0  ;;  %v3973_v24 = vpop.f32.mrb[149].mxu0  ;;  %5080 = vmatmul.mubr.f32.gmra.mrb[254].mxu0 %v3691_v22 }
 0x564   : > { %v5152_v32 = vadd.f32 %v5151_v23, %v5150_v4 }
 0x566   : > { %v3976_v33 = vpop.f32.mrb[150].mxu0 }
 0x567   : > { %v5182_v34 = vsel %vm5085_vm0, %v3976_v33, 0.0  ;;  %v3978_v31 = vpop.f32.mrb[151].mxu0 }
 0x568   : > { %v5183_v52 = vadd.f32 %v5182_v34, %v5181_v36 }
 0x56a   : > { %v4046_v35 = vpop.f32.mrb[152].mxu0 }
 0x56b   : > { %v5091_v38 = vsel %vm5085_vm0, %v4046_v35, 0.0  ;;  %v4048_v30 = vpop.f32.mrb[153].mxu0 }
 0x56c   : > { %v5092_v27 = vadd.f32 %v5091_v38, %v5090_v12 }
 0x56e   : > { %v4051_v7 = vpop.f32.mrb[154].mxu0 }
 0x56f   : > { %v5122_v39 = vsel %vm5085_vm0, %v4051_v7, 0.0  ;;  %v4053_v42 = vpop.f32.mrb[155].mxu0 }
 0x570   : > { %v5123_v43 = vadd.f32 %v5122_v39, %v5121_v20 }
 0x572   : > { %v4056_v28 = vpop.f32.mrb[156].mxu0 }
 0x573   : > { %v5153_v46 = vsel %vm5085_vm0, %v4056_v28, 0.0  ;;  %v4058_v25 = vpop.f32.mrb[157].mxu0 }
 0x574   : > { %v5154_v47 = vadd.f32 %v5153_v46, %v5152_v32 }
 0x576   : > { %v4061_v41 = vpop.f32.mrb[158].mxu0 }
 0x577   : > { %v5184_v48 = vsel %vm5085_vm0, %v4061_v41, 0.0  ;;  %v4063_v57 = vpop.f32.mrb[159].mxu0 }
 0x578   : > { %v5185_v59 = vadd.f32 %v5184_v48, %v5183_v52 }
 0x57a   : > { %v4131_v40 = vpop.f32.mrb[160].mxu0 }
 0x57b   : > { %v5093_v49 = vsel %vm5085_vm0, %v4131_v40, 0.0  ;;  %v4133_v3 = vpop.f32.mrb[161].mxu0 }
 0x57c   : > { %v5094_v26 = vadd.f32 %v5093_v49, %v5092_v27 }
 0x57e   : > { %v4136_v58 = vpop.f32.mrb[162].mxu0 }
 0x57f   : > { %v5124_v4 = vsel %vm5085_vm0, %v4136_v58, 0.0  ;;  %v4138_v10 = vpop.f32.mrb[163].mxu0 }
 0x580   : > { %v5125_v56 = vadd.f32 %v5124_v4, %v5123_v43 }
 0x582   : > { %v4141_v53 = vpop.f32.mrb[164].mxu0 }
 0x583   : > { %v5155_v54 = vsel %vm5085_vm0, %v4141_v53, 0.0  ;;  %v4143_v51 = vpop.f32.mrb[165].mxu0 }
 0x584   : > { %v5156_v37 = vadd.f32 %v5155_v54, %v5154_v47 }
 0x586   : > { %v4146_v55 = vpop.f32.mrb[166].mxu0 }
 0x587   : > { %v5186_v62 = vsel %vm5085_vm0, %v4146_v55, 0.0  ;;  %v4148_v50 = vpop.f32.mrb[167].mxu0 }
 0x588   : > { %v5187_v63 = vadd.f32 %v5186_v62, %v5185_v59 }
 0x58a   : > { %v4216_v8 = vpop.f32.mrb[168].mxu0 }
 0x58b   : > { %v5095_v36 = vsel %vm5085_vm0, %v4216_v8, 0.0  ;;  %v4218_v2 = vpop.f32.mrb[169].mxu0 }
 0x58c   : > { %v5096_v5 = vadd.f32 %v5095_v36, %v5094_v26 }
 0x58e   : > { %v4221_v6 = vpop.f32.mrb[170].mxu0 }
 0x58f   : > { %v5126_v17 = vsel %vm5085_vm0, %v4221_v6, 0.0  ;;  %v4223_v21 = vpop.f32.mrb[171].mxu0 }
 0x590   : > { %v5127_v9 = vadd.f32 %v5126_v17, %v5125_v56 }
 0x592   : > { %v4226_v29 = vpop.f32.mrb[172].mxu0 }
 0x593   : > { %v5157_v11 = vsel %vm5085_vm0, %v4226_v29, 0.0  ;;  %v4228_v61 = vpop.f32.mrb[173].mxu0 }
 0x594   : > { %v5158_v1 = vadd.f32 %v5157_v11, %v5156_v37 }
 0x596   : > { %v4231_v12 = vpop.f32.mrb[174].mxu0 }
 0x597   : > { %v5188_v45 = vsel %vm5085_vm0, %v4231_v12, 0.0  ;;  %v4233_v16 = vpop.f32.mrb[175].mxu0 }
 0x598   : > { %v5189_v15 = vadd.f32 %v5188_v45, %v5187_v63 }
 0x59a   : > { %v4301_v60 = vpop.f32.mrb[176].mxu0 }
 0x59b   : > { %v5097_v13 = vsel %vm5085_vm0, %v4301_v60, 0.0  ;;  %v4303_v18 = vpop.f32.mrb[177].mxu0 }
 0x59c   : > { %v5098_v44 = vadd.f32 %v5097_v13, %v5096_v5 }
 0x59e   : > { %v4306_v14 = vpop.f32.mrb[178].mxu0 }
 0x59f   : > { %v5128_v19 = vsel %vm5085_vm0, %v4306_v14, 0.0  ;;  %v4308_v20 = vpop.f32.mrb[179].mxu0 }
 0x5a0   : > { %v5129_v22 = vadd.f32 %v5128_v19, %v5127_v9 }
 0x5a2   : > { %v4311_v0 = vpop.f32.mrb[180].mxu0 }
 0x5a3   : > { %v5159_v23 = vsel %vm5085_vm0, %v4311_v0, 0.0  ;;  %v4313_v24 = vpop.f32.mrb[181].mxu0 }
 0x5a4   : > { %v5160_v32 = vadd.f32 %v5159_v23, %v5158_v1 }
 0x5a6   : > { %v4316_v33 = vpop.f32.mrb[182].mxu0 }
 0x5a7   : > { %v5190_v34 = vsel %vm5085_vm0, %v4316_v33, 0.0  ;;  %v4318_v31 = vpop.f32.mrb[183].mxu0 }
 0x5a8   : > { %v5191_v52 = vadd.f32 %v5190_v34, %v5189_v15 }
 0x5aa   : > { %v4386_v35 = vpop.f32.mrb[184].mxu0 }
 0x5ab   : > { %v5099_v38 = vsel %vm5085_vm0, %v4386_v35, 0.0  ;;  %v4388_v30 = vpop.f32.mrb[185].mxu0 }
 0x5ac   : > { %v5100_v27 = vadd.f32 %v5099_v38, %v5098_v44 }
 0x5ae   : > { %v4391_v7 = vpop.f32.mrb[186].mxu0 }
 0x5af   : > { %v5130_v39 = vsel %vm5085_vm0, %v4391_v7, 0.0  ;;  %v4393_v42 = vpop.f32.mrb[187].mxu0 }
 0x5b0   : > { %v5131_v43 = vadd.f32 %v5130_v39, %v5129_v22 }
 0x5b2   : > { %v4396_v28 = vpop.f32.mrb[188].mxu0 }
 0x5b3   : > { %v5161_v46 = vsel %vm5085_vm0, %v4396_v28, 0.0  ;;  %v4398_v25 = vpop.f32.mrb[189].mxu0 }
 0x5b4   : > { %v5162_v47 = vadd.f32 %v5161_v46, %v5160_v32 }
 0x5b6   : > { %v4401_v41 = vpop.f32.mrb[190].mxu0 }
 0x5b7   : > { %v5192_v48 = vsel %vm5085_vm0, %v4401_v41, 0.0  ;;  %v4403_v57 = vpop.f32.mrb[191].mxu0 }
 0x5b8   : > { %v5193_v59 = vadd.f32 %v5192_v48, %v5191_v52 }
 0x5ba   : > { %v4471_v40 = vpop.f32.mrb[192].mxu0 }
 0x5bb   : > { %v5101_v49 = vsel %vm5085_vm0, %v4471_v40, 0.0  ;;  %v4473_v3 = vpop.f32.mrb[193].mxu0 }
 0x5bc   : > { %v5102_v26 = vadd.f32 %v5101_v49, %v5100_v27 }
 0x5be   : > { %v4476_v58 = vpop.f32.mrb[194].mxu0 }
 0x5bf   : > { %v5132_v4 = vsel %vm5085_vm0, %v4476_v58, 0.0  ;;  %v4478_v10 = vpop.f32.mrb[195].mxu0 }
 0x5c0   : > { %v5133_v56 = vadd.f32 %v5132_v4, %v5131_v43 }
 0x5c2   : > { %v4481_v53 = vpop.f32.mrb[196].mxu0 }
 0x5c3   : > { %v5163_v54 = vsel %vm5085_vm0, %v4481_v53, 0.0  ;;  %v4483_v51 = vpop.f32.mrb[197].mxu0 }
 0x5c4   : > { %v5164_v37 = vadd.f32 %v5163_v54, %v5162_v47 }
 0x5c6   : > { %v4486_v55 = vpop.f32.mrb[198].mxu0 }
 0x5c7   : > { %v5194_v62 = vsel %vm5085_vm0, %v4486_v55, 0.0  ;;  %v4488_v50 = vpop.f32.mrb[199].mxu0 }
 0x5c8   : > { %v5195_v63 = vadd.f32 %v5194_v62, %v5193_v59 }
 0x5ca   : > { %v4556_v8 = vpop.f32.mrb[200].mxu0 }
 0x5cb   : > { %v5103_v36 = vsel %vm5085_vm0, %v4556_v8, 0.0  ;;  %v4558_v2 = vpop.f32.mrb[201].mxu0 }
 0x5cc   : > { %v5104_v5 = vadd.f32 %v5103_v36, %v5102_v26 }
 0x5ce   : > { %v4561_v6 = vpop.f32.mrb[202].mxu0 }
 0x5cf   : > { %v5134_v17 = vsel %vm5085_vm0, %v4561_v6, 0.0  ;;  %v4563_v21 = vpop.f32.mrb[203].mxu0 }
 0x5d0   : > { %v5135_v9 = vadd.f32 %v5134_v17, %v5133_v56 }
 0x5d2   : > { %v4566_v29 = vpop.f32.mrb[204].mxu0 }
 0x5d3   : > { %v5165_v11 = vsel %vm5085_vm0, %v4566_v29, 0.0  ;;  %v4568_v61 = vpop.f32.mrb[205].mxu0 }
 0x5d4   : > { %v5166_v1 = vadd.f32 %v5165_v11, %v5164_v37 }
 0x5d6   : > { %v4571_v12 = vpop.f32.mrb[206].mxu0 }
 0x5d7   : > { %v5196_v45 = vsel %vm5085_vm0, %v4571_v12, 0.0  ;;  %v4573_v16 = vpop.f32.mrb[207].mxu0 }
 0x5d8   : > { %v5197_v15 = vadd.f32 %v5196_v45, %v5195_v63 }
 0x5da   : > { %v4641_v60 = vpop.f32.mrb[208].mxu0 }
 0x5db   : > { %v5105_v13 = vsel %vm5085_vm0, %v4641_v60, 0.0  ;;  %v4643_v18 = vpop.f32.mrb[209].mxu0 }
 0x5dc   : > { %v5106_v44 = vadd.f32 %v5105_v13, %v5104_v5 }
 0x5de   : > { %v4646_v14 = vpop.f32.mrb[210].mxu0 }
 0x5df   : > { %v5136_v19 = vsel %vm5085_vm0, %v4646_v14, 0.0  ;;  %v4648_v20 = vpop.f32.mrb[211].mxu0 }
 0x5e0   : > { %v5137_v22 = vadd.f32 %v5136_v19, %v5135_v9 }
 0x5e2   : > { %v4651_v0 = vpop.f32.mrb[212].mxu0 }
 0x5e3   : > { %v5167_v23 = vsel %vm5085_vm0, %v4651_v0, 0.0  ;;  %v4653_v24 = vpop.f32.mrb[213].mxu0 }
 0x5e4   : > { %v5168_v32 = vadd.f32 %v5167_v23, %v5166_v1 }
 0x5e6   : > { %v4656_v33 = vpop.f32.mrb[214].mxu0 }
 0x5e7   : > { %v5198_v34 = vsel %vm5085_vm0, %v4656_v33, 0.0  ;;  %v4658_v31 = vpop.f32.mrb[215].mxu0 }
 0x5e8   : > { %v5199_v52 = vadd.f32 %v5198_v34, %v5197_v15 }
 0x5ea   : > { %v4726_v35 = vpop.f32.mrb[216].mxu0 }
 0x5eb   : > { %v5107_v38 = vsel %vm5085_vm0, %v4726_v35, 0.0  ;;  %v4728_v30 = vpop.f32.mrb[217].mxu0 }
 0x5ec   : > { %v5108_v27 = vadd.f32 %v5107_v38, %v5106_v44  ;;  %v5305_v30 = vld [vmem:[%s7283_s8] ss:$0 sm:$0xff] }
 0x5ee   : > { %v4731_v7 = vpop.f32.mrb[218].mxu0 }
 0x5ef   : > { %v5138_v39 = vsel %vm5085_vm0, %v4731_v7, 0.0  ;;  %v4733_v42 = vpop.f32.mrb[219].mxu0 }
 0x5f0   : > { %v5139_v43 = vadd.f32 %v5138_v39, %v5137_v22 }
 0x5f2   : > { %v4736_v28 = vpop.f32.mrb[220].mxu0 }
 0x5f3   : > { %v5169_v46 = vsel %vm5085_vm0, %v4736_v28, 0.0  ;;  %v4738_v25 = vpop.f32.mrb[221].mxu0 }
 0x5f4   : > { %v5170_v47 = vadd.f32 %v5169_v46, %v5168_v32 }
 0x5f6   : > { %v4741_v41 = vpop.f32.mrb[222].mxu0 }
 0x5f7   : > { %v5200_v48 = vsel %vm5085_vm0, %v4741_v41, 0.0  ;;  %v4743_v57 = vpop.f32.mrb[223].mxu0 }
 0x5f8   : > { %v5201_v59 = vadd.f32 %v5200_v48, %v5199_v52 }
 0x5fa   : > { %v4811_v40 = vpop.f32.mrb[224].mxu0 }
 0x5fb   : > { %v5109_v49 = vsel %vm5085_vm0, %v4811_v40, 0.0  ;;  %v4813_v3 = vpop.f32.mrb[225].mxu0 }
 0x5fc   : > { %v5110_v26 = vadd.f32 %v5109_v49, %v5108_v27 }
 0x5fe   : > { %v4816_v58 = vpop.f32.mrb[226].mxu0 }
 0x5ff   : > { %v5140_v4 = vsel %vm5085_vm0, %v4816_v58, 0.0  ;;  %v4818_v10 = vpop.f32.mrb[227].mxu0 }
 0x600   : > { %v5141_v56 = vadd.f32 %v5140_v4, %v5139_v43 }
 0x602   : > { %v4821_v53 = vpop.f32.mrb[228].mxu0 }
 0x603   : > { %v5171_v54 = vsel %vm5085_vm0, %v4821_v53, 0.0  ;;  %v4823_v51 = vpop.f32.mrb[229].mxu0 }
 0x604   : > { %v5172_v37 = vadd.f32 %v5171_v54, %v5170_v47 }
 0x606   : > { %v4826_v55 = vpop.f32.mrb[230].mxu0 }
 0x607   : > { %v5202_v62 = vsel %vm5085_vm0, %v4826_v55, 0.0  ;;  %v4828_v50 = vpop.f32.mrb[231].mxu0 }
 0x608   : > { %v5203_v63 = vadd.f32 %v5202_v62, %v5201_v59 }
 0x60a   : > { %v4896_v8 = vpop.f32.mrb[232].mxu0 }
 0x60b   : > { %v5111_v36 = vsel %vm5085_vm0, %v4896_v8, 0.0  ;;  %v4898_v2 = vpop.f32.mrb[233].mxu0 }
 0x60c   : > { %v5112_v5 = vadd.f32 %v5111_v36, %v5110_v26 }
 0x60e   : > { %v4901_v6 = vpop.f32.mrb[234].mxu0 }
 0x60f   : > { %v5142_v17 = vsel %vm5085_vm0, %v4901_v6, 0.0  ;;  %v4903_v21 = vpop.f32.mrb[235].mxu0 }
 0x610   : > { %v5143_v9 = vadd.f32 %v5142_v17, %v5141_v56 }
 0x612   : > { %v4906_v29 = vpop.f32.mrb[236].mxu0 }
 0x613   : > { %v5173_v11 = vsel %vm5085_vm0, %v4906_v29, 0.0  ;;  %v4908_v61 = vpop.f32.mrb[237].mxu0 }
 0x614   : > { %v5174_v1 = vadd.f32 %v5173_v11, %v5172_v37 }
 0x616   : > { %v4911_v12 = vpop.f32.mrb[238].mxu0 }
 0x617   : > { %v5204_v45 = vsel %vm5085_vm0, %v4911_v12, 0.0  ;;  %v4913_v16 = vpop.f32.mrb[239].mxu0 }
 0x618   : > { %v5205_v15 = vadd.f32 %v5204_v45, %v5203_v63 }
 0x61a   : > { %v4981_v60 = vpop.f32.mrb[240].mxu0 }
 0x61b   : > { %v5113_v13 = vsel %vm5085_vm0, %v4981_v60, 0.0  ;;  %v4983_v18 = vpop.f32.mrb[241].mxu0 }
 0x61c   : > { %v5114_v44 = vadd.f32 %v5113_v13, %v5112_v5 }
 0x61e   : > { %v4986_v14 = vpop.f32.mrb[242].mxu0 }
 0x61f   : > { %v5144_v19 = vsel %vm5085_vm0, %v4986_v14, 0.0  ;;  %v4988_v20 = vpop.f32.mrb[243].mxu0 }
 0x620   : > { %v5145_v22 = vadd.f32 %v5144_v19, %v5143_v9 }
 0x622   : > { %v4991_v0 = vpop.f32.mrb[244].mxu0 }
 0x623   : > { %v5175_v23 = vsel %vm5085_vm0, %v4991_v0, 0.0  ;;  %v4993_v24 = vpop.f32.mrb[245].mxu0 }
 0x624   : > { %v5176_v32 = vadd.f32 %v5175_v23, %v5174_v1 }
 0x626   : > { %v4996_v33 = vpop.f32.mrb[246].mxu0 }
 0x627   : > { %v5206_v34 = vsel %vm5085_vm0, %v4996_v33, 0.0  ;;  %v4998_v31 = vpop.f32.mrb[247].mxu0 }
 0x628   : > { %v5207_v52 = vadd.f32 %v5206_v34, %v5205_v15 }
 0x62a   : > { %v5066_v35 = vpop.f32.mrb[248].mxu0 }
 0x62b   : > { %v5115_v38 = vsel %vm5085_vm0, %v5066_v35, 0.0  ;;  %v5068_v27 = vpop.f32.mrb[249].mxu0 }
 0x62c   : > { %v5116_v7 = vadd.f32 %v5115_v38, %v5114_v44 }
 0x62e   : > { %v5217_v39 = vadd.f32 %v5305_v30, %v5116_v7  ;;  %v5071_v42 = vpop.f32.mrb[250].mxu0 }
 0x62f   : > { %v5146_v43 = vsel %vm5085_vm0, %v5071_v42, 0.0  ;;  %v5073_v28 = vpop.f32.mrb[251].mxu0 }
 0x630   : > { %5221 = vst.msk [vmem:[%s352_s19] sm:$0xff] %vm5085_vm0, %v5217_v39  ;;  %v5147_v46 = vadd.f32 %v5146_v43, %v5145_v22 }
 0x632   : > { %v5218_v25 = vadd.f32 %v5305_v30, %v5147_v46  ;;  %v5076_v47 = vpop.f32.mrb[252].mxu0 }
 0x633   : > { %v5177_v41 = vsel %vm5085_vm0, %v5076_v47, 0.0  ;;  %v5078_v48 = vpop.f32.mrb[253].mxu0 }
 0x634   : > { %5222 = vst.msk [vmem:[%s352_s19 + $0x8] sm:$0xff] %vm5085_vm0, %v5218_v25  ;;  %v5178_v57 = vadd.f32 %v5177_v41, %v5176_v32 }
 0x636   : > { %v5219_v59 = vadd.f32 %v5305_v30, %v5178_v57  ;;  %v5081_v40 = vpop.f32.mrb[254].mxu0 }
 0x637   : > { %v5208_v49 = vsel %vm5085_vm0, %v5081_v40, 0.0  ;;  %v5083_v3 = vpop.f32.mrb[255].mxu0 }
 0x638   : > { %5223 = vst.msk [vmem:[%s352_s19 + $0x10] sm:$0xff] %vm5085_vm0, %v5219_v59  ;;  %v5209_v26 = vadd.f32 %v5208_v49, %v5207_v52 }
 0x63a   : > { %v5220_v58 = vadd.f32 %v5305_v30, %v5209_v26 }
 0x63c   : > { %5224 = vst.msk [vmem:[%s352_s19 + $0x18] sm:$0xff] %vm5085_vm0, %v5220_v58 }
 0x63d PF: > { %s20_s30 = sadd.s32 1, %s5819_s30  }
 0x63e   : > { %p17_p3 = scmp.ge.s32.totalorder %s20_s30, 4  }
 0x640   :  { %19 = sbr.rel (!%p17_p3) target bundleno = 1 (0x1), region = 91 }
 0x647   :  { %5247 = vsyncpa [#allocation3], 1 }
 0x648   :  { %5249 = vsyncpa [#allocation3 + $0x1], 1 }

</bundles_post_ra>
